<compile_context>
chip_gen: v7x
topology: tpu7x:2x2x1
jax: 0.10.0
libtpu: 0.0.40
codegen_flags: <defaults>
</compile_context>

<pallas_src>
import functools
import math

import jax
import jax.numpy as jnp
from jax.experimental import pallas as pl
from jax.experimental.pallas import tpu as pltpu

D_MODEL = 64
NHEAD = 2
HEAD_DIM = D_MODEL // NHEAD
DIM_FF = 128
LN_EPS = 1e-5
ATTN_SCALE = 1.0 / math.sqrt(HEAD_DIM)
MAX_LEN = 64          # positional-encoding rows baked into the embedding slab
LANE = 128            # every packed weight slot starts at a 128-lane boundary

# ---------------------------------------------------------------------------
# Packed-slab layout (static; shared by init_params and the kernel).
# ---------------------------------------------------------------------------
# w64 slab: (D_MODEL, N_W64_SLOTS*LANE); sub-matrix `slot` lives at cols
# [slot*LANE, slot*LANE + width).
(ENC_WQ, ENC_WK, ENC_WV, ENC_WO, ENC_W1,
 DEC_SA_WQ, DEC_SA_WK, DEC_SA_WV, DEC_SA_WO,
 DEC_CA_WQ, DEC_CA_WK, DEC_CA_WV, DEC_CA_WO,
 DEC_W1, FC_W) = range(15)
N_W64_SLOTS = 15

# w128 slab: (DIM_FF, N_W128_SLOTS*LANE)  -- the two FF down-projections.
ENC_W2, DEC_W2 = 0, 1
N_W128_SLOTS = 2

# bias / LayerNorm slab: (N_BIAS_ROWS, LANE); one parameter vector per row.
(R_ENC_BQ, R_ENC_BK, R_ENC_BV, R_ENC_BO,
 R_ENC_LN1_G, R_ENC_LN1_B, R_ENC_B1, R_ENC_B2,
 R_ENC_LN2_G, R_ENC_LN2_B, R_ENC_NORM_G, R_ENC_NORM_B,
 R_DEC_SA_BQ, R_DEC_SA_BK, R_DEC_SA_BV, R_DEC_SA_BO,
 R_DEC_LN1_G, R_DEC_LN1_B,
 R_DEC_CA_BQ, R_DEC_CA_BK, R_DEC_CA_BV, R_DEC_CA_BO,
 R_DEC_LN2_G, R_DEC_LN2_B, R_DEC_B1, R_DEC_B2,
 R_DEC_LN3_G, R_DEC_LN3_B, R_DEC_NORM_G, R_DEC_NORM_B,
 R_FC_B) = range(31)
N_BIAS_ROWS = 32


def _round8(x):
    return ((x + 7) // 8) * 8


# ---------------------------------------------------------------------------
# In-kernel helpers (all weight/bias loads happen at the point of use).
# ---------------------------------------------------------------------------
def _wslot(w_ref, slot, width):
    c = slot * LANE
    return w_ref[:, c:c + width]                       # lazy, 128-aligned load


def _brow(b_ref, row, width=D_MODEL):
    return b_ref[row:row + 1, :width]                  # (1, width)


def _layer_norm(z, b_ref, g_row, beta_row):
    g = _brow(b_ref, g_row)
    beta = _brow(b_ref, beta_row)
    mu = jnp.mean(z, axis=-1, keepdims=True)
    var = jnp.mean(jnp.square(z - mu), axis=-1, keepdims=True)
    return (z - mu) * jax.lax.rsqrt(var + LN_EPS) * g + beta


def _mha(x_q, x_kv, w64_ref, b_ref, wslots, brows, n, sq, skv):
    """Multi-head attention; head merge folded into W_o row blocks."""
    wq_s, wk_s, wv_s, wo_s = wslots
    bq_r, bk_r, bv_r, bo_r = brows
    f32 = jnp.float32
    q = jnp.dot(x_q, _wslot(w64_ref, wq_s, D_MODEL),
                preferred_element_type=f32) + _brow(b_ref, bq_r)
    k = jnp.dot(x_kv, _wslot(w64_ref, wk_s, D_MODEL),
                preferred_element_type=f32) + _brow(b_ref, bk_r)
    v = jnp.dot(x_kv, _wslot(w64_ref, wv_s, D_MODEL),
                preferred_element_type=f32) + _brow(b_ref, bv_r)
    q = q * ATTN_SCALE                                  # scale Q once
    q3 = q.reshape(n, sq, D_MODEL)
    k3 = k.reshape(n, skv, D_MODEL)
    v3 = v.reshape(n, skv, D_MODEL)
    out = None
    for h in range(NHEAD):                              # static unroll, NHEAD == 2
        lo = h * HEAD_DIM
        qh = q3[:, :, lo:lo + HEAD_DIM]
        kh = k3[:, :, lo:lo + HEAD_DIM]
        vh = v3[:, :, lo:lo + HEAD_DIM]
        sc = jnp.einsum("nqd,nkd->nqk", qh, kh, preferred_element_type=f32)
        m = jnp.max(sc, axis=-1, keepdims=True)
        p = jnp.exp(sc - m)
        p = p / jnp.sum(p, axis=-1, keepdims=True)      # exact softmax division
        oh = jnp.einsum("nqk,nkd->nqd", p, vh, preferred_element_type=f32)
        # head merge: concat(head_h) @ Wo == sum_h head_h @ Wo[h*hd:(h+1)*hd, :]
        wo_h = w64_ref[lo:lo + HEAD_DIM, wo_s * LANE: wo_s * LANE + D_MODEL]
        c = jnp.dot(oh.reshape(n * sq, HEAD_DIM), wo_h,
                    preferred_element_type=f32)
        out = c if out is None else out + c
    return out + _brow(b_ref, bo_r)


def _ffn(x, w64_ref, w128_ref, b_ref, w1_slot, b1_row, w2_slot, b2_row):
    f32 = jnp.float32
    h = jnp.dot(x, _wslot(w64_ref, w1_slot, DIM_FF),
                preferred_element_type=f32) + _brow(b_ref, b1_row, DIM_FF)
    h = jnp.maximum(h, 0.0)                             # ReLU (nn.Transformer default)
    w2 = w128_ref[:, w2_slot * LANE: w2_slot * LANE + D_MODEL]
    return jnp.dot(h, w2, preferred_element_type=f32) + _brow(b_ref, b2_row)


# ---------------------------------------------------------------------------
# The single fused kernel: embeddings + encoder + decoder + output projection.
# ---------------------------------------------------------------------------
def _transformer_kernel(src_ids_ref, tgt_ids_ref, emb_ref, w64_ref, w128_ref,
                        b_ref, out_ref, srcx_ref, tgtx_ref,
                        *, n, s, t, tgt_vocab, tgt_base, pe_base):
    # ---- in-kernel embedding gather + positional encoding (batch-major rows) ----
    for b in range(n):
        for i in range(s):
            tok = src_ids_ref[i, b]                     # SMEM scalar read
            srcx_ref[b * s + i: b * s + i + 1, :] = (
                emb_ref[pl.ds(tok, 1), :]               # pre-scaled by sqrt(d_model)
                + emb_ref[pe_base + i: pe_base + i + 1, :])
        for i in range(t):
            tok = tgt_ids_ref[i, b]
            tgtx_ref[b * t + i: b * t + i + 1, :] = (
                emb_ref[pl.ds(tok + tgt_base, 1), :]
                + emb_ref[pe_base + i: pe_base + i + 1, :])

    # ---- encoder layer (post-norm) + final encoder LayerNorm ----
    x = srcx_ref[...]
    sa = _mha(x, x, w64_ref, b_ref,
              (ENC_WQ, ENC_WK, ENC_WV, ENC_WO),
              (R_ENC_BQ, R_ENC_BK, R_ENC_BV, R_ENC_BO), n, s, s)
    x = _layer_norm(x + sa, b_ref, R_ENC_LN1_G, R_ENC_LN1_B)
    ff = _ffn(x, w64_ref, w128_ref, b_ref, ENC_W1, R_ENC_B1, ENC_W2, R_ENC_B2)
    x = _layer_norm(x + ff, b_ref, R_ENC_LN2_G, R_ENC_LN2_B)
    memory = _layer_norm(x, b_ref, R_ENC_NORM_G, R_ENC_NORM_B)

    # ---- decoder layer (post-norm) + final decoder LayerNorm ----
    y = tgtx_ref[...]
    sa = _mha(y, y, w64_ref, b_ref,
              (DEC_SA_WQ, DEC_SA_WK, DEC_SA_WV, DEC_SA_WO),
              (R_DEC_SA_BQ, R_DEC_SA_BK, R_DEC_SA_BV, R_DEC_SA_BO), n, t, t)
    y = _layer_norm(y + sa, b_ref, R_DEC_LN1_G, R_DEC_LN1_B)
    ca = _mha(y, memory, w64_ref, b_ref,
              (DEC_CA_WQ, DEC_CA_WK, DEC_CA_WV, DEC_CA_WO),
              (R_DEC_CA_BQ, R_DEC_CA_BK, R_DEC_CA_BV, R_DEC_CA_BO), n, t, s)
    y = _layer_norm(y + ca, b_ref, R_DEC_LN2_G, R_DEC_LN2_B)
    ff = _ffn(y, w64_ref, w128_ref, b_ref, DEC_W1, R_DEC_B1, DEC_W2, R_DEC_B2)
    y = _layer_norm(y + ff, b_ref, R_DEC_LN3_G, R_DEC_LN3_B)
    y = _layer_norm(y, b_ref, R_DEC_NORM_G, R_DEC_NORM_B)

    # ---- output projection (zero-padded 128-lane weight slot) ----
    logits = (jnp.dot(y, _wslot(w64_ref, FC_W, LANE),
                      preferred_element_type=jnp.float32)
              + _brow(b_ref, R_FC_B, LANE))             # (n*t, 128), batch-major rows

    # ---- (batch, time)-major -> (time, batch)-major reorder, width tgt_vocab ----
    for b in range(n):
        for ti in range(t):
            out_ref[ti * n + b: ti * n + b + 1, :] = (
                logits[b * t + ti: b * t + ti + 1, :tgt_vocab])


# ---------------------------------------------------------------------------
# Host-side parameter packing / wrapper.
# ---------------------------------------------------------------------------
def make_positional_encoding(max_len, d):
    position = jnp.arange(max_len, dtype=jnp.float32)[:, None]
    div_term = jnp.exp(
        jnp.arange(0, d, 2, dtype=jnp.float32) * (-math.log(10000.0) / d))
    pe = jnp.zeros((max_len, d), jnp.float32)
    pe = pe.at[:, 0::2].set(jnp.sin(position * div_term))
    pe = pe.at[:, 1::2].set(jnp.cos(position * div_term))
    return pe                                           # (max_len, d_model)


def init_params(key, src_vocab, tgt_vocab, max_len=MAX_LEN):
    # TODO(synk): PyTorch nn.Transformer uses Xavier init; N(0, 0.02) is used
    # here since no checkpoint is loaded (layout, not values, is what matters).
    keys = iter(jax.random.split(key, 24))

    def rnd(shape, scale=0.02):
        return jax.random.normal(next(keys), shape, jnp.float32) * scale

    tgt_base = _round8(src_vocab)
    pe_base = tgt_base + _round8(tgt_vocab)

    # embedding slab: [src_emb | tgt_emb | positional encoding] rows; the
    # sqrt(d_model) embedding scale is folded into the tables here.
    emb = jnp.zeros((pe_base + max_len, D_MODEL), jnp.float32)
    emb = emb.at[:src_vocab].set(rnd((src_vocab, D_MODEL)) * math.sqrt(D_MODEL))
    emb = emb.at[tgt_base:tgt_base + tgt_vocab].set(
        rnd((tgt_vocab, D_MODEL)) * math.sqrt(D_MODEL))
    emb = emb.at[pe_base:pe_base + max_len].set(
        make_positional_encoding(max_len, D_MODEL))

    # (64, *) weight slab: one 128-lane-aligned slot per sub-matrix.
    w64 = jnp.zeros((D_MODEL, N_W64_SLOTS * LANE), jnp.float32)

    def put(slab, slot, mat):
        return slab.at[:, slot * LANE: slot * LANE + mat.shape[1]].set(mat)

    for slot in (ENC_WQ, ENC_WK, ENC_WV, ENC_WO,
                 DEC_SA_WQ, DEC_SA_WK, DEC_SA_WV, DEC_SA_WO,
                 DEC_CA_WQ, DEC_CA_WK, DEC_CA_WV, DEC_CA_WO):
        w64 = put(w64, slot, rnd((D_MODEL, D_MODEL)))
    w64 = put(w64, ENC_W1, rnd((D_MODEL, DIM_FF)))
    w64 = put(w64, DEC_W1, rnd((D_MODEL, DIM_FF)))
    w64 = put(w64, FC_W, rnd((D_MODEL, tgt_vocab)))     # zero-padded to 128 lanes

    # (128, *) weight slab: the two FF down-projections.
    w128 = jnp.zeros((DIM_FF, N_W128_SLOTS * LANE), jnp.float32)
    w128 = w128.at[:, ENC_W2 * LANE: ENC_W2 * LANE + D_MODEL].set(
        rnd((DIM_FF, D_MODEL)))
    w128 = w128.at[:, DEC_W2 * LANE: DEC_W2 * LANE + D_MODEL].set(
        rnd((DIM_FF, D_MODEL)))

    # bias / LayerNorm slab (Linear biases and LN betas zero, LN gains one).
    bias = jnp.zeros((N_BIAS_ROWS, LANE), jnp.float32)
    for r in (R_ENC_LN1_G, R_ENC_LN2_G, R_ENC_NORM_G,
              R_DEC_LN1_G, R_DEC_LN2_G, R_DEC_LN3_G, R_DEC_NORM_G):
        bias = bias.at[r, :D_MODEL].set(1.0)

    return dict(emb=emb, w64=w64, w128=w128, bias=bias)


def transformer_forward(params, src, tgt, *, src_vocab, tgt_vocab):
    # src: (S, N) int32 token ids, tgt: (T, N) int32 token ids
    S, N = src.shape
    T, _ = tgt.shape
    tgt_base = _round8(src_vocab)
    pe_base = tgt_base + _round8(tgt_vocab)
    max_len = params["emb"].shape[0] - pe_base
    assert S <= max_len and T <= max_len, "sequence longer than PE table"

    kernel = functools.partial(
        _transformer_kernel, n=N, s=S, t=T,
        tgt_vocab=tgt_vocab, tgt_base=tgt_base, pe_base=pe_base)

    vmem = pl.BlockSpec(memory_space=pltpu.MemorySpace.VMEM)
    smem = pl.BlockSpec(memory_space=pltpu.MemorySpace.SMEM)

    out = pl.pallas_call(
        kernel,
        out_shape=jax.ShapeDtypeStruct((T * N, tgt_vocab), jnp.float32),
        in_specs=[smem, smem, vmem, vmem, vmem, vmem],
        out_specs=vmem,
        scratch_shapes=[pltpu.VMEM((N * S, D_MODEL), jnp.float32),   # src_x
                        pltpu.VMEM((N * T, D_MODEL), jnp.float32)],  # tgt_x
    )(src, tgt, params["emb"], params["w64"], params["w128"], params["bias"])

    # Rows are already time-major; this reshape is a free contiguous view.
    return out.reshape(T, N, tgt_vocab)


if __name__ == "__main__":
    key = jax.random.PRNGKey(0)
    k_params, k_src, k_tgt = jax.random.split(key, 3)

    SRC_VOCAB, TGT_VOCAB = 50, 60
    S, T, N = 8, 8, 2   # src_len, tgt_len, batch

    params = init_params(k_params, SRC_VOCAB, TGT_VOCAB)
    src = jax.random.randint(k_src, (S, N), 0, SRC_VOCAB, dtype=jnp.int32)
    tgt = jax.random.randint(k_tgt, (T, N), 0, TGT_VOCAB, dtype=jnp.int32)

    fwd = jax.jit(transformer_forward,
                  static_argnames=("src_vocab", "tgt_vocab"))
    logits = fwd(params, src, tgt, src_vocab=SRC_VOCAB, tgt_vocab=TGT_VOCAB)
    jax.block_until_ready(logits)

    assert logits.shape == (T, N, TGT_VOCAB), logits.shape
    assert logits.dtype == jnp.float32
    assert bool(jnp.all(jnp.isfinite(logits)))
    print("KERNEL_OK")
</pallas_src>

<mosaic_0001>
module attributes {stable_mosaic.version = 11 : i64} {
  func.func @_transformer_kernel(%arg0: memref<8x2xi32, #tpu.memory_space<smem>>, %arg1: memref<8x2xi32, #tpu.memory_space<smem>>, %arg2: memref<184x64xf32, #tpu.memory_space<vmem>>, %arg3: memref<64x1920xf32, #tpu.memory_space<vmem>>, %arg4: memref<128x256xf32, #tpu.memory_space<vmem>>, %arg5: memref<32x128xf32, #tpu.memory_space<vmem>>, %arg6: memref<16x60xf32, #tpu.memory_space<vmem>>, %arg7: memref<16x64xf32, #tpu.memory_space<vmem>>, %arg8: memref<16x64xf32, #tpu.memory_space<vmem>>) attributes {dimension_semantics = [], scalar_prefetch = 0 : i64, scratch_operands = 2 : i64, tpu.core_type = #tpu.core_type<tc>} {
    %c0 = arith.constant 0 : index
    %c0_0 = arith.constant 0 : index
    %0 = memref.load %arg0[%c0, %c0_0] : memref<8x2xi32, #tpu.memory_space<smem>>
    %1 = arith.index_cast %0 : i32 to index
    %c0_1 = arith.constant 0 : index
    %2 = vector.load %arg2[%1, %c0_1] : memref<184x64xf32, #tpu.memory_space<vmem>>, vector<1x64xf32>
    %c120 = arith.constant 120 : index
    %c0_2 = arith.constant 0 : index
    %3 = vector.load %arg2[%c120, %c0_2] : memref<184x64xf32, #tpu.memory_space<vmem>>, vector<1x64xf32>
    %4 = arith.addf %2, %3 : vector<1x64xf32>
    %c0_3 = arith.constant 0 : index
    %c0_4 = arith.constant 0 : index
    %5 = vector.load %arg7[%c0_3, %c0_4] : memref<16x64xf32, #tpu.memory_space<vmem>>, vector<1x64xf32>
    tpu.vector_store %arg7[%c0_3, %c0_4], %4 {strides = array<i32>} : memref<16x64xf32, #tpu.memory_space<vmem>>, vector<1x64xf32>,
    %c1 = arith.constant 1 : index
    %c0_5 = arith.constant 0 : index
    %6 = memref.load %arg0[%c1, %c0_5] : memref<8x2xi32, #tpu.memory_space<smem>>
    %7 = arith.index_cast %6 : i32 to index
    %c0_6 = arith.constant 0 : index
    %8 = vector.load %arg2[%7, %c0_6] : memref<184x64xf32, #tpu.memory_space<vmem>>, vector<1x64xf32>
    %c121 = arith.constant 121 : index
    %c0_7 = arith.constant 0 : index
    %9 = vector.load %arg2[%c121, %c0_7] : memref<184x64xf32, #tpu.memory_space<vmem>>, vector<1x64xf32>
    %10 = arith.addf %8, %9 : vector<1x64xf32>
    %c1_8 = arith.constant 1 : index
    %c0_9 = arith.constant 0 : index
    %11 = vector.load %arg7[%c1_8, %c0_9] : memref<16x64xf32, #tpu.memory_space<vmem>>, vector<1x64xf32>
    tpu.vector_store %arg7[%c1_8, %c0_9], %10 {strides = array<i32>} : memref<16x64xf32, #tpu.memory_space<vmem>>, vector<1x64xf32>,
    %c2 = arith.constant 2 : index
    %c0_10 = arith.constant 0 : index
    %12 = memref.load %arg0[%c2, %c0_10] : memref<8x2xi32, #tpu.memory_space<smem>>
    %13 = arith.index_cast %12 : i32 to index
    %c0_11 = arith.constant 0 : index
    %14 = vector.load %arg2[%13, %c0_11] : memref<184x64xf32, #tpu.memory_space<vmem>>, vector<1x64xf32>
    %c122 = arith.constant 122 : index
    %c0_12 = arith.constant 0 : index
    %15 = vector.load %arg2[%c122, %c0_12] : memref<184x64xf32, #tpu.memory_space<vmem>>, vector<1x64xf32>
    %16 = arith.addf %14, %15 : vector<1x64xf32>
    %c2_13 = arith.constant 2 : index
    %c0_14 = arith.constant 0 : index
    %17 = vector.load %arg7[%c2_13, %c0_14] : memref<16x64xf32, #tpu.memory_space<vmem>>, vector<1x64xf32>
    tpu.vector_store %arg7[%c2_13, %c0_14], %16 {strides = array<i32>} : memref<16x64xf32, #tpu.memory_space<vmem>>, vector<1x64xf32>,
    %c3 = arith.constant 3 : index
    %c0_15 = arith.constant 0 : index
    %18 = memref.load %arg0[%c3, %c0_15] : memref<8x2xi32, #tpu.memory_space<smem>>
    %19 = arith.index_cast %18 : i32 to index
    %c0_16 = arith.constant 0 : index
    %20 = vector.load %arg2[%19, %c0_16] : memref<184x64xf32, #tpu.memory_space<vmem>>, vector<1x64xf32>
    %c123 = arith.constant 123 : index
    %c0_17 = arith.constant 0 : index
    %21 = vector.load %arg2[%c123, %c0_17] : memref<184x64xf32, #tpu.memory_space<vmem>>, vector<1x64xf32>
    %22 = arith.addf %20, %21 : vector<1x64xf32>
    %c3_18 = arith.constant 3 : index
    %c0_19 = arith.constant 0 : index
    %23 = vector.load %arg7[%c3_18, %c0_19] : memref<16x64xf32, #tpu.memory_space<vmem>>, vector<1x64xf32>
    tpu.vector_store %arg7[%c3_18, %c0_19], %22 {strides = array<i32>} : memref<16x64xf32, #tpu.memory_space<vmem>>, vector<1x64xf32>,
    %c4 = arith.constant 4 : index
    %c0_20 = arith.constant 0 : index
    %24 = memref.load %arg0[%c4, %c0_20] : memref<8x2xi32, #tpu.memory_space<smem>>
    %25 = arith.index_cast %24 : i32 to index
    %c0_21 = arith.constant 0 : index
    %26 = vector.load %arg2[%25, %c0_21] : memref<184x64xf32, #tpu.memory_space<vmem>>, vector<1x64xf32>
    %c124 = arith.constant 124 : index
    %c0_22 = arith.constant 0 : index
    %27 = vector.load %arg2[%c124, %c0_22] : memref<184x64xf32, #tpu.memory_space<vmem>>, vector<1x64xf32>
    %28 = arith.addf %26, %27 : vector<1x64xf32>
    %c4_23 = arith.constant 4 : index
    %c0_24 = arith.constant 0 : index
    %29 = vector.load %arg7[%c4_23, %c0_24] : memref<16x64xf32, #tpu.memory_space<vmem>>, vector<1x64xf32>
    tpu.vector_store %arg7[%c4_23, %c0_24], %28 {strides = array<i32>} : memref<16x64xf32, #tpu.memory_space<vmem>>, vector<1x64xf32>,
    %c5 = arith.constant 5 : index
    %c0_25 = arith.constant 0 : index
    %30 = memref.load %arg0[%c5, %c0_25] : memref<8x2xi32, #tpu.memory_space<smem>>
    %31 = arith.index_cast %30 : i32 to index
    %c0_26 = arith.constant 0 : index
    %32 = vector.load %arg2[%31, %c0_26] : memref<184x64xf32, #tpu.memory_space<vmem>>, vector<1x64xf32>
    %c125 = arith.constant 125 : index
    %c0_27 = arith.constant 0 : index
    %33 = vector.load %arg2[%c125, %c0_27] : memref<184x64xf32, #tpu.memory_space<vmem>>, vector<1x64xf32>
    %34 = arith.addf %32, %33 : vector<1x64xf32>
    %c5_28 = arith.constant 5 : index
    %c0_29 = arith.constant 0 : index
    %35 = vector.load %arg7[%c5_28, %c0_29] : memref<16x64xf32, #tpu.memory_space<vmem>>, vector<1x64xf32>
    tpu.vector_store %arg7[%c5_28, %c0_29], %34 {strides = array<i32>} : memref<16x64xf32, #tpu.memory_space<vmem>>, vector<1x64xf32>,
    %c6 = arith.constant 6 : index
    %c0_30 = arith.constant 0 : index
    %36 = memref.load %arg0[%c6, %c0_30] : memref<8x2xi32, #tpu.memory_space<smem>>
    %37 = arith.index_cast %36 : i32 to index
    %c0_31 = arith.constant 0 : index
    %38 = vector.load %arg2[%37, %c0_31] : memref<184x64xf32, #tpu.memory_space<vmem>>, vector<1x64xf32>
    %c126 = arith.constant 126 : index
    %c0_32 = arith.constant 0 : index
    %39 = vector.load %arg2[%c126, %c0_32] : memref<184x64xf32, #tpu.memory_space<vmem>>, vector<1x64xf32>
    %40 = arith.addf %38, %39 : vector<1x64xf32>
    %c6_33 = arith.constant 6 : index
    %c0_34 = arith.constant 0 : index
    %41 = vector.load %arg7[%c6_33, %c0_34] : memref<16x64xf32, #tpu.memory_space<vmem>>, vector<1x64xf32>
    tpu.vector_store %arg7[%c6_33, %c0_34], %40 {strides = array<i32>} : memref<16x64xf32, #tpu.memory_space<vmem>>, vector<1x64xf32>,
    %c7 = arith.constant 7 : index
    %c0_35 = arith.constant 0 : index
    %42 = memref.load %arg0[%c7, %c0_35] : memref<8x2xi32, #tpu.memory_space<smem>>
    %43 = arith.index_cast %42 : i32 to index
    %c0_36 = arith.constant 0 : index
    %44 = vector.load %arg2[%43, %c0_36] : memref<184x64xf32, #tpu.memory_space<vmem>>, vector<1x64xf32>
    %c127 = arith.constant 127 : index
    %c0_37 = arith.constant 0 : index
    %45 = vector.load %arg2[%c127, %c0_37] : memref<184x64xf32, #tpu.memory_space<vmem>>, vector<1x64xf32>
    %46 = arith.addf %44, %45 : vector<1x64xf32>
    %c7_38 = arith.constant 7 : index
    %c0_39 = arith.constant 0 : index
    %47 = vector.load %arg7[%c7_38, %c0_39] : memref<16x64xf32, #tpu.memory_space<vmem>>, vector<1x64xf32>
    tpu.vector_store %arg7[%c7_38, %c0_39], %46 {strides = array<i32>} : memref<16x64xf32, #tpu.memory_space<vmem>>, vector<1x64xf32>,
    %c0_40 = arith.constant 0 : index
    %c0_41 = arith.constant 0 : index
    %48 = memref.load %arg1[%c0_40, %c0_41] : memref<8x2xi32, #tpu.memory_space<smem>>
    %c56_i32 = arith.constant 56 : i32
    %49 = arith.addi %48, %c56_i32 : i32
    %50 = arith.index_cast %49 : i32 to index
    %c0_42 = arith.constant 0 : index
    %51 = vector.load %arg2[%50, %c0_42] : memref<184x64xf32, #tpu.memory_space<vmem>>, vector<1x64xf32>
    %c120_43 = arith.constant 120 : index
    %c0_44 = arith.constant 0 : index
    %52 = vector.load %arg2[%c120_43, %c0_44] : memref<184x64xf32, #tpu.memory_space<vmem>>, vector<1x64xf32>
    %53 = arith.addf %51, %52 : vector<1x64xf32>
    %c0_45 = arith.constant 0 : index
    %c0_46 = arith.constant 0 : index
    %54 = vector.load %arg8[%c0_45, %c0_46] : memref<16x64xf32, #tpu.memory_space<vmem>>, vector<1x64xf32>
    tpu.vector_store %arg8[%c0_45, %c0_46], %53 {strides = array<i32>} : memref<16x64xf32, #tpu.memory_space<vmem>>, vector<1x64xf32>,
    %c1_47 = arith.constant 1 : index
    %c0_48 = arith.constant 0 : index
    %55 = memref.load %arg1[%c1_47, %c0_48] : memref<8x2xi32, #tpu.memory_space<smem>>
    %c56_i32_49 = arith.constant 56 : i32
    %56 = arith.addi %55, %c56_i32_49 : i32
    %57 = arith.index_cast %56 : i32 to index
    %c0_50 = arith.constant 0 : index
    %58 = vector.load %arg2[%57, %c0_50] : memref<184x64xf32, #tpu.memory_space<vmem>>, vector<1x64xf32>
    %c121_51 = arith.constant 121 : index
    %c0_52 = arith.constant 0 : index
    %59 = vector.load %arg2[%c121_51, %c0_52] : memref<184x64xf32, #tpu.memory_space<vmem>>, vector<1x64xf32>
    %60 = arith.addf %58, %59 : vector<1x64xf32>
    %c1_53 = arith.constant 1 : index
    %c0_54 = arith.constant 0 : index
    %61 = vector.load %arg8[%c1_53, %c0_54] : memref<16x64xf32, #tpu.memory_space<vmem>>, vector<1x64xf32>
    tpu.vector_store %arg8[%c1_53, %c0_54], %60 {strides = array<i32>} : memref<16x64xf32, #tpu.memory_space<vmem>>, vector<1x64xf32>,
    %c2_55 = arith.constant 2 : index
    %c0_56 = arith.constant 0 : index
    %62 = memref.load %arg1[%c2_55, %c0_56] : memref<8x2xi32, #tpu.memory_space<smem>>
    %c56_i32_57 = arith.constant 56 : i32
    %63 = arith.addi %62, %c56_i32_57 : i32
    %64 = arith.index_cast %63 : i32 to index
    %c0_58 = arith.constant 0 : index
    %65 = vector.load %arg2[%64, %c0_58] : memref<184x64xf32, #tpu.memory_space<vmem>>, vector<1x64xf32>
    %c122_59 = arith.constant 122 : index
    %c0_60 = arith.constant 0 : index
    %66 = vector.load %arg2[%c122_59, %c0_60] : memref<184x64xf32, #tpu.memory_space<vmem>>, vector<1x64xf32>
    %67 = arith.addf %65, %66 : vector<1x64xf32>
    %c2_61 = arith.constant 2 : index
    %c0_62 = arith.constant 0 : index
    %68 = vector.load %arg8[%c2_61, %c0_62] : memref<16x64xf32, #tpu.memory_space<vmem>>, vector<1x64xf32>
    tpu.vector_store %arg8[%c2_61, %c0_62], %67 {strides = array<i32>} : memref<16x64xf32, #tpu.memory_space<vmem>>, vector<1x64xf32>,
    %c3_63 = arith.constant 3 : index
    %c0_64 = arith.constant 0 : index
    %69 = memref.load %arg1[%c3_63, %c0_64] : memref<8x2xi32, #tpu.memory_space<smem>>
    %c56_i32_65 = arith.constant 56 : i32
    %70 = arith.addi %69, %c56_i32_65 : i32
    %71 = arith.index_cast %70 : i32 to index
    %c0_66 = arith.constant 0 : index
    %72 = vector.load %arg2[%71, %c0_66] : memref<184x64xf32, #tpu.memory_space<vmem>>, vector<1x64xf32>
    %c123_67 = arith.constant 123 : index
    %c0_68 = arith.constant 0 : index
    %73 = vector.load %arg2[%c123_67, %c0_68] : memref<184x64xf32, #tpu.memory_space<vmem>>, vector<1x64xf32>
    %74 = arith.addf %72, %73 : vector<1x64xf32>
    %c3_69 = arith.constant 3 : index
    %c0_70 = arith.constant 0 : index
    %75 = vector.load %arg8[%c3_69, %c0_70] : memref<16x64xf32, #tpu.memory_space<vmem>>, vector<1x64xf32>
    tpu.vector_store %arg8[%c3_69, %c0_70], %74 {strides = array<i32>} : memref<16x64xf32, #tpu.memory_space<vmem>>, vector<1x64xf32>,
    %c4_71 = arith.constant 4 : index
    %c0_72 = arith.constant 0 : index
    %76 = memref.load %arg1[%c4_71, %c0_72] : memref<8x2xi32, #tpu.memory_space<smem>>
    %c56_i32_73 = arith.constant 56 : i32
    %77 = arith.addi %76, %c56_i32_73 : i32
    %78 = arith.index_cast %77 : i32 to index
    %c0_74 = arith.constant 0 : index
    %79 = vector.load %arg2[%78, %c0_74] : memref<184x64xf32, #tpu.memory_space<vmem>>, vector<1x64xf32>
    %c124_75 = arith.constant 124 : index
    %c0_76 = arith.constant 0 : index
    %80 = vector.load %arg2[%c124_75, %c0_76] : memref<184x64xf32, #tpu.memory_space<vmem>>, vector<1x64xf32>
    %81 = arith.addf %79, %80 : vector<1x64xf32>
    %c4_77 = arith.constant 4 : index
    %c0_78 = arith.constant 0 : index
    %82 = vector.load %arg8[%c4_77, %c0_78] : memref<16x64xf32, #tpu.memory_space<vmem>>, vector<1x64xf32>
    tpu.vector_store %arg8[%c4_77, %c0_78], %81 {strides = array<i32>} : memref<16x64xf32, #tpu.memory_space<vmem>>, vector<1x64xf32>,
    %c5_79 = arith.constant 5 : index
    %c0_80 = arith.constant 0 : index
    %83 = memref.load %arg1[%c5_79, %c0_80] : memref<8x2xi32, #tpu.memory_space<smem>>
    %c56_i32_81 = arith.constant 56 : i32
    %84 = arith.addi %83, %c56_i32_81 : i32
    %85 = arith.index_cast %84 : i32 to index
    %c0_82 = arith.constant 0 : index
    %86 = vector.load %arg2[%85, %c0_82] : memref<184x64xf32, #tpu.memory_space<vmem>>, vector<1x64xf32>
    %c125_83 = arith.constant 125 : index
    %c0_84 = arith.constant 0 : index
    %87 = vector.load %arg2[%c125_83, %c0_84] : memref<184x64xf32, #tpu.memory_space<vmem>>, vector<1x64xf32>
    %88 = arith.addf %86, %87 : vector<1x64xf32>
    %c5_85 = arith.constant 5 : index
    %c0_86 = arith.constant 0 : index
    %89 = vector.load %arg8[%c5_85, %c0_86] : memref<16x64xf32, #tpu.memory_space<vmem>>, vector<1x64xf32>
    tpu.vector_store %arg8[%c5_85, %c0_86], %88 {strides = array<i32>} : memref<16x64xf32, #tpu.memory_space<vmem>>, vector<1x64xf32>,
    %c6_87 = arith.constant 6 : index
    %c0_88 = arith.constant 0 : index
    %90 = memref.load %arg1[%c6_87, %c0_88] : memref<8x2xi32, #tpu.memory_space<smem>>
    %c56_i32_89 = arith.constant 56 : i32
    %91 = arith.addi %90, %c56_i32_89 : i32
    %92 = arith.index_cast %91 : i32 to index
    %c0_90 = arith.constant 0 : index
    %93 = vector.load %arg2[%92, %c0_90] : memref<184x64xf32, #tpu.memory_space<vmem>>, vector<1x64xf32>
    %c126_91 = arith.constant 126 : index
    %c0_92 = arith.constant 0 : index
    %94 = vector.load %arg2[%c126_91, %c0_92] : memref<184x64xf32, #tpu.memory_space<vmem>>, vector<1x64xf32>
    %95 = arith.addf %93, %94 : vector<1x64xf32>
    %c6_93 = arith.constant 6 : index
    %c0_94 = arith.constant 0 : index
    %96 = vector.load %arg8[%c6_93, %c0_94] : memref<16x64xf32, #tpu.memory_space<vmem>>, vector<1x64xf32>
    tpu.vector_store %arg8[%c6_93, %c0_94], %95 {strides = array<i32>} : memref<16x64xf32, #tpu.memory_space<vmem>>, vector<1x64xf32>,
    %c7_95 = arith.constant 7 : index
    %c0_96 = arith.constant 0 : index
    %97 = memref.load %arg1[%c7_95, %c0_96] : memref<8x2xi32, #tpu.memory_space<smem>>
    %c56_i32_97 = arith.constant 56 : i32
    %98 = arith.addi %97, %c56_i32_97 : i32
    %99 = arith.index_cast %98 : i32 to index
    %c0_98 = arith.constant 0 : index
    %100 = vector.load %arg2[%99, %c0_98] : memref<184x64xf32, #tpu.memory_space<vmem>>, vector<1x64xf32>
    %c127_99 = arith.constant 127 : index
    %c0_100 = arith.constant 0 : index
    %101 = vector.load %arg2[%c127_99, %c0_100] : memref<184x64xf32, #tpu.memory_space<vmem>>, vector<1x64xf32>
    %102 = arith.addf %100, %101 : vector<1x64xf32>
    %c7_101 = arith.constant 7 : index
    %c0_102 = arith.constant 0 : index
    %103 = vector.load %arg8[%c7_101, %c0_102] : memref<16x64xf32, #tpu.memory_space<vmem>>, vector<1x64xf32>
    tpu.vector_store %arg8[%c7_101, %c0_102], %102 {strides = array<i32>} : memref<16x64xf32, #tpu.memory_space<vmem>>, vector<1x64xf32>,
    %c0_103 = arith.constant 0 : index
    %c1_104 = arith.constant 1 : index
    %104 = memref.load %arg0[%c0_103, %c1_104] : memref<8x2xi32, #tpu.memory_space<smem>>
    %105 = arith.index_cast %104 : i32 to index
    %c0_105 = arith.constant 0 : index
    %106 = vector.load %arg2[%105, %c0_105] : memref<184x64xf32, #tpu.memory_space<vmem>>, vector<1x64xf32>
    %c120_106 = arith.constant 120 : index
    %c0_107 = arith.constant 0 : index
    %107 = vector.load %arg2[%c120_106, %c0_107] : memref<184x64xf32, #tpu.memory_space<vmem>>, vector<1x64xf32>
    %108 = arith.addf %106, %107 : vector<1x64xf32>
    %c8 = arith.constant 8 : index
    %c0_108 = arith.constant 0 : index
    %109 = vector.load %arg7[%c8, %c0_108] : memref<16x64xf32, #tpu.memory_space<vmem>>, vector<1x64xf32>
    tpu.vector_store %arg7[%c8, %c0_108], %108 {strides = array<i32>} : memref<16x64xf32, #tpu.memory_space<vmem>>, vector<1x64xf32>,
    %c1_109 = arith.constant 1 : index
    %c1_110 = arith.constant 1 : index
    %110 = memref.load %arg0[%c1_109, %c1_110] : memref<8x2xi32, #tpu.memory_space<smem>>
    %111 = arith.index_cast %110 : i32 to index
    %c0_111 = arith.constant 0 : index
    %112 = vector.load %arg2[%111, %c0_111] : memref<184x64xf32, #tpu.memory_space<vmem>>, vector<1x64xf32>
    %c121_112 = arith.constant 121 : index
    %c0_113 = arith.constant 0 : index
    %113 = vector.load %arg2[%c121_112, %c0_113] : memref<184x64xf32, #tpu.memory_space<vmem>>, vector<1x64xf32>
    %114 = arith.addf %112, %113 : vector<1x64xf32>
    %c9 = arith.constant 9 : index
    %c0_114 = arith.constant 0 : index
    %115 = vector.load %arg7[%c9, %c0_114] : memref<16x64xf32, #tpu.memory_space<vmem>>, vector<1x64xf32>
    tpu.vector_store %arg7[%c9, %c0_114], %114 {strides = array<i32>} : memref<16x64xf32, #tpu.memory_space<vmem>>, vector<1x64xf32>,
    %c2_115 = arith.constant 2 : index
    %c1_116 = arith.constant 1 : index
    %116 = memref.load %arg0[%c2_115, %c1_116] : memref<8x2xi32, #tpu.memory_space<smem>>
    %117 = arith.index_cast %116 : i32 to index
    %c0_117 = arith.constant 0 : index
    %118 = vector.load %arg2[%117, %c0_117] : memref<184x64xf32, #tpu.memory_space<vmem>>, vector<1x64xf32>
    %c122_118 = arith.constant 122 : index
    %c0_119 = arith.constant 0 : index
    %119 = vector.load %arg2[%c122_118, %c0_119] : memref<184x64xf32, #tpu.memory_space<vmem>>, vector<1x64xf32>
    %120 = arith.addf %118, %119 : vector<1x64xf32>
    %c10 = arith.constant 10 : index
    %c0_120 = arith.constant 0 : index
    %121 = vector.load %arg7[%c10, %c0_120] : memref<16x64xf32, #tpu.memory_space<vmem>>, vector<1x64xf32>
    tpu.vector_store %arg7[%c10, %c0_120], %120 {strides = array<i32>} : memref<16x64xf32, #tpu.memory_space<vmem>>, vector<1x64xf32>,
    %c3_121 = arith.constant 3 : index
    %c1_122 = arith.constant 1 : index
    %122 = memref.load %arg0[%c3_121, %c1_122] : memref<8x2xi32, #tpu.memory_space<smem>>
    %123 = arith.index_cast %122 : i32 to index
    %c0_123 = arith.constant 0 : index
    %124 = vector.load %arg2[%123, %c0_123] : memref<184x64xf32, #tpu.memory_space<vmem>>, vector<1x64xf32>
    %c123_124 = arith.constant 123 : index
    %c0_125 = arith.constant 0 : index
    %125 = vector.load %arg2[%c123_124, %c0_125] : memref<184x64xf32, #tpu.memory_space<vmem>>, vector<1x64xf32>
    %126 = arith.addf %124, %125 : vector<1x64xf32>
    %c11 = arith.constant 11 : index
    %c0_126 = arith.constant 0 : index
    %127 = vector.load %arg7[%c11, %c0_126] : memref<16x64xf32, #tpu.memory_space<vmem>>, vector<1x64xf32>
    tpu.vector_store %arg7[%c11, %c0_126], %126 {strides = array<i32>} : memref<16x64xf32, #tpu.memory_space<vmem>>, vector<1x64xf32>,
    %c4_127 = arith.constant 4 : index
    %c1_128 = arith.constant 1 : index
    %128 = memref.load %arg0[%c4_127, %c1_128] : memref<8x2xi32, #tpu.memory_space<smem>>
    %129 = arith.index_cast %128 : i32 to index
    %c0_129 = arith.constant 0 : index
    %130 = vector.load %arg2[%129, %c0_129] : memref<184x64xf32, #tpu.memory_space<vmem>>, vector<1x64xf32>
    %c124_130 = arith.constant 124 : index
    %c0_131 = arith.constant 0 : index
    %131 = vector.load %arg2[%c124_130, %c0_131] : memref<184x64xf32, #tpu.memory_space<vmem>>, vector<1x64xf32>
    %132 = arith.addf %130, %131 : vector<1x64xf32>
    %c12 = arith.constant 12 : index
    %c0_132 = arith.constant 0 : index
    %133 = vector.load %arg7[%c12, %c0_132] : memref<16x64xf32, #tpu.memory_space<vmem>>, vector<1x64xf32>
    tpu.vector_store %arg7[%c12, %c0_132], %132 {strides = array<i32>} : memref<16x64xf32, #tpu.memory_space<vmem>>, vector<1x64xf32>,
    %c5_133 = arith.constant 5 : index
    %c1_134 = arith.constant 1 : index
    %134 = memref.load %arg0[%c5_133, %c1_134] : memref<8x2xi32, #tpu.memory_space<smem>>
    %135 = arith.index_cast %134 : i32 to index
    %c0_135 = arith.constant 0 : index
    %136 = vector.load %arg2[%135, %c0_135] : memref<184x64xf32, #tpu.memory_space<vmem>>, vector<1x64xf32>
    %c125_136 = arith.constant 125 : index
    %c0_137 = arith.constant 0 : index
    %137 = vector.load %arg2[%c125_136, %c0_137] : memref<184x64xf32, #tpu.memory_space<vmem>>, vector<1x64xf32>
    %138 = arith.addf %136, %137 : vector<1x64xf32>
    %c13 = arith.constant 13 : index
    %c0_138 = arith.constant 0 : index
    %139 = vector.load %arg7[%c13, %c0_138] : memref<16x64xf32, #tpu.memory_space<vmem>>, vector<1x64xf32>
    tpu.vector_store %arg7[%c13, %c0_138], %138 {strides = array<i32>} : memref<16x64xf32, #tpu.memory_space<vmem>>, vector<1x64xf32>,
    %c6_139 = arith.constant 6 : index
    %c1_140 = arith.constant 1 : index
    %140 = memref.load %arg0[%c6_139, %c1_140] : memref<8x2xi32, #tpu.memory_space<smem>>
    %141 = arith.index_cast %140 : i32 to index
    %c0_141 = arith.constant 0 : index
    %142 = vector.load %arg2[%141, %c0_141] : memref<184x64xf32, #tpu.memory_space<vmem>>, vector<1x64xf32>
    %c126_142 = arith.constant 126 : index
    %c0_143 = arith.constant 0 : index
    %143 = vector.load %arg2[%c126_142, %c0_143] : memref<184x64xf32, #tpu.memory_space<vmem>>, vector<1x64xf32>
    %144 = arith.addf %142, %143 : vector<1x64xf32>
    %c14 = arith.constant 14 : index
    %c0_144 = arith.constant 0 : index
    %145 = vector.load %arg7[%c14, %c0_144] : memref<16x64xf32, #tpu.memory_space<vmem>>, vector<1x64xf32>
    tpu.vector_store %arg7[%c14, %c0_144], %144 {strides = array<i32>} : memref<16x64xf32, #tpu.memory_space<vmem>>, vector<1x64xf32>,
    %c7_145 = arith.constant 7 : index
    %c1_146 = arith.constant 1 : index
    %146 = memref.load %arg0[%c7_145, %c1_146] : memref<8x2xi32, #tpu.memory_space<smem>>
    %147 = arith.index_cast %146 : i32 to index
    %c0_147 = arith.constant 0 : index
    %148 = vector.load %arg2[%147, %c0_147] : memref<184x64xf32, #tpu.memory_space<vmem>>, vector<1x64xf32>
    %c127_148 = arith.constant 127 : index
    %c0_149 = arith.constant 0 : index
    %149 = vector.load %arg2[%c127_148, %c0_149] : memref<184x64xf32, #tpu.memory_space<vmem>>, vector<1x64xf32>
    %150 = arith.addf %148, %149 : vector<1x64xf32>
    %c15 = arith.constant 15 : index
    %c0_150 = arith.constant 0 : index
    %151 = vector.load %arg7[%c15, %c0_150] : memref<16x64xf32, #tpu.memory_space<vmem>>, vector<1x64xf32>
    tpu.vector_store %arg7[%c15, %c0_150], %150 {strides = array<i32>} : memref<16x64xf32, #tpu.memory_space<vmem>>, vector<1x64xf32>,
    %c0_151 = arith.constant 0 : index
    %c1_152 = arith.constant 1 : index
    %152 = memref.load %arg1[%c0_151, %c1_152] : memref<8x2xi32, #tpu.memory_space<smem>>
    %c56_i32_153 = arith.constant 56 : i32
    %153 = arith.addi %152, %c56_i32_153 : i32
    %154 = arith.index_cast %153 : i32 to index
    %c0_154 = arith.constant 0 : index
    %155 = vector.load %arg2[%154, %c0_154] : memref<184x64xf32, #tpu.memory_space<vmem>>, vector<1x64xf32>
    %c120_155 = arith.constant 120 : index
    %c0_156 = arith.constant 0 : index
    %156 = vector.load %arg2[%c120_155, %c0_156] : memref<184x64xf32, #tpu.memory_space<vmem>>, vector<1x64xf32>
    %157 = arith.addf %155, %156 : vector<1x64xf32>
    %c8_157 = arith.constant 8 : index
    %c0_158 = arith.constant 0 : index
    %158 = vector.load %arg8[%c8_157, %c0_158] : memref<16x64xf32, #tpu.memory_space<vmem>>, vector<1x64xf32>
    tpu.vector_store %arg8[%c8_157, %c0_158], %157 {strides = array<i32>} : memref<16x64xf32, #tpu.memory_space<vmem>>, vector<1x64xf32>,
    %c1_159 = arith.constant 1 : index
    %c1_160 = arith.constant 1 : index
    %159 = memref.load %arg1[%c1_159, %c1_160] : memref<8x2xi32, #tpu.memory_space<smem>>
    %c56_i32_161 = arith.constant 56 : i32
    %160 = arith.addi %159, %c56_i32_161 : i32
    %161 = arith.index_cast %160 : i32 to index
    %c0_162 = arith.constant 0 : index
    %162 = vector.load %arg2[%161, %c0_162] : memref<184x64xf32, #tpu.memory_space<vmem>>, vector<1x64xf32>
    %c121_163 = arith.constant 121 : index
    %c0_164 = arith.constant 0 : index
    %163 = vector.load %arg2[%c121_163, %c0_164] : memref<184x64xf32, #tpu.memory_space<vmem>>, vector<1x64xf32>
    %164 = arith.addf %162, %163 : vector<1x64xf32>
    %c9_165 = arith.constant 9 : index
    %c0_166 = arith.constant 0 : index
    %165 = vector.load %arg8[%c9_165, %c0_166] : memref<16x64xf32, #tpu.memory_space<vmem>>, vector<1x64xf32>
    tpu.vector_store %arg8[%c9_165, %c0_166], %164 {strides = array<i32>} : memref<16x64xf32, #tpu.memory_space<vmem>>, vector<1x64xf32>,
    %c2_167 = arith.constant 2 : index
    %c1_168 = arith.constant 1 : index
    %166 = memref.load %arg1[%c2_167, %c1_168] : memref<8x2xi32, #tpu.memory_space<smem>>
    %c56_i32_169 = arith.constant 56 : i32
    %167 = arith.addi %166, %c56_i32_169 : i32
    %168 = arith.index_cast %167 : i32 to index
    %c0_170 = arith.constant 0 : index
    %169 = vector.load %arg2[%168, %c0_170] : memref<184x64xf32, #tpu.memory_space<vmem>>, vector<1x64xf32>
    %c122_171 = arith.constant 122 : index
    %c0_172 = arith.constant 0 : index
    %170 = vector.load %arg2[%c122_171, %c0_172] : memref<184x64xf32, #tpu.memory_space<vmem>>, vector<1x64xf32>
    %171 = arith.addf %169, %170 : vector<1x64xf32>
    %c10_173 = arith.constant 10 : index
    %c0_174 = arith.constant 0 : index
    %172 = vector.load %arg8[%c10_173, %c0_174] : memref<16x64xf32, #tpu.memory_space<vmem>>, vector<1x64xf32>
    tpu.vector_store %arg8[%c10_173, %c0_174], %171 {strides = array<i32>} : memref<16x64xf32, #tpu.memory_space<vmem>>, vector<1x64xf32>,
    %c3_175 = arith.constant 3 : index
    %c1_176 = arith.constant 1 : index
    %173 = memref.load %arg1[%c3_175, %c1_176] : memref<8x2xi32, #tpu.memory_space<smem>>
    %c56_i32_177 = arith.constant 56 : i32
    %174 = arith.addi %173, %c56_i32_177 : i32
    %175 = arith.index_cast %174 : i32 to index
    %c0_178 = arith.constant 0 : index
    %176 = vector.load %arg2[%175, %c0_178] : memref<184x64xf32, #tpu.memory_space<vmem>>, vector<1x64xf32>
    %c123_179 = arith.constant 123 : index
    %c0_180 = arith.constant 0 : index
    %177 = vector.load %arg2[%c123_179, %c0_180] : memref<184x64xf32, #tpu.memory_space<vmem>>, vector<1x64xf32>
    %178 = arith.addf %176, %177 : vector<1x64xf32>
    %c11_181 = arith.constant 11 : index
    %c0_182 = arith.constant 0 : index
    %179 = vector.load %arg8[%c11_181, %c0_182] : memref<16x64xf32, #tpu.memory_space<vmem>>, vector<1x64xf32>
    tpu.vector_store %arg8[%c11_181, %c0_182], %178 {strides = array<i32>} : memref<16x64xf32, #tpu.memory_space<vmem>>, vector<1x64xf32>,
    %c4_183 = arith.constant 4 : index
    %c1_184 = arith.constant 1 : index
    %180 = memref.load %arg1[%c4_183, %c1_184] : memref<8x2xi32, #tpu.memory_space<smem>>
    %c56_i32_185 = arith.constant 56 : i32
    %181 = arith.addi %180, %c56_i32_185 : i32
    %182 = arith.index_cast %181 : i32 to index
    %c0_186 = arith.constant 0 : index
    %183 = vector.load %arg2[%182, %c0_186] : memref<184x64xf32, #tpu.memory_space<vmem>>, vector<1x64xf32>
    %c124_187 = arith.constant 124 : index
    %c0_188 = arith.constant 0 : index
    %184 = vector.load %arg2[%c124_187, %c0_188] : memref<184x64xf32, #tpu.memory_space<vmem>>, vector<1x64xf32>
    %185 = arith.addf %183, %184 : vector<1x64xf32>
    %c12_189 = arith.constant 12 : index
    %c0_190 = arith.constant 0 : index
    %186 = vector.load %arg8[%c12_189, %c0_190] : memref<16x64xf32, #tpu.memory_space<vmem>>, vector<1x64xf32>
    tpu.vector_store %arg8[%c12_189, %c0_190], %185 {strides = array<i32>} : memref<16x64xf32, #tpu.memory_space<vmem>>, vector<1x64xf32>,
    %c5_191 = arith.constant 5 : index
    %c1_192 = arith.constant 1 : index
    %187 = memref.load %arg1[%c5_191, %c1_192] : memref<8x2xi32, #tpu.memory_space<smem>>
    %c56_i32_193 = arith.constant 56 : i32
    %188 = arith.addi %187, %c56_i32_193 : i32
    %189 = arith.index_cast %188 : i32 to index
    %c0_194 = arith.constant 0 : index
    %190 = vector.load %arg2[%189, %c0_194] : memref<184x64xf32, #tpu.memory_space<vmem>>, vector<1x64xf32>
    %c125_195 = arith.constant 125 : index
    %c0_196 = arith.constant 0 : index
    %191 = vector.load %arg2[%c125_195, %c0_196] : memref<184x64xf32, #tpu.memory_space<vmem>>, vector<1x64xf32>
    %192 = arith.addf %190, %191 : vector<1x64xf32>
    %c13_197 = arith.constant 13 : index
    %c0_198 = arith.constant 0 : index
    %193 = vector.load %arg8[%c13_197, %c0_198] : memref<16x64xf32, #tpu.memory_space<vmem>>, vector<1x64xf32>
    tpu.vector_store %arg8[%c13_197, %c0_198], %192 {strides = array<i32>} : memref<16x64xf32, #tpu.memory_space<vmem>>, vector<1x64xf32>,
    %c6_199 = arith.constant 6 : index
    %c1_200 = arith.constant 1 : index
    %194 = memref.load %arg1[%c6_199, %c1_200] : memref<8x2xi32, #tpu.memory_space<smem>>
    %c56_i32_201 = arith.constant 56 : i32
    %195 = arith.addi %194, %c56_i32_201 : i32
    %196 = arith.index_cast %195 : i32 to index
    %c0_202 = arith.constant 0 : index
    %197 = vector.load %arg2[%196, %c0_202] : memref<184x64xf32, #tpu.memory_space<vmem>>, vector<1x64xf32>
    %c126_203 = arith.constant 126 : index
    %c0_204 = arith.constant 0 : index
    %198 = vector.load %arg2[%c126_203, %c0_204] : memref<184x64xf32, #tpu.memory_space<vmem>>, vector<1x64xf32>
    %199 = arith.addf %197, %198 : vector<1x64xf32>
    %c14_205 = arith.constant 14 : index
    %c0_206 = arith.constant 0 : index
    %200 = vector.load %arg8[%c14_205, %c0_206] : memref<16x64xf32, #tpu.memory_space<vmem>>, vector<1x64xf32>
    tpu.vector_store %arg8[%c14_205, %c0_206], %199 {strides = array<i32>} : memref<16x64xf32, #tpu.memory_space<vmem>>, vector<1x64xf32>,
    %c7_207 = arith.constant 7 : index
    %c1_208 = arith.constant 1 : index
    %201 = memref.load %arg1[%c7_207, %c1_208] : memref<8x2xi32, #tpu.memory_space<smem>>
    %c56_i32_209 = arith.constant 56 : i32
    %202 = arith.addi %201, %c56_i32_209 : i32
    %203 = arith.index_cast %202 : i32 to index
    %c0_210 = arith.constant 0 : index
    %204 = vector.load %arg2[%203, %c0_210] : memref<184x64xf32, #tpu.memory_space<vmem>>, vector<1x64xf32>
    %c127_211 = arith.constant 127 : index
    %c0_212 = arith.constant 0 : index
    %205 = vector.load %arg2[%c127_211, %c0_212] : memref<184x64xf32, #tpu.memory_space<vmem>>, vector<1x64xf32>
    %206 = arith.addf %204, %205 : vector<1x64xf32>
    %c15_213 = arith.constant 15 : index
    %c0_214 = arith.constant 0 : index
    %207 = vector.load %arg8[%c15_213, %c0_214] : memref<16x64xf32, #tpu.memory_space<vmem>>, vector<1x64xf32>
    tpu.vector_store %arg8[%c15_213, %c0_214], %206 {strides = array<i32>} : memref<16x64xf32, #tpu.memory_space<vmem>>, vector<1x64xf32>,
    %c0_215 = arith.constant 0 : index
    %c0_216 = arith.constant 0 : index
    %208 = vector.load %arg7[%c0_215, %c0_216] : memref<16x64xf32, #tpu.memory_space<vmem>>, vector<16x64xf32>
    %c0_217 = arith.constant 0 : index
    %c0_218 = arith.constant 0 : index
    %209 = vector.load %arg3[%c0_217, %c0_218] : memref<64x1920xf32, #tpu.memory_space<vmem>>, vector<64x64xf32>
    %cst = arith.constant dense<0.000000e+00> : vector<16x64xf32>
    %210 = tpu.matmul %208, %209, %cst {dimension_numbers = #tpu.dot_dimension_numbers<[1], [0], [0], [1], [0, 0, 1, 1], [], []>} : vector<16x64xf32>, vector<64x64xf32>, vector<16x64xf32> -> vector<16x64xf32>
    %c0_219 = arith.constant 0 : index
    %c0_220 = arith.constant 0 : index
    %211 = vector.load %arg5[%c0_219, %c0_220] : memref<32x128xf32, #tpu.memory_space<vmem>>, vector<1x64xf32>
    %212 = vector.broadcast %211 : vector<1x64xf32> to vector<16x64xf32>
    %213 = arith.addf %210, %212 : vector<16x64xf32>
    %c0_221 = arith.constant 0 : index
    %c128 = arith.constant 128 : index
    %214 = vector.load %arg3[%c0_221, %c128] : memref<64x1920xf32, #tpu.memory_space<vmem>>, vector<64x64xf32>
    %cst_222 = arith.constant dense<0.000000e+00> : vector<16x64xf32>
    %215 = tpu.matmul %208, %214, %cst_222 {dimension_numbers = #tpu.dot_dimension_numbers<[1], [0], [0], [1], [0, 0, 1, 1], [], []>} : vector<16x64xf32>, vector<64x64xf32>, vector<16x64xf32> -> vector<16x64xf32>
    %c1_223 = arith.constant 1 : index
    %c0_224 = arith.constant 0 : index
    %216 = vector.load %arg5[%c1_223, %c0_224] : memref<32x128xf32, #tpu.memory_space<vmem>>, vector<1x64xf32>
    %217 = vector.broadcast %216 : vector<1x64xf32> to vector<16x64xf32>
    %218 = arith.addf %215, %217 : vector<16x64xf32>
    %c0_225 = arith.constant 0 : index
    %c256 = arith.constant 256 : index
    %219 = vector.load %arg3[%c0_225, %c256] : memref<64x1920xf32, #tpu.memory_space<vmem>>, vector<64x64xf32>
    %cst_226 = arith.constant dense<0.000000e+00> : vector<16x64xf32>
    %220 = tpu.matmul %208, %219, %cst_226 {dimension_numbers = #tpu.dot_dimension_numbers<[1], [0], [0], [1], [0, 0, 1, 1], [], []>} : vector<16x64xf32>, vector<64x64xf32>, vector<16x64xf32> -> vector<16x64xf32>
    %c2_227 = arith.constant 2 : index
    %c0_228 = arith.constant 0 : index
    %221 = vector.load %arg5[%c2_227, %c0_228] : memref<32x128xf32, #tpu.memory_space<vmem>>, vector<1x64xf32>
    %222 = vector.broadcast %221 : vector<1x64xf32> to vector<16x64xf32>
    %223 = arith.addf %220, %222 : vector<16x64xf32>
    %cst_229 = arith.constant 0.176776692 : f32
    %224 = vector.broadcast %cst_229 : f32 to vector<16x64xf32>
    %225 = arith.mulf %213, %224 : vector<16x64xf32>
    %226 = vector.shape_cast %225 : vector<16x64xf32> to vector<2x8x64xf32>
    %227 = vector.shape_cast %218 : vector<16x64xf32> to vector<2x8x64xf32>
    %228 = vector.shape_cast %223 : vector<16x64xf32> to vector<2x8x64xf32>
    %229 = vector.extract_strided_slice %226 {offsets = [0, 0, 0], sizes = [2, 8, 32], strides = [1, 1, 1]} : vector<2x8x64xf32> to vector<2x8x32xf32>
    %230 = vector.extract_strided_slice %227 {offsets = [0, 0, 0], sizes = [2, 8, 32], strides = [1, 1, 1]} : vector<2x8x64xf32> to vector<2x8x32xf32>
    %231 = vector.extract_strided_slice %228 {offsets = [0, 0, 0], sizes = [2, 8, 32], strides = [1, 1, 1]} : vector<2x8x64xf32> to vector<2x8x32xf32>
    "tpu.trace_start"() <{level = 10 : i32, message = "nqd,nkd->nqk"}> : () -> ()
    %cst_230 = arith.constant dense<0.000000e+00> : vector<2x8x8xf32>
    %232 = tpu.matmul %229, %230, %cst_230 {dimension_numbers = #tpu.dot_dimension_numbers<[2], [2], [1], [1], [0, 0, 0, 1, 1, 1], [0], [0]>} : vector<2x8x32xf32>, vector<2x8x32xf32>, vector<2x8x8xf32> -> vector<2x8x8xf32>
    "tpu.trace_stop"() : () -> ()
    %cst_231 = arith.constant dense<0xFF800000> : vector<2x8xf32>
    %233 = vector.multi_reduction <maximumf>, %232, %cst_231 [2] : vector<2x8x8xf32> to vector<2x8xf32>
    %234 = vector.shape_cast %233 : vector<2x8xf32> to vector<2x8x1xf32>
    %235 = vector.broadcast %234 : vector<2x8x1xf32> to vector<2x8x8xf32>
    %236 = arith.subf %232, %235 : vector<2x8x8xf32>
    %237 = math.exp %236 : vector<2x8x8xf32>
    %cst_232 = arith.constant dense<0.000000e+00> : vector<2x8xf32>
    %238 = vector.multi_reduction <add>, %237, %cst_232 [2] : vector<2x8x8xf32> to vector<2x8xf32>
    %239 = vector.shape_cast %238 : vector<2x8xf32> to vector<2x8x1xf32>
    %240 = vector.broadcast %239 : vector<2x8x1xf32> to vector<2x8x8xf32>
    %241 = arith.divf %237, %240 : vector<2x8x8xf32>
    "tpu.trace_start"() <{level = 10 : i32, message = "nqk,nkd->nqd"}> : () -> ()
    %cst_233 = arith.constant dense<0.000000e+00> : vector<2x8x32xf32>
    %242 = tpu.matmul %241, %231, %cst_233 {dimension_numbers = #tpu.dot_dimension_numbers<[2], [1], [1], [2], [0, 0, 0, 1, 1, 2], [0], [0]>} : vector<2x8x8xf32>, vector<2x8x32xf32>, vector<2x8x32xf32> -> vector<2x8x32xf32>
    "tpu.trace_stop"() : () -> ()
    %c0_234 = arith.constant 0 : index
    %c384 = arith.constant 384 : index
    %243 = vector.load %arg3[%c0_234, %c384] : memref<64x1920xf32, #tpu.memory_space<vmem>>, vector<32x64xf32>
    %244 = vector.shape_cast %242 : vector<2x8x32xf32> to vector<16x32xf32>
    %cst_235 = arith.constant dense<0.000000e+00> : vector<16x64xf32>
    %245 = tpu.matmul %244, %243, %cst_235 {dimension_numbers = #tpu.dot_dimension_numbers<[1], [0], [0], [1], [0, 0, 1, 1], [], []>} : vector<16x32xf32>, vector<32x64xf32>, vector<16x64xf32> -> vector<16x64xf32>
    %246 = vector.extract_strided_slice %226 {offsets = [0, 0, 32], sizes = [2, 8, 32], strides = [1, 1, 1]} : vector<2x8x64xf32> to vector<2x8x32xf32>
    %247 = vector.extract_strided_slice %227 {offsets = [0, 0, 32], sizes = [2, 8, 32], strides = [1, 1, 1]} : vector<2x8x64xf32> to vector<2x8x32xf32>
    %248 = vector.extract_strided_slice %228 {offsets = [0, 0, 32], sizes = [2, 8, 32], strides = [1, 1, 1]} : vector<2x8x64xf32> to vector<2x8x32xf32>
    "tpu.trace_start"() <{level = 10 : i32, message = "nqd,nkd->nqk"}> : () -> ()
    %cst_236 = arith.constant dense<0.000000e+00> : vector<2x8x8xf32>
    %249 = tpu.matmul %246, %247, %cst_236 {dimension_numbers = #tpu.dot_dimension_numbers<[2], [2], [1], [1], [0, 0, 0, 1, 1, 1], [0], [0]>} : vector<2x8x32xf32>, vector<2x8x32xf32>, vector<2x8x8xf32> -> vector<2x8x8xf32>
    "tpu.trace_stop"() : () -> ()
    %cst_237 = arith.constant dense<0xFF800000> : vector<2x8xf32>
    %250 = vector.multi_reduction <maximumf>, %249, %cst_237 [2] : vector<2x8x8xf32> to vector<2x8xf32>
    %251 = vector.shape_cast %250 : vector<2x8xf32> to vector<2x8x1xf32>
    %252 = vector.broadcast %251 : vector<2x8x1xf32> to vector<2x8x8xf32>
    %253 = arith.subf %249, %252 : vector<2x8x8xf32>
    %254 = math.exp %253 : vector<2x8x8xf32>
    %cst_238 = arith.constant dense<0.000000e+00> : vector<2x8xf32>
    %255 = vector.multi_reduction <add>, %254, %cst_238 [2] : vector<2x8x8xf32> to vector<2x8xf32>
    %256 = vector.shape_cast %255 : vector<2x8xf32> to vector<2x8x1xf32>
    %257 = vector.broadcast %256 : vector<2x8x1xf32> to vector<2x8x8xf32>
    %258 = arith.divf %254, %257 : vector<2x8x8xf32>
    "tpu.trace_start"() <{level = 10 : i32, message = "nqk,nkd->nqd"}> : () -> ()
    %cst_239 = arith.constant dense<0.000000e+00> : vector<2x8x32xf32>
    %259 = tpu.matmul %258, %248, %cst_239 {dimension_numbers = #tpu.dot_dimension_numbers<[2], [1], [1], [2], [0, 0, 0, 1, 1, 2], [0], [0]>} : vector<2x8x8xf32>, vector<2x8x32xf32>, vector<2x8x32xf32> -> vector<2x8x32xf32>
    "tpu.trace_stop"() : () -> ()
    %c32 = arith.constant 32 : index
    %c384_240 = arith.constant 384 : index
    %260 = vector.load %arg3[%c32, %c384_240] : memref<64x1920xf32, #tpu.memory_space<vmem>>, vector<32x64xf32>
    %261 = vector.shape_cast %259 : vector<2x8x32xf32> to vector<16x32xf32>
    %cst_241 = arith.constant dense<0.000000e+00> : vector<16x64xf32>
    %262 = tpu.matmul %261, %260, %cst_241 {dimension_numbers = #tpu.dot_dimension_numbers<[1], [0], [0], [1], [0, 0, 1, 1], [], []>} : vector<16x32xf32>, vector<32x64xf32>, vector<16x64xf32> -> vector<16x64xf32>
    %263 = arith.addf %245, %262 : vector<16x64xf32>
    %c3_242 = arith.constant 3 : index
    %c0_243 = arith.constant 0 : index
    %264 = vector.load %arg5[%c3_242, %c0_243] : memref<32x128xf32, #tpu.memory_space<vmem>>, vector<1x64xf32>
    %265 = vector.broadcast %264 : vector<1x64xf32> to vector<16x64xf32>
    %266 = arith.addf %263, %265 : vector<16x64xf32>
    %267 = arith.addf %208, %266 : vector<16x64xf32>
    %c4_244 = arith.constant 4 : index
    %c0_245 = arith.constant 0 : index
    %268 = vector.load %arg5[%c4_244, %c0_245] : memref<32x128xf32, #tpu.memory_space<vmem>>, vector<1x64xf32>
    %c5_246 = arith.constant 5 : index
    %c0_247 = arith.constant 0 : index
    %269 = vector.load %arg5[%c5_246, %c0_247] : memref<32x128xf32, #tpu.memory_space<vmem>>, vector<1x64xf32>
    %cst_248 = arith.constant dense<0.000000e+00> : vector<16xf32>
    %270 = vector.multi_reduction <add>, %267, %cst_248 [1] : vector<16x64xf32> to vector<16xf32>
    %271 = vector.shape_cast %270 : vector<16xf32> to vector<16x1xf32>
    %cst_249 = arith.constant 6.400000e+01 : f32
    %272 = vector.broadcast %cst_249 : f32 to vector<16x1xf32>
    %273 = arith.divf %271, %272 : vector<16x1xf32>
    %274 = vector.broadcast %273 : vector<16x1xf32> to vector<16x64xf32>
    %275 = arith.subf %267, %274 : vector<16x64xf32>
    %276 = arith.mulf %275, %275 : vector<16x64xf32>
    %cst_250 = arith.constant dense<0.000000e+00> : vector<16xf32>
    %277 = vector.multi_reduction <add>, %276, %cst_250 [1] : vector<16x64xf32> to vector<16xf32>
    %278 = vector.shape_cast %277 : vector<16xf32> to vector<16x1xf32>
    %cst_251 = arith.constant 6.400000e+01 : f32
    %279 = vector.broadcast %cst_251 : f32 to vector<16x1xf32>
    %280 = arith.divf %278, %279 : vector<16x1xf32>
    %281 = vector.broadcast %273 : vector<16x1xf32> to vector<16x64xf32>
    %282 = arith.subf %267, %281 : vector<16x64xf32>
    %cst_252 = arith.constant 9.99999974E-6 : f32
    %283 = vector.broadcast %cst_252 : f32 to vector<16x1xf32>
    %284 = arith.addf %280, %283 : vector<16x1xf32>
    %285 = math.rsqrt %284 : vector<16x1xf32>
    %286 = vector.broadcast %285 : vector<16x1xf32> to vector<16x64xf32>
    %287 = arith.mulf %282, %286 : vector<16x64xf32>
    %288 = vector.broadcast %268 : vector<1x64xf32> to vector<16x64xf32>
    %289 = arith.mulf %287, %288 : vector<16x64xf32>
    %290 = vector.broadcast %269 : vector<1x64xf32> to vector<16x64xf32>
    %291 = arith.addf %289, %290 : vector<16x64xf32>
    %c0_253 = arith.constant 0 : index
    %c512 = arith.constant 512 : index
    %292 = vector.load %arg3[%c0_253, %c512] : memref<64x1920xf32, #tpu.memory_space<vmem>>, vector<64x128xf32>
    %cst_254 = arith.constant dense<0.000000e+00> : vector<16x128xf32>
    %293 = tpu.matmul %291, %292, %cst_254 {dimension_numbers = #tpu.dot_dimension_numbers<[1], [0], [0], [1], [0, 0, 1, 1], [], []>} : vector<16x64xf32>, vector<64x128xf32>, vector<16x128xf32> -> vector<16x128xf32>
    %c6_255 = arith.constant 6 : index
    %c0_256 = arith.constant 0 : index
    %294 = vector.load %arg5[%c6_255, %c0_256] : memref<32x128xf32, #tpu.memory_space<vmem>>, vector<1x128xf32>
    %295 = vector.broadcast %294 : vector<1x128xf32> to vector<16x128xf32>
    %296 = arith.addf %293, %295 : vector<16x128xf32>
    %cst_257 = arith.constant 0.000000e+00 : f32
    %297 = vector.broadcast %cst_257 : f32 to vector<16x128xf32>
    %298 = arith.maximumf %296, %297 : vector<16x128xf32>
    %c0_258 = arith.constant 0 : index
    %c0_259 = arith.constant 0 : index
    %299 = vector.load %arg4[%c0_258, %c0_259] : memref<128x256xf32, #tpu.memory_space<vmem>>, vector<128x64xf32>
    %cst_260 = arith.constant dense<0.000000e+00> : vector<16x64xf32>
    %300 = tpu.matmul %298, %299, %cst_260 {dimension_numbers = #tpu.dot_dimension_numbers<[1], [0], [0], [1], [0, 0, 1, 1], [], []>} : vector<16x128xf32>, vector<128x64xf32>, vector<16x64xf32> -> vector<16x64xf32>
    %c7_261 = arith.constant 7 : index
    %c0_262 = arith.constant 0 : index
    %301 = vector.load %arg5[%c7_261, %c0_262] : memref<32x128xf32, #tpu.memory_space<vmem>>, vector<1x64xf32>
    %302 = vector.broadcast %301 : vector<1x64xf32> to vector<16x64xf32>
    %303 = arith.addf %300, %302 : vector<16x64xf32>
    %304 = arith.addf %291, %303 : vector<16x64xf32>
    %c8_263 = arith.constant 8 : index
    %c0_264 = arith.constant 0 : index
    %305 = vector.load %arg5[%c8_263, %c0_264] : memref<32x128xf32, #tpu.memory_space<vmem>>, vector<1x64xf32>
    %c9_265 = arith.constant 9 : index
    %c0_266 = arith.constant 0 : index
    %306 = vector.load %arg5[%c9_265, %c0_266] : memref<32x128xf32, #tpu.memory_space<vmem>>, vector<1x64xf32>
    %cst_267 = arith.constant dense<0.000000e+00> : vector<16xf32>
    %307 = vector.multi_reduction <add>, %304, %cst_267 [1] : vector<16x64xf32> to vector<16xf32>
    %308 = vector.shape_cast %307 : vector<16xf32> to vector<16x1xf32>
    %cst_268 = arith.constant 6.400000e+01 : f32
    %309 = vector.broadcast %cst_268 : f32 to vector<16x1xf32>
    %310 = arith.divf %308, %309 : vector<16x1xf32>
    %311 = vector.broadcast %310 : vector<16x1xf32> to vector<16x64xf32>
    %312 = arith.subf %304, %311 : vector<16x64xf32>
    %313 = arith.mulf %312, %312 : vector<16x64xf32>
    %cst_269 = arith.constant dense<0.000000e+00> : vector<16xf32>
    %314 = vector.multi_reduction <add>, %313, %cst_269 [1] : vector<16x64xf32> to vector<16xf32>
    %315 = vector.shape_cast %314 : vector<16xf32> to vector<16x1xf32>
    %cst_270 = arith.constant 6.400000e+01 : f32
    %316 = vector.broadcast %cst_270 : f32 to vector<16x1xf32>
    %317 = arith.divf %315, %316 : vector<16x1xf32>
    %318 = vector.broadcast %310 : vector<16x1xf32> to vector<16x64xf32>
    %319 = arith.subf %304, %318 : vector<16x64xf32>
    %cst_271 = arith.constant 9.99999974E-6 : f32
    %320 = vector.broadcast %cst_271 : f32 to vector<16x1xf32>
    %321 = arith.addf %317, %320 : vector<16x1xf32>
    %322 = math.rsqrt %321 : vector<16x1xf32>
    %323 = vector.broadcast %322 : vector<16x1xf32> to vector<16x64xf32>
    %324 = arith.mulf %319, %323 : vector<16x64xf32>
    %325 = vector.broadcast %305 : vector<1x64xf32> to vector<16x64xf32>
    %326 = arith.mulf %324, %325 : vector<16x64xf32>
    %327 = vector.broadcast %306 : vector<1x64xf32> to vector<16x64xf32>
    %328 = arith.addf %326, %327 : vector<16x64xf32>
    %c10_272 = arith.constant 10 : index
    %c0_273 = arith.constant 0 : index
    %329 = vector.load %arg5[%c10_272, %c0_273] : memref<32x128xf32, #tpu.memory_space<vmem>>, vector<1x64xf32>
    %c11_274 = arith.constant 11 : index
    %c0_275 = arith.constant 0 : index
    %330 = vector.load %arg5[%c11_274, %c0_275] : memref<32x128xf32, #tpu.memory_space<vmem>>, vector<1x64xf32>
    %cst_276 = arith.constant dense<0.000000e+00> : vector<16xf32>
    %331 = vector.multi_reduction <add>, %328, %cst_276 [1] : vector<16x64xf32> to vector<16xf32>
    %332 = vector.shape_cast %331 : vector<16xf32> to vector<16x1xf32>
    %cst_277 = arith.constant 6.400000e+01 : f32
    %333 = vector.broadcast %cst_277 : f32 to vector<16x1xf32>
    %334 = arith.divf %332, %333 : vector<16x1xf32>
    %335 = vector.broadcast %334 : vector<16x1xf32> to vector<16x64xf32>
    %336 = arith.subf %328, %335 : vector<16x64xf32>
    %337 = arith.mulf %336, %336 : vector<16x64xf32>
    %cst_278 = arith.constant dense<0.000000e+00> : vector<16xf32>
    %338 = vector.multi_reduction <add>, %337, %cst_278 [1] : vector<16x64xf32> to vector<16xf32>
    %339 = vector.shape_cast %338 : vector<16xf32> to vector<16x1xf32>
    %cst_279 = arith.constant 6.400000e+01 : f32
    %340 = vector.broadcast %cst_279 : f32 to vector<16x1xf32>
    %341 = arith.divf %339, %340 : vector<16x1xf32>
    %342 = vector.broadcast %334 : vector<16x1xf32> to vector<16x64xf32>
    %343 = arith.subf %328, %342 : vector<16x64xf32>
    %cst_280 = arith.constant 9.99999974E-6 : f32
    %344 = vector.broadcast %cst_280 : f32 to vector<16x1xf32>
    %345 = arith.addf %341, %344 : vector<16x1xf32>
    %346 = math.rsqrt %345 : vector<16x1xf32>
    %347 = vector.broadcast %346 : vector<16x1xf32> to vector<16x64xf32>
    %348 = arith.mulf %343, %347 : vector<16x64xf32>
    %349 = vector.broadcast %329 : vector<1x64xf32> to vector<16x64xf32>
    %350 = arith.mulf %348, %349 : vector<16x64xf32>
    %351 = vector.broadcast %330 : vector<1x64xf32> to vector<16x64xf32>
    %352 = arith.addf %350, %351 : vector<16x64xf32>
    %c0_281 = arith.constant 0 : index
    %c0_282 = arith.constant 0 : index
    %353 = vector.load %arg8[%c0_281, %c0_282] : memref<16x64xf32, #tpu.memory_space<vmem>>, vector<16x64xf32>
    %c0_283 = arith.constant 0 : index
    %c640 = arith.constant 640 : index
    %354 = vector.load %arg3[%c0_283, %c640] : memref<64x1920xf32, #tpu.memory_space<vmem>>, vector<64x64xf32>
    %cst_284 = arith.constant dense<0.000000e+00> : vector<16x64xf32>
    %355 = tpu.matmul %353, %354, %cst_284 {dimension_numbers = #tpu.dot_dimension_numbers<[1], [0], [0], [1], [0, 0, 1, 1], [], []>} : vector<16x64xf32>, vector<64x64xf32>, vector<16x64xf32> -> vector<16x64xf32>
    %c12_285 = arith.constant 12 : index
    %c0_286 = arith.constant 0 : index
    %356 = vector.load %arg5[%c12_285, %c0_286] : memref<32x128xf32, #tpu.memory_space<vmem>>, vector<1x64xf32>
    %357 = vector.broadcast %356 : vector<1x64xf32> to vector<16x64xf32>
    %358 = arith.addf %355, %357 : vector<16x64xf32>
    %c0_287 = arith.constant 0 : index
    %c768 = arith.constant 768 : index
    %359 = vector.load %arg3[%c0_287, %c768] : memref<64x1920xf32, #tpu.memory_space<vmem>>, vector<64x64xf32>
    %cst_288 = arith.constant dense<0.000000e+00> : vector<16x64xf32>
    %360 = tpu.matmul %353, %359, %cst_288 {dimension_numbers = #tpu.dot_dimension_numbers<[1], [0], [0], [1], [0, 0, 1, 1], [], []>} : vector<16x64xf32>, vector<64x64xf32>, vector<16x64xf32> -> vector<16x64xf32>
    %c13_289 = arith.constant 13 : index
    %c0_290 = arith.constant 0 : index
    %361 = vector.load %arg5[%c13_289, %c0_290] : memref<32x128xf32, #tpu.memory_space<vmem>>, vector<1x64xf32>
    %362 = vector.broadcast %361 : vector<1x64xf32> to vector<16x64xf32>
    %363 = arith.addf %360, %362 : vector<16x64xf32>
    %c0_291 = arith.constant 0 : index
    %c896 = arith.constant 896 : index
    %364 = vector.load %arg3[%c0_291, %c896] : memref<64x1920xf32, #tpu.memory_space<vmem>>, vector<64x64xf32>
    %cst_292 = arith.constant dense<0.000000e+00> : vector<16x64xf32>
    %365 = tpu.matmul %353, %364, %cst_292 {dimension_numbers = #tpu.dot_dimension_numbers<[1], [0], [0], [1], [0, 0, 1, 1], [], []>} : vector<16x64xf32>, vector<64x64xf32>, vector<16x64xf32> -> vector<16x64xf32>
    %c14_293 = arith.constant 14 : index
    %c0_294 = arith.constant 0 : index
    %366 = vector.load %arg5[%c14_293, %c0_294] : memref<32x128xf32, #tpu.memory_space<vmem>>, vector<1x64xf32>
    %367 = vector.broadcast %366 : vector<1x64xf32> to vector<16x64xf32>
    %368 = arith.addf %365, %367 : vector<16x64xf32>
    %cst_295 = arith.constant 0.176776692 : f32
    %369 = vector.broadcast %cst_295 : f32 to vector<16x64xf32>
    %370 = arith.mulf %358, %369 : vector<16x64xf32>
    %371 = vector.shape_cast %370 : vector<16x64xf32> to vector<2x8x64xf32>
    %372 = vector.shape_cast %363 : vector<16x64xf32> to vector<2x8x64xf32>
    %373 = vector.shape_cast %368 : vector<16x64xf32> to vector<2x8x64xf32>
    %374 = vector.extract_strided_slice %371 {offsets = [0, 0, 0], sizes = [2, 8, 32], strides = [1, 1, 1]} : vector<2x8x64xf32> to vector<2x8x32xf32>
    %375 = vector.extract_strided_slice %372 {offsets = [0, 0, 0], sizes = [2, 8, 32], strides = [1, 1, 1]} : vector<2x8x64xf32> to vector<2x8x32xf32>
    %376 = vector.extract_strided_slice %373 {offsets = [0, 0, 0], sizes = [2, 8, 32], strides = [1, 1, 1]} : vector<2x8x64xf32> to vector<2x8x32xf32>
    "tpu.trace_start"() <{level = 10 : i32, message = "nqd,nkd->nqk"}> : () -> ()
    %cst_296 = arith.constant dense<0.000000e+00> : vector<2x8x8xf32>
    %377 = tpu.matmul %374, %375, %cst_296 {dimension_numbers = #tpu.dot_dimension_numbers<[2], [2], [1], [1], [0, 0, 0, 1, 1, 1], [0], [0]>} : vector<2x8x32xf32>, vector<2x8x32xf32>, vector<2x8x8xf32> -> vector<2x8x8xf32>
    "tpu.trace_stop"() : () -> ()
    %cst_297 = arith.constant dense<0xFF800000> : vector<2x8xf32>
    %378 = vector.multi_reduction <maximumf>, %377, %cst_297 [2] : vector<2x8x8xf32> to vector<2x8xf32>
    %379 = vector.shape_cast %378 : vector<2x8xf32> to vector<2x8x1xf32>
    %380 = vector.broadcast %379 : vector<2x8x1xf32> to vector<2x8x8xf32>
    %381 = arith.subf %377, %380 : vector<2x8x8xf32>
    %382 = math.exp %381 : vector<2x8x8xf32>
    %cst_298 = arith.constant dense<0.000000e+00> : vector<2x8xf32>
    %383 = vector.multi_reduction <add>, %382, %cst_298 [2] : vector<2x8x8xf32> to vector<2x8xf32>
    %384 = vector.shape_cast %383 : vector<2x8xf32> to vector<2x8x1xf32>
    %385 = vector.broadcast %384 : vector<2x8x1xf32> to vector<2x8x8xf32>
    %386 = arith.divf %382, %385 : vector<2x8x8xf32>
    "tpu.trace_start"() <{level = 10 : i32, message = "nqk,nkd->nqd"}> : () -> ()
    %cst_299 = arith.constant dense<0.000000e+00> : vector<2x8x32xf32>
    %387 = tpu.matmul %386, %376, %cst_299 {dimension_numbers = #tpu.dot_dimension_numbers<[2], [1], [1], [2], [0, 0, 0, 1, 1, 2], [0], [0]>} : vector<2x8x8xf32>, vector<2x8x32xf32>, vector<2x8x32xf32> -> vector<2x8x32xf32>
    "tpu.trace_stop"() : () -> ()
    %c0_300 = arith.constant 0 : index
    %c1024 = arith.constant 1024 : index
    %388 = vector.load %arg3[%c0_300, %c1024] : memref<64x1920xf32, #tpu.memory_space<vmem>>, vector<32x64xf32>
    %389 = vector.shape_cast %387 : vector<2x8x32xf32> to vector<16x32xf32>
    %cst_301 = arith.constant dense<0.000000e+00> : vector<16x64xf32>
    %390 = tpu.matmul %389, %388, %cst_301 {dimension_numbers = #tpu.dot_dimension_numbers<[1], [0], [0], [1], [0, 0, 1, 1], [], []>} : vector<16x32xf32>, vector<32x64xf32>, vector<16x64xf32> -> vector<16x64xf32>
    %391 = vector.extract_strided_slice %371 {offsets = [0, 0, 32], sizes = [2, 8, 32], strides = [1, 1, 1]} : vector<2x8x64xf32> to vector<2x8x32xf32>
    %392 = vector.extract_strided_slice %372 {offsets = [0, 0, 32], sizes = [2, 8, 32], strides = [1, 1, 1]} : vector<2x8x64xf32> to vector<2x8x32xf32>
    %393 = vector.extract_strided_slice %373 {offsets = [0, 0, 32], sizes = [2, 8, 32], strides = [1, 1, 1]} : vector<2x8x64xf32> to vector<2x8x32xf32>
    "tpu.trace_start"() <{level = 10 : i32, message = "nqd,nkd->nqk"}> : () -> ()
    %cst_302 = arith.constant dense<0.000000e+00> : vector<2x8x8xf32>
    %394 = tpu.matmul %391, %392, %cst_302 {dimension_numbers = #tpu.dot_dimension_numbers<[2], [2], [1], [1], [0, 0, 0, 1, 1, 1], [0], [0]>} : vector<2x8x32xf32>, vector<2x8x32xf32>, vector<2x8x8xf32> -> vector<2x8x8xf32>
    "tpu.trace_stop"() : () -> ()
    %cst_303 = arith.constant dense<0xFF800000> : vector<2x8xf32>
    %395 = vector.multi_reduction <maximumf>, %394, %cst_303 [2] : vector<2x8x8xf32> to vector<2x8xf32>
    %396 = vector.shape_cast %395 : vector<2x8xf32> to vector<2x8x1xf32>
    %397 = vector.broadcast %396 : vector<2x8x1xf32> to vector<2x8x8xf32>
    %398 = arith.subf %394, %397 : vector<2x8x8xf32>
    %399 = math.exp %398 : vector<2x8x8xf32>
    %cst_304 = arith.constant dense<0.000000e+00> : vector<2x8xf32>
    %400 = vector.multi_reduction <add>, %399, %cst_304 [2] : vector<2x8x8xf32> to vector<2x8xf32>
    %401 = vector.shape_cast %400 : vector<2x8xf32> to vector<2x8x1xf32>
    %402 = vector.broadcast %401 : vector<2x8x1xf32> to vector<2x8x8xf32>
    %403 = arith.divf %399, %402 : vector<2x8x8xf32>
    "tpu.trace_start"() <{level = 10 : i32, message = "nqk,nkd->nqd"}> : () -> ()
    %cst_305 = arith.constant dense<0.000000e+00> : vector<2x8x32xf32>
    %404 = tpu.matmul %403, %393, %cst_305 {dimension_numbers = #tpu.dot_dimension_numbers<[2], [1], [1], [2], [0, 0, 0, 1, 1, 2], [0], [0]>} : vector<2x8x8xf32>, vector<2x8x32xf32>, vector<2x8x32xf32> -> vector<2x8x32xf32>
    "tpu.trace_stop"() : () -> ()
    %c32_306 = arith.constant 32 : index
    %c1024_307 = arith.constant 1024 : index
    %405 = vector.load %arg3[%c32_306, %c1024_307] : memref<64x1920xf32, #tpu.memory_space<vmem>>, vector<32x64xf32>
    %406 = vector.shape_cast %404 : vector<2x8x32xf32> to vector<16x32xf32>
    %cst_308 = arith.constant dense<0.000000e+00> : vector<16x64xf32>
    %407 = tpu.matmul %406, %405, %cst_308 {dimension_numbers = #tpu.dot_dimension_numbers<[1], [0], [0], [1], [0, 0, 1, 1], [], []>} : vector<16x32xf32>, vector<32x64xf32>, vector<16x64xf32> -> vector<16x64xf32>
    %408 = arith.addf %390, %407 : vector<16x64xf32>
    %c15_309 = arith.constant 15 : index
    %c0_310 = arith.constant 0 : index
    %409 = vector.load %arg5[%c15_309, %c0_310] : memref<32x128xf32, #tpu.memory_space<vmem>>, vector<1x64xf32>
    %410 = vector.broadcast %409 : vector<1x64xf32> to vector<16x64xf32>
    %411 = arith.addf %408, %410 : vector<16x64xf32>
    %412 = arith.addf %353, %411 : vector<16x64xf32>
    %c16 = arith.constant 16 : index
    %c0_311 = arith.constant 0 : index
    %413 = vector.load %arg5[%c16, %c0_311] : memref<32x128xf32, #tpu.memory_space<vmem>>, vector<1x64xf32>
    %c17 = arith.constant 17 : index
    %c0_312 = arith.constant 0 : index
    %414 = vector.load %arg5[%c17, %c0_312] : memref<32x128xf32, #tpu.memory_space<vmem>>, vector<1x64xf32>
    %cst_313 = arith.constant dense<0.000000e+00> : vector<16xf32>
    %415 = vector.multi_reduction <add>, %412, %cst_313 [1] : vector<16x64xf32> to vector<16xf32>
    %416 = vector.shape_cast %415 : vector<16xf32> to vector<16x1xf32>
    %cst_314 = arith.constant 6.400000e+01 : f32
    %417 = vector.broadcast %cst_314 : f32 to vector<16x1xf32>
    %418 = arith.divf %416, %417 : vector<16x1xf32>
    %419 = vector.broadcast %418 : vector<16x1xf32> to vector<16x64xf32>
    %420 = arith.subf %412, %419 : vector<16x64xf32>
    %421 = arith.mulf %420, %420 : vector<16x64xf32>
    %cst_315 = arith.constant dense<0.000000e+00> : vector<16xf32>
    %422 = vector.multi_reduction <add>, %421, %cst_315 [1] : vector<16x64xf32> to vector<16xf32>
    %423 = vector.shape_cast %422 : vector<16xf32> to vector<16x1xf32>
    %cst_316 = arith.constant 6.400000e+01 : f32
    %424 = vector.broadcast %cst_316 : f32 to vector<16x1xf32>
    %425 = arith.divf %423, %424 : vector<16x1xf32>
    %426 = vector.broadcast %418 : vector<16x1xf32> to vector<16x64xf32>
    %427 = arith.subf %412, %426 : vector<16x64xf32>
    %cst_317 = arith.constant 9.99999974E-6 : f32
    %428 = vector.broadcast %cst_317 : f32 to vector<16x1xf32>
    %429 = arith.addf %425, %428 : vector<16x1xf32>
    %430 = math.rsqrt %429 : vector<16x1xf32>
    %431 = vector.broadcast %430 : vector<16x1xf32> to vector<16x64xf32>
    %432 = arith.mulf %427, %431 : vector<16x64xf32>
    %433 = vector.broadcast %413 : vector<1x64xf32> to vector<16x64xf32>
    %434 = arith.mulf %432, %433 : vector<16x64xf32>
    %435 = vector.broadcast %414 : vector<1x64xf32> to vector<16x64xf32>
    %436 = arith.addf %434, %435 : vector<16x64xf32>
    %c0_318 = arith.constant 0 : index
    %c1152 = arith.constant 1152 : index
    %437 = vector.load %arg3[%c0_318, %c1152] : memref<64x1920xf32, #tpu.memory_space<vmem>>, vector<64x64xf32>
    %cst_319 = arith.constant dense<0.000000e+00> : vector<16x64xf32>
    %438 = tpu.matmul %436, %437, %cst_319 {dimension_numbers = #tpu.dot_dimension_numbers<[1], [0], [0], [1], [0, 0, 1, 1], [], []>} : vector<16x64xf32>, vector<64x64xf32>, vector<16x64xf32> -> vector<16x64xf32>
    %c18 = arith.constant 18 : index
    %c0_320 = arith.constant 0 : index
    %439 = vector.load %arg5[%c18, %c0_320] : memref<32x128xf32, #tpu.memory_space<vmem>>, vector<1x64xf32>
    %440 = vector.broadcast %439 : vector<1x64xf32> to vector<16x64xf32>
    %441 = arith.addf %438, %440 : vector<16x64xf32>
    %c0_321 = arith.constant 0 : index
    %c1280 = arith.constant 1280 : index
    %442 = vector.load %arg3[%c0_321, %c1280] : memref<64x1920xf32, #tpu.memory_space<vmem>>, vector<64x64xf32>
    %cst_322 = arith.constant dense<0.000000e+00> : vector<16x64xf32>
    %443 = tpu.matmul %352, %442, %cst_322 {dimension_numbers = #tpu.dot_dimension_numbers<[1], [0], [0], [1], [0, 0, 1, 1], [], []>} : vector<16x64xf32>, vector<64x64xf32>, vector<16x64xf32> -> vector<16x64xf32>
    %c19 = arith.constant 19 : index
    %c0_323 = arith.constant 0 : index
    %444 = vector.load %arg5[%c19, %c0_323] : memref<32x128xf32, #tpu.memory_space<vmem>>, vector<1x64xf32>
    %445 = vector.broadcast %444 : vector<1x64xf32> to vector<16x64xf32>
    %446 = arith.addf %443, %445 : vector<16x64xf32>
    %c0_324 = arith.constant 0 : index
    %c1408 = arith.constant 1408 : index
    %447 = vector.load %arg3[%c0_324, %c1408] : memref<64x1920xf32, #tpu.memory_space<vmem>>, vector<64x64xf32>
    %cst_325 = arith.constant dense<0.000000e+00> : vector<16x64xf32>
    %448 = tpu.matmul %352, %447, %cst_325 {dimension_numbers = #tpu.dot_dimension_numbers<[1], [0], [0], [1], [0, 0, 1, 1], [], []>} : vector<16x64xf32>, vector<64x64xf32>, vector<16x64xf32> -> vector<16x64xf32>
    %c20 = arith.constant 20 : index
    %c0_326 = arith.constant 0 : index
    %449 = vector.load %arg5[%c20, %c0_326] : memref<32x128xf32, #tpu.memory_space<vmem>>, vector<1x64xf32>
    %450 = vector.broadcast %449 : vector<1x64xf32> to vector<16x64xf32>
    %451 = arith.addf %448, %450 : vector<16x64xf32>
    %cst_327 = arith.constant 0.176776692 : f32
    %452 = vector.broadcast %cst_327 : f32 to vector<16x64xf32>
    %453 = arith.mulf %441, %452 : vector<16x64xf32>
    %454 = vector.shape_cast %453 : vector<16x64xf32> to vector<2x8x64xf32>
    %455 = vector.shape_cast %446 : vector<16x64xf32> to vector<2x8x64xf32>
    %456 = vector.shape_cast %451 : vector<16x64xf32> to vector<2x8x64xf32>
    %457 = vector.extract_strided_slice %454 {offsets = [0, 0, 0], sizes = [2, 8, 32], strides = [1, 1, 1]} : vector<2x8x64xf32> to vector<2x8x32xf32>
    %458 = vector.extract_strided_slice %455 {offsets = [0, 0, 0], sizes = [2, 8, 32], strides = [1, 1, 1]} : vector<2x8x64xf32> to vector<2x8x32xf32>
    %459 = vector.extract_strided_slice %456 {offsets = [0, 0, 0], sizes = [2, 8, 32], strides = [1, 1, 1]} : vector<2x8x64xf32> to vector<2x8x32xf32>
    "tpu.trace_start"() <{level = 10 : i32, message = "nqd,nkd->nqk"}> : () -> ()
    %cst_328 = arith.constant dense<0.000000e+00> : vector<2x8x8xf32>
    %460 = tpu.matmul %457, %458, %cst_328 {dimension_numbers = #tpu.dot_dimension_numbers<[2], [2], [1], [1], [0, 0, 0, 1, 1, 1], [0], [0]>} : vector<2x8x32xf32>, vector<2x8x32xf32>, vector<2x8x8xf32> -> vector<2x8x8xf32>
    "tpu.trace_stop"() : () -> ()
    %cst_329 = arith.constant dense<0xFF800000> : vector<2x8xf32>
    %461 = vector.multi_reduction <maximumf>, %460, %cst_329 [2] : vector<2x8x8xf32> to vector<2x8xf32>
    %462 = vector.shape_cast %461 : vector<2x8xf32> to vector<2x8x1xf32>
    %463 = vector.broadcast %462 : vector<2x8x1xf32> to vector<2x8x8xf32>
    %464 = arith.subf %460, %463 : vector<2x8x8xf32>
    %465 = math.exp %464 : vector<2x8x8xf32>
    %cst_330 = arith.constant dense<0.000000e+00> : vector<2x8xf32>
    %466 = vector.multi_reduction <add>, %465, %cst_330 [2] : vector<2x8x8xf32> to vector<2x8xf32>
    %467 = vector.shape_cast %466 : vector<2x8xf32> to vector<2x8x1xf32>
    %468 = vector.broadcast %467 : vector<2x8x1xf32> to vector<2x8x8xf32>
    %469 = arith.divf %465, %468 : vector<2x8x8xf32>
    "tpu.trace_start"() <{level = 10 : i32, message = "nqk,nkd->nqd"}> : () -> ()
    %cst_331 = arith.constant dense<0.000000e+00> : vector<2x8x32xf32>
    %470 = tpu.matmul %469, %459, %cst_331 {dimension_numbers = #tpu.dot_dimension_numbers<[2], [1], [1], [2], [0, 0, 0, 1, 1, 2], [0], [0]>} : vector<2x8x8xf32>, vector<2x8x32xf32>, vector<2x8x32xf32> -> vector<2x8x32xf32>
    "tpu.trace_stop"() : () -> ()
    %c0_332 = arith.constant 0 : index
    %c1536 = arith.constant 1536 : index
    %471 = vector.load %arg3[%c0_332, %c1536] : memref<64x1920xf32, #tpu.memory_space<vmem>>, vector<32x64xf32>
    %472 = vector.shape_cast %470 : vector<2x8x32xf32> to vector<16x32xf32>
    %cst_333 = arith.constant dense<0.000000e+00> : vector<16x64xf32>
    %473 = tpu.matmul %472, %471, %cst_333 {dimension_numbers = #tpu.dot_dimension_numbers<[1], [0], [0], [1], [0, 0, 1, 1], [], []>} : vector<16x32xf32>, vector<32x64xf32>, vector<16x64xf32> -> vector<16x64xf32>
    %474 = vector.extract_strided_slice %454 {offsets = [0, 0, 32], sizes = [2, 8, 32], strides = [1, 1, 1]} : vector<2x8x64xf32> to vector<2x8x32xf32>
    %475 = vector.extract_strided_slice %455 {offsets = [0, 0, 32], sizes = [2, 8, 32], strides = [1, 1, 1]} : vector<2x8x64xf32> to vector<2x8x32xf32>
    %476 = vector.extract_strided_slice %456 {offsets = [0, 0, 32], sizes = [2, 8, 32], strides = [1, 1, 1]} : vector<2x8x64xf32> to vector<2x8x32xf32>
    "tpu.trace_start"() <{level = 10 : i32, message = "nqd,nkd->nqk"}> : () -> ()
    %cst_334 = arith.constant dense<0.000000e+00> : vector<2x8x8xf32>
    %477 = tpu.matmul %474, %475, %cst_334 {dimension_numbers = #tpu.dot_dimension_numbers<[2], [2], [1], [1], [0, 0, 0, 1, 1, 1], [0], [0]>} : vector<2x8x32xf32>, vector<2x8x32xf32>, vector<2x8x8xf32> -> vector<2x8x8xf32>
    "tpu.trace_stop"() : () -> ()
    %cst_335 = arith.constant dense<0xFF800000> : vector<2x8xf32>
    %478 = vector.multi_reduction <maximumf>, %477, %cst_335 [2] : vector<2x8x8xf32> to vector<2x8xf32>
    %479 = vector.shape_cast %478 : vector<2x8xf32> to vector<2x8x1xf32>
    %480 = vector.broadcast %479 : vector<2x8x1xf32> to vector<2x8x8xf32>
    %481 = arith.subf %477, %480 : vector<2x8x8xf32>
    %482 = math.exp %481 : vector<2x8x8xf32>
    %cst_336 = arith.constant dense<0.000000e+00> : vector<2x8xf32>
    %483 = vector.multi_reduction <add>, %482, %cst_336 [2] : vector<2x8x8xf32> to vector<2x8xf32>
    %484 = vector.shape_cast %483 : vector<2x8xf32> to vector<2x8x1xf32>
    %485 = vector.broadcast %484 : vector<2x8x1xf32> to vector<2x8x8xf32>
    %486 = arith.divf %482, %485 : vector<2x8x8xf32>
    "tpu.trace_start"() <{level = 10 : i32, message = "nqk,nkd->nqd"}> : () -> ()
    %cst_337 = arith.constant dense<0.000000e+00> : vector<2x8x32xf32>
    %487 = tpu.matmul %486, %476, %cst_337 {dimension_numbers = #tpu.dot_dimension_numbers<[2], [1], [1], [2], [0, 0, 0, 1, 1, 2], [0], [0]>} : vector<2x8x8xf32>, vector<2x8x32xf32>, vector<2x8x32xf32> -> vector<2x8x32xf32>
    "tpu.trace_stop"() : () -> ()
    %c32_338 = arith.constant 32 : index
    %c1536_339 = arith.constant 1536 : index
    %488 = vector.load %arg3[%c32_338, %c1536_339] : memref<64x1920xf32, #tpu.memory_space<vmem>>, vector<32x64xf32>
    %489 = vector.shape_cast %487 : vector<2x8x32xf32> to vector<16x32xf32>
    %cst_340 = arith.constant dense<0.000000e+00> : vector<16x64xf32>
    %490 = tpu.matmul %489, %488, %cst_340 {dimension_numbers = #tpu.dot_dimension_numbers<[1], [0], [0], [1], [0, 0, 1, 1], [], []>} : vector<16x32xf32>, vector<32x64xf32>, vector<16x64xf32> -> vector<16x64xf32>
    %491 = arith.addf %473, %490 : vector<16x64xf32>
    %c21 = arith.constant 21 : index
    %c0_341 = arith.constant 0 : index
    %492 = vector.load %arg5[%c21, %c0_341] : memref<32x128xf32, #tpu.memory_space<vmem>>, vector<1x64xf32>
    %493 = vector.broadcast %492 : vector<1x64xf32> to vector<16x64xf32>
    %494 = arith.addf %491, %493 : vector<16x64xf32>
    %495 = arith.addf %436, %494 : vector<16x64xf32>
    %c22 = arith.constant 22 : index
    %c0_342 = arith.constant 0 : index
    %496 = vector.load %arg5[%c22, %c0_342] : memref<32x128xf32, #tpu.memory_space<vmem>>, vector<1x64xf32>
    %c23 = arith.constant 23 : index
    %c0_343 = arith.constant 0 : index
    %497 = vector.load %arg5[%c23, %c0_343] : memref<32x128xf32, #tpu.memory_space<vmem>>, vector<1x64xf32>
    %cst_344 = arith.constant dense<0.000000e+00> : vector<16xf32>
    %498 = vector.multi_reduction <add>, %495, %cst_344 [1] : vector<16x64xf32> to vector<16xf32>
    %499 = vector.shape_cast %498 : vector<16xf32> to vector<16x1xf32>
    %cst_345 = arith.constant 6.400000e+01 : f32
    %500 = vector.broadcast %cst_345 : f32 to vector<16x1xf32>
    %501 = arith.divf %499, %500 : vector<16x1xf32>
    %502 = vector.broadcast %501 : vector<16x1xf32> to vector<16x64xf32>
    %503 = arith.subf %495, %502 : vector<16x64xf32>
    %504 = arith.mulf %503, %503 : vector<16x64xf32>
    %cst_346 = arith.constant dense<0.000000e+00> : vector<16xf32>
    %505 = vector.multi_reduction <add>, %504, %cst_346 [1] : vector<16x64xf32> to vector<16xf32>
    %506 = vector.shape_cast %505 : vector<16xf32> to vector<16x1xf32>
    %cst_347 = arith.constant 6.400000e+01 : f32
    %507 = vector.broadcast %cst_347 : f32 to vector<16x1xf32>
    %508 = arith.divf %506, %507 : vector<16x1xf32>
    %509 = vector.broadcast %501 : vector<16x1xf32> to vector<16x64xf32>
    %510 = arith.subf %495, %509 : vector<16x64xf32>
    %cst_348 = arith.constant 9.99999974E-6 : f32
    %511 = vector.broadcast %cst_348 : f32 to vector<16x1xf32>
    %512 = arith.addf %508, %511 : vector<16x1xf32>
    %513 = math.rsqrt %512 : vector<16x1xf32>
    %514 = vector.broadcast %513 : vector<16x1xf32> to vector<16x64xf32>
    %515 = arith.mulf %510, %514 : vector<16x64xf32>
    %516 = vector.broadcast %496 : vector<1x64xf32> to vector<16x64xf32>
    %517 = arith.mulf %515, %516 : vector<16x64xf32>
    %518 = vector.broadcast %497 : vector<1x64xf32> to vector<16x64xf32>
    %519 = arith.addf %517, %518 : vector<16x64xf32>
    %c0_349 = arith.constant 0 : index
    %c1664 = arith.constant 1664 : index
    %520 = vector.load %arg3[%c0_349, %c1664] : memref<64x1920xf32, #tpu.memory_space<vmem>>, vector<64x128xf32>
    %cst_350 = arith.constant dense<0.000000e+00> : vector<16x128xf32>
    %521 = tpu.matmul %519, %520, %cst_350 {dimension_numbers = #tpu.dot_dimension_numbers<[1], [0], [0], [1], [0, 0, 1, 1], [], []>} : vector<16x64xf32>, vector<64x128xf32>, vector<16x128xf32> -> vector<16x128xf32>
    %c24 = arith.constant 24 : index
    %c0_351 = arith.constant 0 : index
    %522 = vector.load %arg5[%c24, %c0_351] : memref<32x128xf32, #tpu.memory_space<vmem>>, vector<1x128xf32>
    %523 = vector.broadcast %522 : vector<1x128xf32> to vector<16x128xf32>
    %524 = arith.addf %521, %523 : vector<16x128xf32>
    %cst_352 = arith.constant 0.000000e+00 : f32
    %525 = vector.broadcast %cst_352 : f32 to vector<16x128xf32>
    %526 = arith.maximumf %524, %525 : vector<16x128xf32>
    %c0_353 = arith.constant 0 : index
    %c128_354 = arith.constant 128 : index
    %527 = vector.load %arg4[%c0_353, %c128_354] : memref<128x256xf32, #tpu.memory_space<vmem>>, vector<128x64xf32>
    %cst_355 = arith.constant dense<0.000000e+00> : vector<16x64xf32>
    %528 = tpu.matmul %526, %527, %cst_355 {dimension_numbers = #tpu.dot_dimension_numbers<[1], [0], [0], [1], [0, 0, 1, 1], [], []>} : vector<16x128xf32>, vector<128x64xf32>, vector<16x64xf32> -> vector<16x64xf32>
    %c25 = arith.constant 25 : index
    %c0_356 = arith.constant 0 : index
    %529 = vector.load %arg5[%c25, %c0_356] : memref<32x128xf32, #tpu.memory_space<vmem>>, vector<1x64xf32>
    %530 = vector.broadcast %529 : vector<1x64xf32> to vector<16x64xf32>
    %531 = arith.addf %528, %530 : vector<16x64xf32>
    %532 = arith.addf %519, %531 : vector<16x64xf32>
    %c26 = arith.constant 26 : index
    %c0_357 = arith.constant 0 : index
    %533 = vector.load %arg5[%c26, %c0_357] : memref<32x128xf32, #tpu.memory_space<vmem>>, vector<1x64xf32>
    %c27 = arith.constant 27 : index
    %c0_358 = arith.constant 0 : index
    %534 = vector.load %arg5[%c27, %c0_358] : memref<32x128xf32, #tpu.memory_space<vmem>>, vector<1x64xf32>
    %cst_359 = arith.constant dense<0.000000e+00> : vector<16xf32>
    %535 = vector.multi_reduction <add>, %532, %cst_359 [1] : vector<16x64xf32> to vector<16xf32>
    %536 = vector.shape_cast %535 : vector<16xf32> to vector<16x1xf32>
    %cst_360 = arith.constant 6.400000e+01 : f32
    %537 = vector.broadcast %cst_360 : f32 to vector<16x1xf32>
    %538 = arith.divf %536, %537 : vector<16x1xf32>
    %539 = vector.broadcast %538 : vector<16x1xf32> to vector<16x64xf32>
    %540 = arith.subf %532, %539 : vector<16x64xf32>
    %541 = arith.mulf %540, %540 : vector<16x64xf32>
    %cst_361 = arith.constant dense<0.000000e+00> : vector<16xf32>
    %542 = vector.multi_reduction <add>, %541, %cst_361 [1] : vector<16x64xf32> to vector<16xf32>
    %543 = vector.shape_cast %542 : vector<16xf32> to vector<16x1xf32>
    %cst_362 = arith.constant 6.400000e+01 : f32
    %544 = vector.broadcast %cst_362 : f32 to vector<16x1xf32>
    %545 = arith.divf %543, %544 : vector<16x1xf32>
    %546 = vector.broadcast %538 : vector<16x1xf32> to vector<16x64xf32>
    %547 = arith.subf %532, %546 : vector<16x64xf32>
    %cst_363 = arith.constant 9.99999974E-6 : f32
    %548 = vector.broadcast %cst_363 : f32 to vector<16x1xf32>
    %549 = arith.addf %545, %548 : vector<16x1xf32>
    %550 = math.rsqrt %549 : vector<16x1xf32>
    %551 = vector.broadcast %550 : vector<16x1xf32> to vector<16x64xf32>
    %552 = arith.mulf %547, %551 : vector<16x64xf32>
    %553 = vector.broadcast %533 : vector<1x64xf32> to vector<16x64xf32>
    %554 = arith.mulf %552, %553 : vector<16x64xf32>
    %555 = vector.broadcast %534 : vector<1x64xf32> to vector<16x64xf32>
    %556 = arith.addf %554, %555 : vector<16x64xf32>
    %c28 = arith.constant 28 : index
    %c0_364 = arith.constant 0 : index
    %557 = vector.load %arg5[%c28, %c0_364] : memref<32x128xf32, #tpu.memory_space<vmem>>, vector<1x64xf32>
    %c29 = arith.constant 29 : index
    %c0_365 = arith.constant 0 : index
    %558 = vector.load %arg5[%c29, %c0_365] : memref<32x128xf32, #tpu.memory_space<vmem>>, vector<1x64xf32>
    %cst_366 = arith.constant dense<0.000000e+00> : vector<16xf32>
    %559 = vector.multi_reduction <add>, %556, %cst_366 [1] : vector<16x64xf32> to vector<16xf32>
    %560 = vector.shape_cast %559 : vector<16xf32> to vector<16x1xf32>
    %cst_367 = arith.constant 6.400000e+01 : f32
    %561 = vector.broadcast %cst_367 : f32 to vector<16x1xf32>
    %562 = arith.divf %560, %561 : vector<16x1xf32>
    %563 = vector.broadcast %562 : vector<16x1xf32> to vector<16x64xf32>
    %564 = arith.subf %556, %563 : vector<16x64xf32>
    %565 = arith.mulf %564, %564 : vector<16x64xf32>
    %cst_368 = arith.constant dense<0.000000e+00> : vector<16xf32>
    %566 = vector.multi_reduction <add>, %565, %cst_368 [1] : vector<16x64xf32> to vector<16xf32>
    %567 = vector.shape_cast %566 : vector<16xf32> to vector<16x1xf32>
    %cst_369 = arith.constant 6.400000e+01 : f32
    %568 = vector.broadcast %cst_369 : f32 to vector<16x1xf32>
    %569 = arith.divf %567, %568 : vector<16x1xf32>
    %570 = vector.broadcast %562 : vector<16x1xf32> to vector<16x64xf32>
    %571 = arith.subf %556, %570 : vector<16x64xf32>
    %cst_370 = arith.constant 9.99999974E-6 : f32
    %572 = vector.broadcast %cst_370 : f32 to vector<16x1xf32>
    %573 = arith.addf %569, %572 : vector<16x1xf32>
    %574 = math.rsqrt %573 : vector<16x1xf32>
    %575 = vector.broadcast %574 : vector<16x1xf32> to vector<16x64xf32>
    %576 = arith.mulf %571, %575 : vector<16x64xf32>
    %577 = vector.broadcast %557 : vector<1x64xf32> to vector<16x64xf32>
    %578 = arith.mulf %576, %577 : vector<16x64xf32>
    %579 = vector.broadcast %558 : vector<1x64xf32> to vector<16x64xf32>
    %580 = arith.addf %578, %579 : vector<16x64xf32>
    %c0_371 = arith.constant 0 : index
    %c1792 = arith.constant 1792 : index
    %581 = vector.load %arg3[%c0_371, %c1792] : memref<64x1920xf32, #tpu.memory_space<vmem>>, vector<64x128xf32>
    %cst_372 = arith.constant dense<0.000000e+00> : vector<16x128xf32>
    %582 = tpu.matmul %580, %581, %cst_372 {dimension_numbers = #tpu.dot_dimension_numbers<[1], [0], [0], [1], [0, 0, 1, 1], [], []>} : vector<16x64xf32>, vector<64x128xf32>, vector<16x128xf32> -> vector<16x128xf32>
    %c30 = arith.constant 30 : index
    %c0_373 = arith.constant 0 : index
    %583 = vector.load %arg5[%c30, %c0_373] : memref<32x128xf32, #tpu.memory_space<vmem>>, vector<1x128xf32>
    %584 = vector.broadcast %583 : vector<1x128xf32> to vector<16x128xf32>
    %585 = arith.addf %582, %584 : vector<16x128xf32>
    %586 = vector.extract_strided_slice %585 {offsets = [0, 0], sizes = [1, 60], strides = [1, 1]} : vector<16x128xf32> to vector<1x60xf32>
    %c0_374 = arith.constant 0 : index
    %c0_375 = arith.constant 0 : index
    %587 = vector.load %arg6[%c0_374, %c0_375] : memref<16x60xf32, #tpu.memory_space<vmem>>, vector<1x60xf32>
    tpu.vector_store %arg6[%c0_374, %c0_375], %586 {strides = array<i32>} : memref<16x60xf32, #tpu.memory_space<vmem>>, vector<1x60xf32>,
    %588 = vector.extract_strided_slice %585 {offsets = [1, 0], sizes = [1, 60], strides = [1, 1]} : vector<16x128xf32> to vector<1x60xf32>
    %c2_376 = arith.constant 2 : index
    %c0_377 = arith.constant 0 : index
    %589 = vector.load %arg6[%c2_376, %c0_377] : memref<16x60xf32, #tpu.memory_space<vmem>>, vector<1x60xf32>
    tpu.vector_store %arg6[%c2_376, %c0_377], %588 {strides = array<i32>} : memref<16x60xf32, #tpu.memory_space<vmem>>, vector<1x60xf32>,
    %590 = vector.extract_strided_slice %585 {offsets = [2, 0], sizes = [1, 60], strides = [1, 1]} : vector<16x128xf32> to vector<1x60xf32>
    %c4_378 = arith.constant 4 : index
    %c0_379 = arith.constant 0 : index
    %591 = vector.load %arg6[%c4_378, %c0_379] : memref<16x60xf32, #tpu.memory_space<vmem>>, vector<1x60xf32>
    tpu.vector_store %arg6[%c4_378, %c0_379], %590 {strides = array<i32>} : memref<16x60xf32, #tpu.memory_space<vmem>>, vector<1x60xf32>,
    %592 = vector.extract_strided_slice %585 {offsets = [3, 0], sizes = [1, 60], strides = [1, 1]} : vector<16x128xf32> to vector<1x60xf32>
    %c6_380 = arith.constant 6 : index
    %c0_381 = arith.constant 0 : index
    %593 = vector.load %arg6[%c6_380, %c0_381] : memref<16x60xf32, #tpu.memory_space<vmem>>, vector<1x60xf32>
    tpu.vector_store %arg6[%c6_380, %c0_381], %592 {strides = array<i32>} : memref<16x60xf32, #tpu.memory_space<vmem>>, vector<1x60xf32>,
    %594 = vector.extract_strided_slice %585 {offsets = [4, 0], sizes = [1, 60], strides = [1, 1]} : vector<16x128xf32> to vector<1x60xf32>
    %c8_382 = arith.constant 8 : index
    %c0_383 = arith.constant 0 : index
    %595 = vector.load %arg6[%c8_382, %c0_383] : memref<16x60xf32, #tpu.memory_space<vmem>>, vector<1x60xf32>
    tpu.vector_store %arg6[%c8_382, %c0_383], %594 {strides = array<i32>} : memref<16x60xf32, #tpu.memory_space<vmem>>, vector<1x60xf32>,
    %596 = vector.extract_strided_slice %585 {offsets = [5, 0], sizes = [1, 60], strides = [1, 1]} : vector<16x128xf32> to vector<1x60xf32>
    %c10_384 = arith.constant 10 : index
    %c0_385 = arith.constant 0 : index
    %597 = vector.load %arg6[%c10_384, %c0_385] : memref<16x60xf32, #tpu.memory_space<vmem>>, vector<1x60xf32>
    tpu.vector_store %arg6[%c10_384, %c0_385], %596 {strides = array<i32>} : memref<16x60xf32, #tpu.memory_space<vmem>>, vector<1x60xf32>,
    %598 = vector.extract_strided_slice %585 {offsets = [6, 0], sizes = [1, 60], strides = [1, 1]} : vector<16x128xf32> to vector<1x60xf32>
    %c12_386 = arith.constant 12 : index
    %c0_387 = arith.constant 0 : index
    %599 = vector.load %arg6[%c12_386, %c0_387] : memref<16x60xf32, #tpu.memory_space<vmem>>, vector<1x60xf32>
    tpu.vector_store %arg6[%c12_386, %c0_387], %598 {strides = array<i32>} : memref<16x60xf32, #tpu.memory_space<vmem>>, vector<1x60xf32>,
    %600 = vector.extract_strided_slice %585 {offsets = [7, 0], sizes = [1, 60], strides = [1, 1]} : vector<16x128xf32> to vector<1x60xf32>
    %c14_388 = arith.constant 14 : index
    %c0_389 = arith.constant 0 : index
    %601 = vector.load %arg6[%c14_388, %c0_389] : memref<16x60xf32, #tpu.memory_space<vmem>>, vector<1x60xf32>
    tpu.vector_store %arg6[%c14_388, %c0_389], %600 {strides = array<i32>} : memref<16x60xf32, #tpu.memory_space<vmem>>, vector<1x60xf32>,
    %602 = vector.extract_strided_slice %585 {offsets = [8, 0], sizes = [1, 60], strides = [1, 1]} : vector<16x128xf32> to vector<1x60xf32>
    %c1_390 = arith.constant 1 : index
    %c0_391 = arith.constant 0 : index
    %603 = vector.load %arg6[%c1_390, %c0_391] : memref<16x60xf32, #tpu.memory_space<vmem>>, vector<1x60xf32>
    tpu.vector_store %arg6[%c1_390, %c0_391], %602 {strides = array<i32>} : memref<16x60xf32, #tpu.memory_space<vmem>>, vector<1x60xf32>,
    %604 = vector.extract_strided_slice %585 {offsets = [9, 0], sizes = [1, 60], strides = [1, 1]} : vector<16x128xf32> to vector<1x60xf32>
    %c3_392 = arith.constant 3 : index
    %c0_393 = arith.constant 0 : index
    %605 = vector.load %arg6[%c3_392, %c0_393] : memref<16x60xf32, #tpu.memory_space<vmem>>, vector<1x60xf32>
    tpu.vector_store %arg6[%c3_392, %c0_393], %604 {strides = array<i32>} : memref<16x60xf32, #tpu.memory_space<vmem>>, vector<1x60xf32>,
    %606 = vector.extract_strided_slice %585 {offsets = [10, 0], sizes = [1, 60], strides = [1, 1]} : vector<16x128xf32> to vector<1x60xf32>
    %c5_394 = arith.constant 5 : index
    %c0_395 = arith.constant 0 : index
    %607 = vector.load %arg6[%c5_394, %c0_395] : memref<16x60xf32, #tpu.memory_space<vmem>>, vector<1x60xf32>
    tpu.vector_store %arg6[%c5_394, %c0_395], %606 {strides = array<i32>} : memref<16x60xf32, #tpu.memory_space<vmem>>, vector<1x60xf32>,
    %608 = vector.extract_strided_slice %585 {offsets = [11, 0], sizes = [1, 60], strides = [1, 1]} : vector<16x128xf32> to vector<1x60xf32>
    %c7_396 = arith.constant 7 : index
    %c0_397 = arith.constant 0 : index
    %609 = vector.load %arg6[%c7_396, %c0_397] : memref<16x60xf32, #tpu.memory_space<vmem>>, vector<1x60xf32>
    tpu.vector_store %arg6[%c7_396, %c0_397], %608 {strides = array<i32>} : memref<16x60xf32, #tpu.memory_space<vmem>>, vector<1x60xf32>,
    %610 = vector.extract_strided_slice %585 {offsets = [12, 0], sizes = [1, 60], strides = [1, 1]} : vector<16x128xf32> to vector<1x60xf32>
    %c9_398 = arith.constant 9 : index
    %c0_399 = arith.constant 0 : index
    %611 = vector.load %arg6[%c9_398, %c0_399] : memref<16x60xf32, #tpu.memory_space<vmem>>, vector<1x60xf32>
    tpu.vector_store %arg6[%c9_398, %c0_399], %610 {strides = array<i32>} : memref<16x60xf32, #tpu.memory_space<vmem>>, vector<1x60xf32>,
    %612 = vector.extract_strided_slice %585 {offsets = [13, 0], sizes = [1, 60], strides = [1, 1]} : vector<16x128xf32> to vector<1x60xf32>
    %c11_400 = arith.constant 11 : index
    %c0_401 = arith.constant 0 : index
    %613 = vector.load %arg6[%c11_400, %c0_401] : memref<16x60xf32, #tpu.memory_space<vmem>>, vector<1x60xf32>
    tpu.vector_store %arg6[%c11_400, %c0_401], %612 {strides = array<i32>} : memref<16x60xf32, #tpu.memory_space<vmem>>, vector<1x60xf32>,
    %614 = vector.extract_strided_slice %585 {offsets = [14, 0], sizes = [1, 60], strides = [1, 1]} : vector<16x128xf32> to vector<1x60xf32>
    %c13_402 = arith.constant 13 : index
    %c0_403 = arith.constant 0 : index
    %615 = vector.load %arg6[%c13_402, %c0_403] : memref<16x60xf32, #tpu.memory_space<vmem>>, vector<1x60xf32>
    tpu.vector_store %arg6[%c13_402, %c0_403], %614 {strides = array<i32>} : memref<16x60xf32, #tpu.memory_space<vmem>>, vector<1x60xf32>,
    %616 = vector.extract_strided_slice %585 {offsets = [15, 0], sizes = [1, 60], strides = [1, 1]} : vector<16x128xf32> to vector<1x60xf32>
    %c15_404 = arith.constant 15 : index
    %c0_405 = arith.constant 0 : index
    %617 = vector.load %arg6[%c15_404, %c0_405] : memref<16x60xf32, #tpu.memory_space<vmem>>, vector<1x60xf32>
    tpu.vector_store %arg6[%c15_404, %c0_405], %616 {strides = array<i32>} : memref<16x60xf32, #tpu.memory_space<vmem>>, vector<1x60xf32>,
    return
  }
}

</mosaic_0001>

<bundles_post_ra>
// kernel: transformer_forward.1
= control target key start
LH: loop header
LB: loop body
LE: loop exit
PB: predicated region body
PF: predicated region fallthrough
CT: control target
= control target key end

     0   :  { %11 = vsyncpa [#allocation7], 0  ;;  %s6704_s0 = inlined_call_operand.vmem [shape: s32[8,2], index: 0, kind: input, shape index: {}]   ;;  %s6705_s1 = inlined_call_operand.vmem [shape: s32[8,2], index: 1, kind: input, shape index: {}]   ;;  %s6706_s2 = inlined_call_operand.vmem [shape: f32[184,64], index: 2, kind: input, shape index: {}]   ;;  %s6707_s3 = inlined_call_operand.hbm [shape: f32[64,1920], index: 3, kind: input, shape index: {}]   ;;  %s6708_s4 = inlined_call_operand.vmem [shape: f32[128,256], index: 4, kind: input, shape index: {}]   ;;  %s6709_s5 = inlined_call_operand.vmem [shape: f32[32,128], index: 5, kind: input, shape index: {}]   ;;  %s6710_s6 = inlined_call_operand.hbm [shape: f32[16,60], index: 6, kind: output, shape index: {}]  }
   0x1   :  { %12 = vsyncpa [#allocation9], 0 }
   0x2   :  { %13 = vsyncpa [#allocation5], 0 }
   0x3   :  { %14 = vsyncpa [#allocation6], 0  ;;  %s21_s23 = sshll.u32 %s6704_s0, 4  ;;  %s31_s26 = sshll.u32 %s6705_s1, 4  ;;  %s22_s23 = int_to_ptr.vmem [resolvable:$true] %s21_s23  ;;  %s32_s26 = int_to_ptr.vmem [resolvable:$true] %s31_s26 }
   0x4   :  { %s5718_s27 = scalar_lea.vmem %s22_s23, 128  ;;  %p5723_p1 = scmp.lt.s32.totalorder %s22_s23, %s22_s23 }
   0x5   :  { %p5719_p0 = scmp.ne.s32.totalorder %s22_s23, %s5718_s27  ;;  %p5724_p2 = scmp.lt.s32.totalorder %s5718_s27, %s5718_s27 }
   0x7   :  { %p5725_p3 = por %p5724_p2, %p5723_p1 }
   0x9   :  { %p5726_p4 = pnand %p5725_p3, %p5719_p0 }
   0xb   :  { %5729 = shalt.err (!%p5726_p4)
}
   0xc   :  { %s5794_s28 = smov [#allocation4]   ;;  %s5730_s29 = scalar_lea.vmem %s32_s26, 128 }
   0xd   :  { %24 = dma.vmem_to_smem %s22_s23, 128, %s5794_s28, [#allocation7]  }
   0xe   :  { %p5731_p5 = scmp.ne.s32.totalorder %s32_s26, %s5730_s29  ;;  %p5735_p6 = scmp.lt.s32.totalorder %s32_s26, %s32_s26 }
   0xf   :  { %p5736_p7 = scmp.lt.s32.totalorder %s5730_s29, %s5730_s29 }
  0x11   :  { %p5737_p8 = por %p5736_p7, %p5735_p6 }
  0x13   :  { %p5738_p9 = pnand %p5737_p8, %p5731_p5 }
  0x15   :  { %5741 = shalt.err (!%p5738_p9)
}
  0x16   :  { %s5795_s0 = smov [#allocation8]   ;;  %s5796_s1 = smov [#allocation10]  }
  0x17   :  { %34 = dma.vmem_to_smem %s32_s26, 128, %s5795_s0, [#allocation9]  }
  0x18   :  { %s42_s30 = sshll.u32 %s5796_s1, 4  ;;  %s5742_s9 = scalar_lea.hbm %s6707_s3, 15360  ;;  %s43_s30 = int_to_ptr.vmem [resolvable:$true] %s42_s30 }
  0x19   :  { %p5743_p10 = scmp.ne.s32.totalorder %s6707_s3, %s5742_s9  ;;  %p5746_p11 = scmp.lt.u32.totalorder %s5742_s9, %s6707_s3 }
  0x1b   :  { %p5748_p12 = pnand %p5746_p11, %p5743_p10 }
  0x1d   :  { %5751 = shalt.err (!%p5748_p12)
}
  0x1e   :  { %s5752_s14 = scalar_lea.vmem %s43_s30, 15360  ;;  %p5757_p0 = scmp.lt.s32.totalorder %s43_s30, %s43_s30 }
  0x1f   :  { %p5753_p13 = scmp.ne.s32.totalorder %s43_s30, %s5752_s14  ;;  %p5758_p1 = scmp.lt.s32.totalorder %s5752_s14, %s5752_s14 }
  0x21   :  { %p5759_p2 = por %p5758_p1, %p5757_p0 }
  0x23   :  { %p5760_p3 = pnand %p5759_p2, %p5753_p13 }
  0x25   :  { %5763 = shalt.err (!%p5760_p3)
}
  0x26   :  { %s5797_s15 = smov 1920   ;;  %s5798_s16 = smov 120  }
  0x27   :  { %48 = dma.hbm_to_vmem [thread:$0]  %s6707_s3, 15360, %s43_s30, [#allocation5], %s5797_s15, %s5797_s15, %s5798_s16  }
  0x28   :  { %5786 = dma.done.wait [#allocation7], 128  }
  0x29   :  { %5787 = vsyncadd [#allocation7], 4294967168 }
  0x2a   :  { %5788 = dma.done.wait [#allocation9], 128  }
  0x2b   :  { %5789 = vsyncadd [#allocation9], 4294967168 }
  0x2c   :  { %5790 = dma.done.wait [#allocation5], 15360  }
  0x2d   :  { %5791 = vsyncadd [#allocation5], 4294951936 }
  0x2e   :  { %62 = sfence }
  0x2f   :  { %v274_v0 = vld [vmem:[#allocation10] sm:$0xff]  ;;  %v275_v1 = vld [vmem:[#allocation10 + $0x78] sm:$0xff]  ;;  %v369_v2 = vld [vmem:[#allocation10 + $0x8] sm:$0xff]  ;;  %s5858_s19 = sld [smem:[#allocation4]]  ;;  %vm68_vm0 = vcmask 516096   ;;  %s5910_s26 = sld [smem:[#allocation4 + $0x1]] }
  0x30   :  { %v5321_v3 = vpack.c.bf16 %v275_v1, %v274_v0  ;;  %v370_v4 = vld [vmem:[#allocation10 + $0x80] sm:$0xff]  ;;  %v276_v5 = vld [vmem:[#allocation10 + $0xf0] sm:$0xff]  ;;  %v277_v6 = vld [vmem:[#allocation10 + $0x168] sm:$0xff]  ;;  %s5860_s20 = sld [smem:[#allocation4 + $0x80]]  ;;  %s5919_s29 = sld [smem:[#allocation4 + $0x101]]  ;;  %vm287_vm1 = vcmask 523264  }
  0x31   :  { %v5337_v7 = vpack.c.bf16 %v370_v4, %v369_v2  ;;  %v5325_v8 = vpack.c.bf16 %v277_v6, %v276_v5  ;;  %v371_v9 = vld [vmem:[#allocation10 + $0xf8] sm:$0xff]  ;;  %v372_v10 = vld [vmem:[#allocation10 + $0x170] sm:$0xff]  ;;  %v278_v11 = vld [vmem:[#allocation10 + $0x1e0] sm:$0xff]  ;;  %s5862_s3 = sld [smem:[#allocation4 + $0x100]]  ;;  %s5931_s10 = sld [smem:[#allocation4 + $0x201]]  ;;  %vm5800_vm2 = vmmov 0  }
  0x32   :  { %5322 = vmatprep.subr.bf16.mxu0 %v5321_v3  ;;  %v5341_v12 = vpack.c.bf16 %v372_v10, %v371_v9  ;;  %v279_v13 = vld [vmem:[#allocation10 + $0x258] sm:$0xff]  ;;  %v373_v14 = vld [vmem:[#allocation10 + $0x1e8] sm:$0xff]  ;;  %v374_v15 = vld [vmem:[#allocation10 + $0x260] sm:$0xff]  ;;  %s5864_s21 = sld [smem:[#allocation4 + $0x180]]  ;;  %s5950_s24 = sld [smem:[#allocation4 + $0x301]]  ;;  %v5799_v10 = vmov 0.0  }
  0x33   :  { %5338 = vmatprep.subr.bf16.mxu1 %v5337_v7  ;;  %5324 = vmatpush3.bf16.msra.mxu0 %v5321_v3  ;;  %s5866_s22 = sld [smem:[#allocation4 + $0x200]]  ;;  %v5329_v16 = vpack.c.bf16 %v279_v13, %v278_v11  ;;  %v280_v17 = vld [vmem:[#allocation10 + $0x2d0] sm:$0xff]  ;;  %v281_v18 = vld [vmem:[#allocation10 + $0x348] sm:$0xff]  ;;  %v66_v19 = vld [vmem:[%s6706_s2 + $0x78] sm:$0x1]  ;;  %v5345_v20 = vpack.c.bf16 %v374_v15, %v373_v14  ;;  %vm547_vm3 = vcmask 261120  }
  0x34   :  { %5340 = vmatpush3.bf16.msra.mxu1 %v5337_v7  ;;  %5326 = vmatprep.subr.bf16.mxu0 %v5325_v8  ;;  %v375_v21 = vld [vmem:[#allocation10 + $0x2d8] sm:$0xff]  ;;  %v376_v22 = vld [vmem:[#allocation10 + $0x350] sm:$0xff]  ;;  %s5885_s9 = sld [smem:[#allocation4 + $0x280]]  ;;  %v5333_v29 = vpack.c.bf16 %v281_v18, %v280_v17  ;;  %v4497_v11 = vld [vmem:[%s6709_s5 + $0x1] ss:$0 sm:$0xff]  ;;  %s5801_s17 = smov 96  }
  0x35   :  { %5342 = vmatprep.subr.bf16.mxu1 %v5341_v12  ;;  %s64_s27 = scalar_lea.vmem %s6706_s2, %s5858_s19  ;;  %v73_v23 = vld [vmem:[%s6706_s2 + $0x79] sm:$0x1]  ;;  %v79_v25 = vld [vmem:[%s6706_s2 + $0x7a] sm:$0x1]  ;;  %v85_v28 = vld [vmem:[%s6706_s2 + $0x7b] sm:$0x1]  ;;  %v5349_v33 = vpack.c.bf16 %v376_v22, %v375_v21 }
  0x36   :  { %v65_v24 = vld [vmem:[%s64_s27] sm:$0x1]  ;;  %s71_s30 = scalar_lea.vmem %s6706_s2, %s5860_s20  ;;  %s5894_s15 = sld [smem:[#allocation4 + $0x300]]  ;;  %v91_v32 = vld [vmem:[%s6706_s2 + $0x7c] sm:$0x1]  ;;  %vm700_vm4 = vcmask 64512  }
  0x37   :  { %5328 = vmatpush3.bf16.msra.mxu0 %v5325_v8  ;;  %v67_v26 = vadd.f32 %v66_v19, %v65_v24  ;;  %v72_v27 = vld [vmem:[%s71_s30] sm:$0x1]  ;;  %s77_s12 = scalar_lea.vmem %s6706_s2, %s5862_s3  ;;  %s5903_s3 = sld [smem:[#allocation4 + $0x380]]  ;;  %v97_v39 = vld [vmem:[%s6706_s2 + $0x7d] sm:$0x1]  ;;  %v458_v24 = vld [vmem:[#allocation10 + $0x88] sm:$0xff] }
  0x38   :  { %5344 = vmatpush3.bf16.msra.mxu1 %v5341_v12  ;;  %5330 = vmatprep.subr.bf16.mxu0 %v5329_v16  ;;  %v74_v30 = vadd.f32 %v73_v23, %v72_v27  ;;  %v78_v31 = vld [vmem:[%s77_s12] sm:$0x1]  ;;  %s83_s18 = scalar_lea.vmem %s6706_s2, %s5864_s21  ;;  %s5913_s21 = sld [smem:[#allocation4 + $0x81]]  ;;  %v103_v40 = vld [vmem:[%s6706_s2 + $0x7e] sm:$0x1]  ;;  %v457_v23 = vld [vmem:[#allocation10 + $0x10] sm:$0xff] }
  0x39   :  { %5346 = vmatprep.subr.bf16.mxu1 %v5345_v20  ;;  %69 = vst.msk [vmem:[#allocation2] sm:$0x1] %vm68_vm0, %v67_v26  ;;  %v80_v34 = vadd.f32 %v79_v25, %v78_v31  ;;  %v84_v35 = vld [vmem:[%s83_s18] sm:$0x1]  ;;  %s89_s25 = scalar_lea.vmem %s6706_s2, %s5866_s22  ;;  %s5921_s22 = sld [smem:[#allocation4 + $0x181]]  ;;  %v5353_v26 = vpack.c.bf16 %v458_v24, %v457_v23  ;;  %v460_v27 = vld [vmem:[#allocation10 + $0x178] sm:$0xff] }
  0x3a   :  { %75 = vst.msk [vmem:[#allocation2 + $0x1] sm:$0x1] %vm68_vm0, %v74_v30  ;;  %v86_v36 = vadd.f32 %v85_v28, %v84_v35  ;;  %v90_v37 = vld [vmem:[%s89_s25] sm:$0x1]  ;;  %s95_s30 = scalar_lea.vmem %s6706_s2, %s5885_s9  ;;  %v109_v42 = vld [vmem:[%s6706_s2 + $0x7f] sm:$0x1]  ;;  %s169_s27 = scalar_lea.vmem %s6706_s2, %s5910_s26 }
  0x3b   :  { %5332 = vmatpush3.bf16.msra.mxu0 %v5329_v16  ;;  %81 = vst.msk [vmem:[#allocation2 + $0x2] sm:$0x1] %vm68_vm0, %v80_v34  ;;  %v92_v38 = vadd.f32 %v91_v32, %v90_v37  ;;  %v96_v41 = vld [vmem:[%s95_s30] sm:$0x1]  ;;  %s5941_s9 = sld [smem:[#allocation4 + $0x281]]  ;;  %s181_s16 = scalar_lea.vmem %s6706_s2, %s5919_s29  ;;  %v462_v30 = vld [vmem:[#allocation10 + $0x268] sm:$0xff] }
  0x3c   :  { %5348 = vmatpush3.bf16.msra.mxu1 %v5345_v20  ;;  %5334 = vmatprep.subr.bf16.mxu0 %v5333_v29  ;;  %87 = vst.msk [vmem:[#allocation2 + $0x3] sm:$0x1] %vm68_vm0, %v86_v36  ;;  %s101_s13 = scalar_lea.vmem %s6706_s2, %s5894_s15  ;;  %v98_v43 = vadd.f32 %v97_v39, %v96_v41  ;;  %v171_v45 = vld [vmem:[%s6706_s2 + $0x78] sm:$0x1]  ;;  %v177_v48 = vld [vmem:[%s6706_s2 + $0x79] sm:$0x1]  ;;  %s193_s25 = scalar_lea.vmem %s6706_s2, %s5931_s10 }
  0x3d   :  { %5350 = vmatprep.subr.bf16.mxu1 %v5349_v33  ;;  %93 = vst.msk [vmem:[#allocation2 + $0x4] sm:$0x1] %vm68_vm0, %v92_v38  ;;  %v102_v44 = vld [vmem:[%s101_s13] sm:$0x1]  ;;  %s107_s19 = scalar_lea.vmem %s6706_s2, %s5903_s3  ;;  %s5959_s3 = sld [smem:[#allocation4 + $0x381]]  ;;  %vm4357_vm5 = vcmask 483328  }
  0x3e   :  { %v104_v46 = vadd.f32 %v103_v40, %v102_v44  ;;  %v108_v47 = vld [vmem:[%s107_s19] sm:$0x1]  ;;  %99 = vst.msk [vmem:[#allocation2 + $0x5] sm:$0x1] %vm68_vm0, %v98_v43  ;;  %s175_s7 = scalar_lea.vmem %s6706_s2, %s5913_s21  ;;  %v183_v51 = vld [vmem:[%s6706_s2 + $0x7a] sm:$0x1]  ;;  %s205_s8 = scalar_lea.vmem %s6706_s2, %s5950_s24 }
  0x3f   :  { %5336 = vmatpush3.bf16.msra.mxu0 %v5333_v29  ;;  %v110_v49 = vadd.f32 %v109_v42, %v108_v47  ;;  %v170_v50 = vld [vmem:[%s169_s27] sm:$0x1]  ;;  %v189_v52 = vld [vmem:[%s6706_s2 + $0x7b] sm:$0x1]  ;;  %s187_s21 = scalar_lea.vmem %s6706_s2, %s5921_s22  ;;  %v195_v55 = vld [vmem:[%s6706_s2 + $0x7c] sm:$0x1] }
  0x40   :  { %5352 = vmatpush3.bf16.msra.mxu1 %v5349_v33  ;;  %105 = vst.msk [vmem:[#allocation2 + $0x6] sm:$0x1] %vm68_vm0, %v104_v46  ;;  %v172_v53 = vadd.f32 %v171_v45, %v170_v50  ;;  %v176_v54 = vld [vmem:[%s175_s7] sm:$0x1]  ;;  %v201_v59 = vld [vmem:[%s6706_s2 + $0x7d] sm:$0x1]  ;;  %5354 = vmatprep.subr.bf16.mxu0 %v5353_v26 }
  0x41   :  { %111 = vst.msk [vmem:[#allocation2 + $0x7] sm:$0x1] %vm68_vm0, %v110_v49  ;;  %v178_v56 = vadd.f32 %v177_v48, %v176_v54  ;;  %v182_v57 = vld [vmem:[%s181_s16] sm:$0x1]  ;;  %s199_s0 = scalar_lea.vmem %s6706_s2, %s5941_s9  ;;  %v207_v63 = vld [vmem:[%s6706_s2 + $0x7e] sm:$0x1]  ;;  %4894 = vmatprep.subr.mxu1 %v5799_v10 }
  0x42   :  { %v188_v58 = vld [vmem:[%s187_s21] sm:$0x1]  ;;  %173 = vst.msk [vmem:[#allocation2 + $0x8] sm:$0x1] %vm68_vm0, %v172_v53  ;;  %v184_v60 = vadd.f32 %v183_v51, %v182_v57  ;;  %v213_v2 = vld [vmem:[%s6706_s2 + $0x7f] sm:$0x1] }
  0x43   :  { %v190_v61 = vadd.f32 %v189_v52, %v188_v58  ;;  %v194_v62 = vld [vmem:[%s193_s25] sm:$0x1]  ;;  %179 = vst.msk [vmem:[#allocation2 + $0x9] sm:$0x1] %vm68_vm0, %v178_v56  ;;  %s211_s13 = scalar_lea.vmem %s6706_s2, %s5959_s3  ;;  %v461_v29 = vld [vmem:[#allocation10 + $0x1f0] sm:$0xff]  ;;  %v464_v33 = vld [vmem:[#allocation10 + $0x358] sm:$0xff] }
  0x44   :  { %v196_v0 = vadd.f32 %v195_v55, %v194_v62  ;;  %v200_v1 = vld [vmem:[%s199_s0] sm:$0x1]  ;;  %185 = vst.msk [vmem:[#allocation2 + $0xa] sm:$0x1] %vm68_vm0, %v184_v60  ;;  %v5361_v31 = vpack.c.bf16 %v462_v30, %v461_v29  ;;  %v4500_v55 = vld [vmem:[%s6709_s5 + $0x2] ss:$0 sm:$0xff] }
  0x45   :  { %191 = vst.msk [vmem:[#allocation2 + $0xb] sm:$0x1] %vm68_vm0, %v190_v61  ;;  %v202_v3 = vadd.f32 %v201_v59, %v200_v1  ;;  %v206_v4 = vld [vmem:[%s205_s8] sm:$0x1]  ;;  %s112_s23 = sld [smem:[#allocation8]]  ;;  %s6123_s1 = sld [smem:[#allocation8 + $0x1]] }
  0x46   :  { %197 = vst.msk [vmem:[#allocation2 + $0xc] sm:$0x1] %vm68_vm0, %v196_v0  ;;  %v208_v5 = vadd.f32 %v207_v63, %v206_v4  ;;  %v212_v6 = vld [vmem:[%s211_s13] sm:$0x1]  ;;  %s4456_s15 = sld [smem:[#allocation8 + $0x80]]  ;;  %s6125_s30 = sld [smem:[#allocation8 + $0x81]] }
  0x47   :  { %203 = vst.msk [vmem:[#allocation2 + $0xd] sm:$0x1] %vm68_vm0, %v202_v3  ;;  %v214_v7 = vadd.f32 %v213_v2, %v212_v6  ;;  %v4494_v12 = vld [vmem:[%s6709_s5] ss:$0 sm:$0xff]  ;;  %s4458_s25 = sld [smem:[#allocation8 + $0x100]]  ;;  %s6127_s10 = sld [smem:[#allocation8 + $0x101]] }
  0x48   :  { %209 = vst.msk [vmem:[#allocation2 + $0xe] sm:$0x1] %vm68_vm0, %v208_v5  ;;  %v6017_v8 = vld [vmem:[#allocation2] sm:$0xff]  ;;  %s4460_s27 = sld [smem:[#allocation8 + $0x180]]  ;;  %s6129_s7 = sld [smem:[#allocation8 + $0x181]]  ;;  %vm4359_vm6 = vcmask 484353  }
  0x49   :  { %215 = vst.msk [vmem:[#allocation2 + $0xf] sm:$0x1] %vm68_vm0, %v214_v7  ;;  %4853 = vmatprep.mubr.msk.f32.mxu0 %vm287_vm1, %v6017_v8  ;;  %4872 = vmatprep.mubr.msk.f32.mxu1 %vm287_vm1, %v6017_v8  ;;  %v459_v25 = vld [vmem:[#allocation10 + $0x100] sm:$0xff]  ;;  %s4462_s29 = sld [smem:[#allocation8 + $0x200]]  ;;  %s4488_s8 = sld [smem:[#allocation8 + $0x281]]  ;;  %vm4361_vm7 = vcmask 485378  }
  0x4a   :  { %v5357_v28 = vpack.c.bf16 %v460_v27, %v459_v25  ;;  %v463_v32 = vld [vmem:[#allocation10 + $0x2e0] sm:$0xff]  ;;  %v869_v27 = vld [vmem:[#allocation10 + $0x18] sm:$0xff]  ;;  %s6117_s22 = sld [smem:[#allocation8 + $0x280]]  ;;  %s4490_s11 = sld [smem:[#allocation8 + $0x301]]  ;;  %vm4363_vm8 = vcmask 486403   ;;  %vm4365_vm9 = vcmask 487428  }
  0x4b   :  { %v5365_v34 = vpack.c.bf16 %v464_v33, %v463_v32  ;;  %v872_v32 = vld [vmem:[#allocation10 + $0x180] sm:$0xff]  ;;  %s6119_s28 = sld [smem:[#allocation8 + $0x300]]  ;;  %s4408_s26 = scalar_lea.vmem %s6706_s2, %s112_s23  ;;  %vm4367_vm10 = vcmask 488453   ;;  %vm4369_vm11 = vcmask 489478   ;;  %vm4371_vm12 = vcmask 490503  }
  0x4c   :  { %s6121_s0 = sld [smem:[#allocation8 + $0x380]]  ;;  %s4410_s13 = scalar_lea.vmem %s6706_s2, %s4456_s15 }
  0x4d   :  { %s4412_s18 = scalar_lea.vmem %s6706_s2, %s4458_s25  ;;  %s4434_s12 = scalar_lea.vmem %s6706_s2, %s6125_s30 }
  0x4e   :  { %s4414_s20 = scalar_lea.vmem %s6706_s2, %s4460_s27  ;;  %s4436_s24 = scalar_lea.vmem %s6706_s2, %s6127_s10 }
  0x4f   :  { %s4492_s25 = sld [smem:[#allocation8 + $0x381]] }
  0x50   :  { %v6024_v9 = vld [vmem:[#allocation2 + $0x8] sm:$0xff]  ;;  %s4444_s10 = scalar_lea.vmem %s6706_s2, %s4490_s11  ;;  %s5802_s11 = smov [#allocation11]  }
  0x51   :  { %4854 = vmatmul.mubr.msk.f32.vlgmr.msra.gmra.mrb[0].mxu0 %vm287_vm1, %v6024_v9  ;;  %4873 = vmatmul.mubr.msk.f32.vlgmr.msra.gmra.mrb[0].mxu1 %vm287_vm1, %v6024_v9  ;;  %s4420_s14 = scalar_lea.vmem %s6706_s2, %s6119_s28  ;;  %s4432_s28 = scalar_lea.vmem %s6706_s2, %s6123_s1 }
  0x52   :  { %4891 = vmatprep.mubr.msk.f32.mxu0 %vm287_vm1, %v6017_v8  ;;  %4896 = vmatprep.mubr.msk.f32.mxu1 %vm5800_vm2, %v5799_v10 }
  0x53   :  { %5356 = vmatpush3.bf16.msra.mxu0 %v5353_v26 }
  0x54   :  { %5358 = vmatprep.subr.bf16.mxu0 %v5357_v28 }
  0x55   :  { %s4446_s21 = scalar_lea.vmem %s6706_s2, %s4492_s25 }
  0x57   :  { %5360 = vmatpush3.bf16.msra.mxu0 %v5357_v28  ;;  %v870_v28 = vld [vmem:[#allocation10 + $0x90] sm:$0xff] }
  0x58   :  { %5362 = vmatprep.subr.bf16.mxu0 %v5361_v31  ;;  %v5377_v33 = vpack.c.bf16 %v870_v28, %v869_v27  ;;  %v123_v28 = vld [vmem:[%s6706_s2 + $0x79] sm:$0x1] }
  0x5b   :  { %5364 = vmatpush3.bf16.msra.mxu0 %v5361_v31  ;;  %v871_v31 = vld [vmem:[#allocation10 + $0x108] sm:$0xff] }
  0x5c   :  { %5366 = vmatprep.subr.bf16.mxu0 %v5365_v34 }
  0x5f   :  { %5368 = vmatpush3.bf16.msra.mxu0 %v5365_v34 }
  0x60   :  { %4914 = vmatprep.subr.mxu0 %v5799_v10 }
  0x62   :  { %4892 = vmatmul.mubr.msk.f32.vlgmr.msra.gmra.mrb[2].mxu0 %vm287_vm1, %v6024_v9 }
  0x63   :  { %4916 = vmatprep.mubr.msk.f32.mxu0 %vm5800_vm2, %v5799_v10 }
 0x124   :  { %v4855_v13 = vpop.f32.mrb[0].mxu0  ;;  %v4874_v14 = vpop.f32.mrb[0].mxu1 }
 0x125   :  { %v454_v15 = vadd.f32 %v4874_v14, %v4497_v11  ;;  %v360_v16 = vpop.f32.mrb[1].mxu0  ;;  %v448_v17 = vpop.f32.mrb[1].mxu1  ;;  %v366_v21 = vadd.f32 %v4855_v13, %v4494_v12 }
 0x126   :  { %v361_v18 = vadd.f32 %v4494_v12, %v360_v16  ;;  %v449_v19 = vadd.f32 %v4497_v11, %v448_v17 }
 0x127   :  { %953 = vrot.lane.b32.xlu1 %v454_v15, %s5801_s17  ;;  %v546_v22 = vmul.f32 0.17677669, %v366_v21 }
 0x128   :  { %v545_v20 = vmul.f32 0.17677669, %v361_v18  ;;  %4895 = vmatpush3.xpose.msk.msra.mxu1 %vm547_vm3, %v449_v19 }
 0x129   :  { %4899 = vmatprep.subr.mxu1 %v5799_v10 }
 0x12b   :  { %873 = vrot.lane.b32.xlu1 %v545_v20, %s5801_s17  ;;  %4897 = vmatmul.mubr.msk.f32.vlgmr.msra.gmra.mrb[2].mxu1 %vm547_vm3, %v545_v20 }
 0x12c   :  { %4900 = vmatpush3.xpose.msk.msra.mxu1 %vm547_vm3, %v454_v15  ;;  %4901 = vmatprep.mubr.msk.f32.mxu1 %vm5800_vm2, %v5799_v10 }
 0x12d   :  { %4904 = vmatprep.subr.mxu1 %v5799_v10 }
 0x12f   :  { %4902 = vmatmul.mubr.msk.f32.vlgmr.msra.gmra.mrb[4].mxu1 %vm547_vm3, %v546_v22 }
 0x130   :  { %4906 = vmatprep.mubr.msk.f32.mxu1 %vm5800_vm2, %v5799_v10 }
 0x135   :  { %v4893_v54 = vpop.f32.mrb[2].mxu0 }
 0x136   :  { %v536_v56 = vpop.f32.mrb[3].mxu0  ;;  %v542_v57 = vadd.f32 %v4893_v54, %v4500_v55 }
 0x137   :  { %v537_v58 = vadd.f32 %v4500_v55, %v536_v56 }
 0x139   :  { %4905 = vmatpush3.msra.mxu1 %v537_v58 }
 0x13a   :  { %4909 = vmatprep.subr.mxu1 %v5799_v10 }
 0x199   :  { %v954_v45 = vpop.permute.xlu1 %953 }
 0x19d   :  { %v874_v49 = vpop.permute.xlu1 %873 }
 0x1fe   :  { %v620_v35 = vpop.f32.mrb[2].mxu1 }
 0x1ff   :  { %v4898_v36 = vpop.f32.mrb[3].mxu1  ;;  %v701_v37 = vsel %vm700_vm4, %v620_v35, -inf }
 0x200   :  { %702 = vmax.xlane.f32.xlu0 %v701_v37  ;;  %v5381_v36 = vpack.c.bf16 %v872_v32, %v871_v31  ;;  %v130_v31 = vld [vmem:[%s6706_s2 + $0x7a] sm:$0x1]  ;;  %v4461_v32 = vld [vmem:[%s4414_s20 + $0x38] sm:$0x1]  ;;  %s4422_s20 = scalar_lea.vmem %s6706_s2, %s6121_s0 }
 0x202   :  { %v696_v38 = vpop.f32.mrb[4].mxu1 }
 0x203   :  { %v4903_v39 = vpop.f32.mrb[5].mxu1  ;;  %v704_v40 = vsel %vm700_vm4, %v696_v38, -inf }
 0x204   :  { %705 = vmax.xlane.f32.xlu0 %v704_v40  ;;  %v1205_v39 = vld [vmem:[#allocation10 + $0x1f8] sm:$0xff]  ;;  %v1206_v40 = vld [vmem:[#allocation10 + $0x270] sm:$0xff] }
 0x21a   :  { %875 = vrot.lane.b32.xlu0 %v449_v19, %s5801_s17 }
 0x28d   :  { %v703_v41 = vpop.xlane.xlu0 %702 }
 0x28e   :  { %v707_v42 = vsub.f32 %v620_v35, %v703_v41  ;;  %v5369_v41 = vpack.c.bf16 %v1206_v40, %v1205_v39  ;;  %v151_v40 = vld [vmem:[%s6706_s2 + $0x7d] sm:$0x1] }
 0x290   :  { %v709_v43 = vmul.f32 1.442695, %v707_v42  ;;  %v1207_v42 = vld [vmem:[#allocation10 + $0x2e8] sm:$0xff] }
 0x291   :  { %v706_v44 = vpop.xlane.xlu0 %705 }
 0x292   :  { %5642 = vpow2.f32 %v709_v43  ;;  %v708_v46 = vsub.f32 %v696_v38, %v706_v44  ;;  %v1208_v43 = vld [vmem:[#allocation10 + $0x360] sm:$0xff] }
 0x293   :  { %v5373_v44 = vpack.c.bf16 %v1208_v43, %v1207_v42  ;;  %v158_v43 = vld [vmem:[%s6706_s2 + $0x7e] sm:$0x1] }
 0x294   :  { %v711_v47 = vmul.f32 1.442695, %v708_v46 }
 0x295   :  { %v876_v48 = vpop.permute.xlu0 %875 }
 0x296   :  { %5644 = vpow2.f32 %v711_v47  ;;  %4915 = vmatpush3.xpose.msk.msra.mxu0 %vm547_vm3, %v876_v48 }
 0x297   :  { %4924 = vmatprep.subr.mxu0 %v5799_v10 }
 0x299   :  { %4917 = vmatmul.mubr.msk.f32.vlgmr.msra.gmra.mrb[4].mxu0 %vm547_vm3, %v874_v49 }
 0x29a   :  { %4926 = vmatprep.mubr.msk.f32.mxu0 %vm5800_vm2, %v5799_v10 }
 0x29c   :  { %v5643_v50 = vpop.eup %5642 }
 0x29d   :  { %v713_v51 = vsel %vm700_vm4, %v5643_v50, 0.0 }
 0x29e   :  { %714 = vadd.xlane.f32.xlu1 %v713_v51 }
 0x2a0   :  { %v5645_v52 = vpop.eup %5644 }
 0x2a1   :  { %v716_v53 = vsel %vm700_vm4, %v5645_v52, 0.0 }
 0x2a2   :  { %717 = vadd.xlane.f32.xlu1 %v716_v53 }
 0x2b3   :  { %951 = vrot.lane.b32.xlu1 %v546_v22, %s5801_s17 }
 0x32b   :  { %v715_v59 = vpop.xlane.xlu1 %714 }
 0x32c   :  { %5646 = vrcp.f32 %v715_v59 }
 0x32f   :  { %v718_v60 = vpop.xlane.xlu1 %717 }
 0x330   :  { %5648 = vrcp.f32 %v718_v60 }
 0x333   :  { %v952_v1 = vpop.permute.xlu1 %951 }
 0x336   :  { %v5647_v61 = vpop.eup %5646 }
 0x337   :  { %v720_v62 = vmul.f32 %v5647_v61, %v5643_v50 }
 0x339   :  { %4907 = vmatmul.mubr.msk.f32.vlgmr.msra.gmra.mrb[6].mxu1 %vm700_vm4, %v720_v62 }
 0x33a   :  { %v5649_v63 = vpop.eup %5648  ;;  %4910 = vmatpush3.msra.mxu1 %v542_v57  ;;  %4911 = vmatprep.mubr.msk.f32.mxu1 %vm5800_vm2, %v5799_v10 }
 0x33b   :  { %v722_v0 = vmul.f32 %v5649_v63, %v5645_v52  ;;  %4919 = vmatprep.subr.mxu1 %v5799_v10  ;;  %v4519_v52 = vld [vmem:[%s6709_s5 + $0x3] ss:$0 sm:$0xff] }
 0x33d   :  { %4912 = vmatmul.mubr.msk.f32.vlgmr.msra.gmra.mrb[8].mxu1 %vm700_vm4, %v722_v0 }
 0x33e   :  { %4921 = vmatprep.mubr.msk.f32.mxu1 %vm5800_vm2, %v5799_v10 }
 0x341   :  { %4920 = vmatpush3.xpose.msk.msra.mxu1 %vm547_vm3, %v954_v45 }
 0x342   :  { %4929 = vmatprep.subr.mxu1 %v5799_v10 }
 0x344   :  { %4922 = vmatmul.mubr.msk.f32.vlgmr.msra.gmra.mrb[10].mxu1 %vm547_vm3, %v952_v1 }
 0x345   :  { %4931 = vmatprep.mubr.msk.f32.mxu1 %vm5800_vm2, %v5799_v10 }
 0x36c   :  { %v947_v2 = vpop.f32.mrb[4].mxu0 }
 0x36d   :  { %v4918_v3 = vpop.f32.mrb[5].mxu0  ;;  %v1029_v4 = vsel %vm700_vm4, %v947_v2, -inf }
 0x36e   :  { %1030 = vmax.xlane.f32.xlu0 %v1029_v4 }
 0x3fb   :  { %v1031_v5 = vpop.xlane.xlu0 %1030 }
 0x3fc   :  { %v1035_v6 = vsub.f32 %v947_v2, %v1031_v5 }
 0x3fe   :  { %v1037_v7 = vmul.f32 1.442695, %v1035_v6  ;;  %v1421_v6 = vld [vmem:[#allocation10 + $0x20] sm:$0xff] }
 0x400   :  { %5650 = vpow2.f32 %v1037_v7  ;;  %v1422_v7 = vld [vmem:[#allocation10 + $0x98] sm:$0xff] }
 0x40a   :  { %v5651_v11 = vpop.eup %5650 }
 0x40b   :  { %v1041_v12 = vsel %vm700_vm4, %v5651_v11, 0.0 }
 0x40c   :  { %1042 = vadd.xlane.f32.xlu0 %v1041_v12  ;;  %v792_v13 = vpop.f32.mrb[6].mxu1  ;;  %v1423_v12 = vld [vmem:[#allocation10 + $0x110] sm:$0xff] }
 0x40d   :  { %v4908_v14 = vpop.f32.mrb[7].mxu1 }
 0x410   :  { %v865_v15 = vpop.f32.mrb[8].mxu1 }
 0x411   :  { %v4913_v16 = vpop.f32.mrb[9].mxu1 }
 0x412   :  { %v1426_v16 = vld [vmem:[#allocation10 + $0x278] sm:$0xff] }
 0x417   :  { %v1025_v17 = vpop.f32.mrb[10].mxu1 }
 0x418   :  { %v4923_v18 = vpop.f32.mrb[11].mxu1  ;;  %v1032_v19 = vsel %vm700_vm4, %v1025_v17, -inf }
 0x419   :  { %1033 = vmax.xlane.f32.xlu1 %v1032_v19  ;;  %v1427_v18 = vld [vmem:[#allocation10 + $0x2f0] sm:$0xff]  ;;  %v1428_v19 = vld [vmem:[#allocation10 + $0x368] sm:$0xff] }
 0x42a   :  { %1129 = vrot.lane.b32.xlu1 %v542_v57, %s5801_s17 }
 0x499   :  { %v1043_v26 = vpop.xlane.xlu0 %1042 }
 0x4a6   :  { %v1034_v20 = vpop.xlane.xlu1 %1033 }
 0x4a7   :  { %v1036_v21 = vsub.f32 %v1025_v17, %v1034_v20  ;;  %v5397_v20 = vpack.c.bf16 %v1428_v19, %v1427_v18  ;;  %v1522_v18 = vld [vmem:[%s6708_s4 + $0x50] sm:$0xff] }
 0x4a9   :  { %v1039_v22 = vmul.f32 1.442695, %v1036_v21  ;;  %v1697_v21 = vld [vmem:[#allocation10 + $0x28] sm:$0xff] }
 0x4aa   :  { %v1130_v23 = vpop.permute.xlu1 %1129 }
 0x4ab   :  { %5652 = vpow2.f32 %v1039_v22  ;;  %4930 = vmatpush3.msra.mxu1 %v1130_v23  ;;  %v1698_v22 = vld [vmem:[#allocation10 + $0xa0] sm:$0xff] }
 0x4ac   :  { %5654 = vrcp.f32 %v1043_v26  ;;  %5370 = vmatprep.subr.bf16.mxu1 %v5369_v41  ;;  %v6114_v23 = vpack.c.bf16 %v1698_v22, %v1697_v21  ;;  %v4457_v26 = vld [vmem:[%s4410_s13 + $0x38] sm:$0x1]  ;;  %s4418_s13 = scalar_lea.vmem %s6706_s2, %s6117_s22  ;;  %v1524_v21 = vld [vmem:[%s6708_s4 + $0x70] sm:$0xff] }
 0x4ad   :  { %v4465_v39 = vld [vmem:[%s4418_s13 + $0x38] sm:$0x1]  ;;  %s4442_s13 = scalar_lea.vmem %s6706_s2, %s4488_s8 }
 0x4ae   :  { %v152_v42 = vadd.f32 %v4465_v39, %v151_v40  ;;  %v4520_v40 = vld [vmem:[%s6709_s5 + $0x4] ss:$0 sm:$0xff] }
 0x4b0   :  { %153 = vst.msk [vmem:[#allocation3 + $0x5] sm:$0x1] %vm68_vm0, %v152_v42 }
 0x4b5   :  { %v5653_v24 = vpop.eup %5652 }
 0x4b6   :  { %v1044_v25 = vsel %vm700_vm4, %v5653_v24, 0.0  ;;  %v5655_v30 = vpop.eup %5654 }
 0x4b7   :  { %1045 = vadd.xlane.f32.xlu0 %v1044_v25  ;;  %v1048_v34 = vmul.f32 %v5655_v30, %v5651_v11  ;;  %v5385_v11 = vpack.c.bf16 %v1422_v7, %v1421_v6  ;;  %v116_v25 = vld [vmem:[%s6706_s2 + $0x78] sm:$0x1] }
 0x4b8   :  { %v4459_v30 = vld [vmem:[%s4412_s18 + $0x38] sm:$0x1] }
 0x4b9   :  { %v4493_v6 = vld [vmem:[%s4446_s21 + $0x38] sm:$0x1] }
 0x4cd   :  { %1052 = vrot.lane.b32.xlu0 %v537_v58, %s5801_s17 }
 0x544   :  { %v1046_v29 = vpop.xlane.xlu0 %1045 }
 0x545   :  { %5656 = vrcp.f32 %v1046_v29  ;;  %v124_v29 = vadd.f32 %v4457_v26, %v123_v28  ;;  %v1528_v28 = vld [vmem:[%s6708_s4 + $0xb0] sm:$0xff] }
 0x547   :  { %125 = vst.msk [vmem:[#allocation3 + $0x1] sm:$0x1] %vm68_vm0, %v124_v29 }
 0x548   :  { %v1053_v35 = vpop.permute.xlu0 %1052 }
 0x549   :  { %4925 = vmatpush3.msra.mxu0 %v1053_v35 }
 0x54a   :  { %4927 = vmatmul.mubr.msk.f32.vlgmr.msra.gmra.mrb[6].mxu0 %vm700_vm4, %v1048_v34  ;;  %5378 = vmatprep.subr.bf16.mxu0 %v5377_v33  ;;  %v137_v34 = vld [vmem:[%s6706_s2 + $0x7b] sm:$0x1] }
 0x54b   :  { %5380 = vmatpush3.bf16.msra.mxu0 %v5377_v33  ;;  %4953 = vmatprep.mubr.msk.f32.mxu0 %vm547_vm3, %v792_v13  ;;  %v1424_v13 = vld [vmem:[#allocation10 + $0x188] sm:$0xff]  ;;  %v131_v33 = vadd.f32 %v4459_v30, %v130_v31  ;;  %v1529_v30 = vld [vmem:[%s6708_s4 + $0xc0] sm:$0xff]  ;;  %v1530_v31 = vld [vmem:[%s6708_s4 + $0xd0] sm:$0xff] }
 0x54c   :  { %5382 = vmatprep.subr.bf16.mxu0 %v5381_v36  ;;  %v5389_v14 = vpack.c.bf16 %v1424_v13, %v1423_v12  ;;  %v1518_v12 = vld [vmem:[%s6708_s4 + $0x10] sm:$0xff] }
 0x54d   :  { %132 = vst.msk [vmem:[#allocation3 + $0x2] sm:$0x1] %vm68_vm0, %v131_v33 }
 0x54f   :  { %v5657_v37 = vpop.eup %5656  ;;  %5384 = vmatpush3.bf16.msra.mxu0 %v5381_v36  ;;  %v144_v36 = vld [vmem:[%s6706_s2 + $0x7c] sm:$0x1] }
 0x550   :  { %v1050_v38 = vmul.f32 %v5657_v37, %v5653_v24  ;;  %v4455_v24 = vld [vmem:[%s4408_s26 + $0x38] sm:$0x1]  ;;  %s4416_s26 = scalar_lea.vmem %s6706_s2, %s4462_s29  ;;  %v138_v37 = vadd.f32 %v4461_v32, %v137_v34  ;;  %s4438_s29 = scalar_lea.vmem %s6706_s2, %s6129_s7  ;;  %v5425_v32 = vpack.c.bf16 %v1530_v31, %v1529_v30 }
 0x551   :  { %v117_v27 = vadd.f32 %v4455_v24, %v116_v25  ;;  %v4463_v35 = vld [vmem:[%s4416_s26 + $0x38] sm:$0x1]  ;;  %v1525_v24 = vld [vmem:[%s6708_s4 + $0x80] sm:$0xff]  ;;  %v1526_v25 = vld [vmem:[%s6708_s4 + $0x90] sm:$0xff]  ;;  %s4386_s26 = sshll.u32 %s5802_s11, 4  ;;  %s6669_s26 = int_to_ptr.vmem [resolvable:$true] %s4386_s26 }
 0x552   :  { %4932 = vmatmul.mubr.msk.f32.vlgmr.msra.gmra.mrb[12].mxu1 %vm700_vm4, %v1050_v38  ;;  %4954 = vmatmul.mubr.msk.f32.vlgmr.msra.gmra.mrb[8].mxu0 %vm547_vm3, %v865_v15  ;;  %v1425_v15 = vld [vmem:[#allocation10 + $0x200] sm:$0xff]  ;;  %v145_v38 = vadd.f32 %v4463_v35, %v144_v36  ;;  %139 = vst.msk [vmem:[#allocation3 + $0x3] sm:$0x1] %vm68_vm0, %v138_v37  ;;  %v5417_v26 = vpack.c.bf16 %v1526_v25, %v1525_v24  ;;  %v1879_v31 = vld [vmem:[#allocation10 + $0x38] sm:$0xff]  ;;  %p5769_p5 = scmp.lt.s32.totalorder %s6669_s26, %s6669_s26 }
 0x553   :  { %5372 = vmatpush3.bf16.msra.mxu1 %v5369_v41  ;;  %v5393_v17 = vpack.c.bf16 %v1426_v16, %v1425_v15  ;;  %118 = vst.msk [vmem:[#allocation3] sm:$0x1] %vm68_vm0, %v117_v27  ;;  %v4467_v41 = vld [vmem:[%s4420_s14 + $0x38] sm:$0x1]  ;;  %s6198_s14 = sld [smem:[#allocation8 + $0x201]]  ;;  %v1520_v15 = vld [vmem:[%s6708_s4 + $0x30] sm:$0xff] }
 0x554   :  { %5374 = vmatprep.subr.bf16.mxu1 %v5373_v44  ;;  %146 = vst.msk [vmem:[#allocation3 + $0x4] sm:$0x1] %vm68_vm0, %v145_v38  ;;  %v1527_v27 = vld [vmem:[%s6708_s4 + $0xa0] sm:$0xff] }
 0x555   :  { %v5421_v29 = vpack.c.bf16 %v1528_v28, %v1527_v27 }
 0x557   :  { %5376 = vmatpush3.bf16.msra.mxu1 %v5373_v44  ;;  %v159_v44 = vadd.f32 %v4467_v41, %v158_v43 }
 0x558   :  { %5386 = vmatprep.subr.bf16.mxu1 %v5385_v11 }
 0x559   :  { %160 = vst.msk [vmem:[#allocation3 + $0x6] sm:$0x1] %vm68_vm0, %v159_v44  ;;  %v4521_v44 = vld [vmem:[%s6709_s5 + $0x5] ss:$0 sm:$0xff] }
 0x61d   :  { %v1124_v45 = vpop.f32.mrb[6].mxu0 }
 0x61e   :  { %v4928_v46 = vpop.f32.mrb[7].mxu0  ;;  %4942 = vmatprep.mubr.msk.f32.mxu1 %vm547_vm3, %v1124_v45  ;;  %v4469_v45 = vld [vmem:[%s4422_s20 + $0x38] sm:$0x1] }
 0x61f   :  { %v165_v46 = vld [vmem:[%s6706_s2 + $0x7f] sm:$0x1] }
 0x625   :  { %v1201_v47 = vpop.f32.mrb[12].mxu1  ;;  %v4955_v48 = vpop.f32.mrb[8].mxu0 }
 0x626   :  { %v4933_v49 = vpop.f32.mrb[13].mxu1  ;;  %4943 = vmatmul.mubr.msk.f32.vlgmr.msra.gmra.mrb[14].mxu1 %vm547_vm3, %v1201_v47  ;;  %v1362_v50 = vpop.f32.mrb[9].mxu0  ;;  %v4479_v47 = vld [vmem:[%s4432_s28 + $0x38] sm:$0x1] }
 0x627   :  { %5388 = vmatpush3.bf16.msra.mxu1 %v5385_v11  ;;  %v220_v49 = vld [vmem:[%s6706_s2 + $0x78] sm:$0x1]  ;;  %v1517_v11 = vld [vmem:[%s6708_s4] sm:$0xff] }
 0x628   :  { %5390 = vmatprep.subr.bf16.mxu1 %v5389_v14  ;;  %v5401_v13 = vpack.c.bf16 %v1518_v12, %v1517_v11  ;;  %v4522_v11 = vld [vmem:[%s6709_s5 + $0x6] ss:$0 sm:$0xff] }
 0x62a   :  { %5402 = vmatprep.subr.bf16.mxu0 %v5401_v13 }
 0x62b   :  { %5392 = vmatpush3.bf16.msra.mxu1 %v5389_v14  ;;  %v1519_v14 = vld [vmem:[%s6708_s4 + $0x20] sm:$0xff]  ;;  %5404 = vmatpush3.bf16.msra.mxu0 %v5401_v13 }
 0x62c   :  { %5394 = vmatprep.subr.bf16.mxu1 %v5393_v17  ;;  %v5405_v16 = vpack.c.bf16 %v1520_v15, %v1519_v14 }
 0x62e   :  { %5406 = vmatprep.subr.bf16.mxu0 %v5405_v16 }
 0x62f   :  { %5396 = vmatpush3.bf16.msra.mxu1 %v5393_v17  ;;  %v1521_v17 = vld [vmem:[%s6708_s4 + $0x40] sm:$0xff]  ;;  %5408 = vmatpush3.bf16.msra.mxu0 %v5405_v16 }
 0x630   :  { %5398 = vmatprep.subr.bf16.mxu1 %v5397_v20  ;;  %v5409_v19 = vpack.c.bf16 %v1522_v18, %v1521_v17 }
 0x632   :  { %5410 = vmatprep.subr.bf16.mxu0 %v5409_v19 }
 0x633   :  { %5400 = vmatpush3.bf16.msra.mxu1 %v5397_v20  ;;  %v1523_v20 = vld [vmem:[%s6708_s4 + $0x60] sm:$0xff]  ;;  %5412 = vmatpush3.bf16.msra.mxu0 %v5409_v19 }
 0x634   :  { %5434 = vmatprep.subr.bf16.mxu1 %v6114_v23  ;;  %v5413_v22 = vpack.c.bf16 %v1524_v21, %v1523_v20  ;;  %v4530_v20 = vld [vmem:[%s6709_s5 + $0xc] ss:$0 sm:$0xff]  ;;  %v4533_v21 = vld [vmem:[%s6709_s5 + $0xd] ss:$0 sm:$0xff] }
 0x636   :  { %5414 = vmatprep.subr.bf16.mxu0 %v5413_v22 }
 0x637   :  { %5416 = vmatpush3.bf16.msra.mxu0 %v5413_v22 }
 0x638   :  { %5418 = vmatprep.subr.bf16.mxu0 %v5417_v26 }
 0x63b   :  { %5420 = vmatpush3.bf16.msra.mxu0 %v5417_v26 }
 0x63c   :  { %5422 = vmatprep.subr.bf16.mxu0 %v5421_v29 }
 0x63f   :  { %5424 = vmatpush3.bf16.msra.mxu0 %v5421_v29 }
 0x640   :  { %5426 = vmatprep.subr.bf16.mxu0 %v5425_v32 }
 0x643   :  { %5428 = vmatpush3.bf16.msra.mxu0 %v5425_v32  ;;  %v1880_v32 = vld [vmem:[#allocation10 + $0xb0] sm:$0xff] }
 0x6f9   :  { %v4944_v51 = vpop.f32.mrb[14].mxu1 }
 0x6fa   :  { %v1368_v53 = vadd.f32 %v4955_v48, %v4944_v51  ;;  %v1281_v54 = vpop.f32.mrb[15].mxu1  ;;  %v166_v48 = vadd.f32 %v4469_v45, %v165_v46  ;;  %v227_v51 = vld [vmem:[%s6706_s2 + $0x79] sm:$0x1] }
 0x6fb   :  { %v1363_v55 = vadd.f32 %v1362_v50, %v1281_v54  ;;  %v4481_v50 = vld [vmem:[%s4434_s12 + $0x38] sm:$0x1]  ;;  %s4440_s12 = scalar_lea.vmem %s6706_s2, %s6198_s14 }
 0x6fc   :  { %v1377_v56 = vadd.f32 %v4519_v52, %v1368_v53  ;;  %v228_v53 = vadd.f32 %v4481_v50, %v227_v51  ;;  %v4483_v54 = vld [vmem:[%s4436_s24 + $0x38] sm:$0x1]  ;;  %167 = vst.msk [vmem:[#allocation3 + $0x7] sm:$0x1] %vm68_vm0, %v166_v48  ;;  %v1700_v48 = vld [vmem:[#allocation10 + $0x190] sm:$0xff] }
 0x6fd   :  { %v1376_v57 = vadd.f32 %v4519_v52, %v1363_v55  ;;  %v221_v52 = vadd.f32 %v4479_v47, %v220_v49  ;;  %v234_v55 = vld [vmem:[%s6706_s2 + $0x7a] sm:$0x1] }
 0x6fe   :  { %v1379_v58 = vadd.f32 %v1377_v56, %v6024_v9  ;;  %v4485_v56 = vld [vmem:[%s4438_s29 + $0x38] sm:$0x1]  ;;  %229 = vst.msk [vmem:[#allocation3 + $0x9] sm:$0x1] %vm68_vm0, %v228_v53 }
 0x6ff   :  { %v1378_v59 = vadd.f32 %v1376_v57, %v6017_v8  ;;  %v235_v57 = vadd.f32 %v4483_v54, %v234_v55  ;;  %222 = vst.msk [vmem:[#allocation3 + $0x8] sm:$0x1] %vm68_vm0, %v221_v52  ;;  %v1699_v47 = vld [vmem:[#allocation10 + $0x118] sm:$0xff]  ;;  %v1704_v55 = vld [vmem:[#allocation10 + $0x370] sm:$0xff] }
 0x700   :  { %v1385_v60 = vsel %vm287_vm1, %v1379_v58, 0.0  ;;  %v5437_v51 = vpack.c.bf16 %v1700_v48, %v1699_v47  ;;  %v1703_v54 = vld [vmem:[#allocation10 + $0x2f8] sm:$0xff] }
 0x701   :  { %1386 = vadd.xlane.f32.xlu0 %v1385_v60  ;;  %v1382_v61 = vsel %vm287_vm1, %v1378_v59, 0.0  ;;  %v248_v60 = vld [vmem:[%s6706_s2 + $0x7c] sm:$0x1]  ;;  %236 = vst.msk [vmem:[#allocation3 + $0xa] sm:$0x1] %vm68_vm0, %v235_v57  ;;  %v1791_v57 = vld [vmem:[#allocation10 + $0x30] sm:$0xff] }
 0x702   :  { %1383 = vadd.xlane.f32.xlu1 %v1382_v61  ;;  %v4487_v61 = vld [vmem:[%s4440_s12 + $0x38] sm:$0x1] }
 0x703   :  { %v6307_v52 = vld [vmem:[#allocation3] sm:$0xff] }
 0x78e   :  { %v1387_v62 = vpop.xlane.xlu0 %1386 }
 0x78f   :  { %v1390_v63 = vmul.f32 0.015625, %v1387_v62  ;;  %v1384_v0 = vpop.xlane.xlu1 %1383  ;;  %v249_v62 = vadd.f32 %v4487_v61, %v248_v60  ;;  %v1793_v60 = vld [vmem:[#allocation10 + $0x120] sm:$0xff]  ;;  %v1794_v61 = vld [vmem:[#allocation10 + $0x198] sm:$0xff] }
 0x790   :  { %v1389_v1 = vmul.f32 0.015625, %v1384_v0  ;;  %v262_v0 = vld [vmem:[%s6706_s2 + $0x7e] sm:$0x1] }
 0x791   :  { %v6104_v2 = vsub.f32 %v1379_v58, %v1390_v63  ;;  %v241_v58 = vld [vmem:[%s6706_s2 + $0x7b] sm:$0x1]  ;;  %v255_v63 = vld [vmem:[%s6706_s2 + $0x7d] sm:$0x1]  ;;  %250 = vst.msk [vmem:[#allocation3 + $0xc] sm:$0x1] %vm68_vm0, %v249_v62 }
 0x792   :  { %v6106_v3 = vsub.f32 %v1378_v59, %v1389_v1  ;;  %v242_v59 = vadd.f32 %v4485_v56, %v241_v58  ;;  %v4489_v1 = vld [vmem:[%s4442_s13 + $0x38] sm:$0x1]  ;;  %v5445_v56 = vpack.c.bf16 %v1704_v55, %v1703_v54  ;;  %v1792_v58 = vld [vmem:[#allocation10 + $0xa8] sm:$0xff] }
 0x793   :  { %v1394_v4 = vmul.f32 %v6104_v2, %v6104_v2 }
 0x794   :  { %v1393_v8 = vmul.f32 %v6106_v3, %v6106_v3  ;;  %243 = vst.msk [vmem:[#allocation3 + $0xb] sm:$0x1] %vm68_vm0, %v242_v59  ;;  %v5449_v59 = vpack.c.bf16 %v1792_v58, %v1791_v57 }
 0x795   :  { %v1398_v9 = vsel %vm287_vm1, %v1394_v4, 0.0  ;;  %v269_v4 = vld [vmem:[%s6706_s2 + $0x7f] sm:$0x1] }
 0x796   :  { %1399 = vadd.xlane.f32.xlu1 %v1398_v9  ;;  %v1395_v5 = vsel %vm287_vm1, %v1393_v8, 0.0  ;;  %v256_v8 = vadd.f32 %v4489_v1, %v255_v63  ;;  %v4491_v9 = vld [vmem:[%s4444_s10 + $0x38] sm:$0x1]  ;;  %v270_v7 = vadd.f32 %v4493_v6, %v269_v4  ;;  %v1795_v63 = vld [vmem:[#allocation10 + $0x210] sm:$0xff]  ;;  %v1797_v4 = vld [vmem:[#allocation10 + $0x300] sm:$0xff] }
 0x797   :  { %1396 = vadd.xlane.f32.xlu0 %v1395_v5  ;;  %v263_v5 = vadd.f32 %v4491_v9, %v262_v0  ;;  %v1796_v0 = vld [vmem:[#allocation10 + $0x288] sm:$0xff]  ;;  %v1532_v6 = vld [vmem:[%s6708_s4 + $0xf0] sm:$0xff] }
 0x798   :  { %257 = vst.msk [vmem:[#allocation3 + $0xd] sm:$0x1] %vm68_vm0, %v256_v8  ;;  %271 = vst.msk [vmem:[#allocation3 + $0xf] sm:$0x1] %vm68_vm0, %v270_v7  ;;  %v5457_v1 = vpack.c.bf16 %v1796_v0, %v1795_v63  ;;  %v1798_v8 = vld [vmem:[#allocation10 + $0x378] sm:$0xff] }
 0x799   :  { %264 = vst.msk [vmem:[#allocation3 + $0xe] sm:$0x1] %vm68_vm0, %v263_v5  ;;  %v5461_v9 = vpack.c.bf16 %v1798_v8, %v1797_v4  ;;  %v1531_v5 = vld [vmem:[%s6708_s4 + $0xe0] sm:$0xff] }
 0x79a   :  { %v5429_v7 = vpack.c.bf16 %v1532_v6, %v1531_v5 }
 0x79c   :  { %5430 = vmatprep.subr.bf16.mxu0 %v5429_v7 }
 0x79d   :  { %5432 = vmatpush3.bf16.msra.mxu0 %v5429_v7 }
 0x7a0   :  { %v6316_v62 = vld [vmem:[#allocation3 + $0x8] sm:$0xff] }
 0x823   :  { %v1400_v33 = vpop.xlane.xlu1 %1399 }
 0x824   :  { %v1402_v34 = vmul.f32 0.015625, %v1400_v33  ;;  %v1397_v35 = vpop.xlane.xlu0 %1396  ;;  %v1881_v33 = vld [vmem:[#allocation10 + $0x128] sm:$0xff] }
 0x825   :  { %v1401_v36 = vmul.f32 0.015625, %v1397_v35  ;;  %v1882_v35 = vld [vmem:[#allocation10 + $0x1a0] sm:$0xff] }
 0x826   :  { %v1404_v37 = vadd.f32 1e-05, %v1402_v34  ;;  %v5465_v34 = vpack.c.bf16 %v1880_v32, %v1879_v31 }
 0x827   :  { %v1403_v38 = vadd.f32 1e-05, %v1401_v36  ;;  %v5469_v36 = vpack.c.bf16 %v1882_v35, %v1881_v33 }
 0x828   :  { %5658 = vrsqrt.f32 %v1404_v37  ;;  %v1883_v37 = vld [vmem:[#allocation10 + $0x218] sm:$0xff]  ;;  %5466 = vmatprep.subr.bf16.mxu0 %v5465_v34 }
 0x829   :  { %5660 = vrsqrt.f32 %v1403_v38  ;;  %v1884_v38 = vld [vmem:[#allocation10 + $0x290] sm:$0xff] }
 0x832   :  { %v5659_v39 = vpop.eup %5658 }
 0x833   :  { %v5661_v41 = vpop.eup %5660  ;;  %v1408_v42 = vmul.f32 %v5659_v39, %v6104_v2  ;;  %v1701_v2 = vld [vmem:[#allocation10 + $0x208] sm:$0xff]  ;;  %v5473_v39 = vpack.c.bf16 %v1884_v38, %v1883_v37 }
 0x834   :  { %v1407_v43 = vmul.f32 %v5661_v41, %v6106_v3  ;;  %v1702_v3 = vld [vmem:[#allocation10 + $0x280] sm:$0xff] }
 0x835   :  { %v1414_v45 = vmul.f32 %v4520_v40, %v1408_v42  ;;  %v5441_v53 = vpack.c.bf16 %v1702_v3, %v1701_v2  ;;  %v1886_v41 = vld [vmem:[#allocation10 + $0x380] sm:$0xff] }
 0x836   :  { %v1413_v46 = vmul.f32 %v4520_v40, %v1407_v43  ;;  %v1885_v40 = vld [vmem:[#allocation10 + $0x308] sm:$0xff]  ;;  %v6365_v43 = vld [vmem:[%s6709_s5 + $0x7] ss:$0 sm:$0xff] }
 0x837   :  { %v6305_v50 = vadd.f32 %v4521_v44, %v1414_v45  ;;  %v5477_v42 = vpack.c.bf16 %v1886_v41, %v1885_v40 }
 0x838   :  { %v6303_v49 = vadd.f32 %v4521_v44, %v1413_v46 }
 0x83a   :  { %4972 = vmatprep.mubr.msk.f32.mxu1 %vm287_vm1, %v6303_v49 }
 0x83b   :  { %4973 = vmatmul.mubr.msk.f32.vlgmr.msra.gmra.mrb[16].mxu1 %vm287_vm1, %v6305_v50 }
 0x83c   :  { %5436 = vmatpush3.bf16.msra.mxu1 %v6114_v23  ;;  %5026 = vmatprep.mubr.msk.f32.mxu1 %vm287_vm1, %v6307_v52  ;;  %v5453_v23 = vpack.c.bf16 %v1794_v61, %v1793_v60 }
 0x83d   :  { %5438 = vmatprep.subr.bf16.mxu1 %v5437_v51 }
 0x840   :  { %5440 = vmatpush3.bf16.msra.mxu1 %v5437_v51 }
 0x841   :  { %5442 = vmatprep.subr.bf16.mxu1 %v5441_v53 }
 0x844   :  { %5444 = vmatpush3.bf16.msra.mxu1 %v5441_v53 }
 0x845   :  { %5446 = vmatprep.subr.bf16.mxu1 %v5445_v56 }
 0x848   :  { %5448 = vmatpush3.bf16.msra.mxu1 %v5445_v56 }
 0x849   :  { %5450 = vmatprep.subr.bf16.mxu1 %v5449_v59 }
 0x84b   :  { %5027 = vmatmul.mubr.msk.f32.vlgmr.msra.gmra.mrb[18].mxu1 %vm287_vm1, %v6316_v62 }
 0x84c   :  { %5452 = vmatpush3.bf16.msra.mxu1 %v5449_v59  ;;  %5045 = vmatprep.mubr.msk.f32.mxu1 %vm287_vm1, %v6307_v52 }
 0x84d   :  { %5454 = vmatprep.subr.bf16.mxu1 %v5453_v23 }
 0x850   :  { %5456 = vmatpush3.bf16.msra.mxu1 %v5453_v23 }
 0x851   :  { %5458 = vmatprep.subr.bf16.mxu1 %v5457_v1 }
 0x854   :  { %5460 = vmatpush3.bf16.msra.mxu1 %v5457_v1  ;;  %v4536_v1 = vld [vmem:[%s6709_s5 + $0xe] ss:$0 sm:$0xff] }
 0x855   :  { %5462 = vmatprep.subr.bf16.mxu1 %v5461_v9 }
 0x858   :  { %5464 = vmatpush3.bf16.msra.mxu1 %v5461_v9 }
 0x859   :  { %5067 = vmatprep.subr.mxu1 %v5799_v10 }
 0x85b   :  { %5046 = vmatmul.mubr.msk.f32.vlgmr.msra.gmra.mrb[20].mxu1 %vm287_vm1, %v6316_v62 }
 0x85c   :  { %5069 = vmatprep.mubr.msk.f32.mxu1 %vm5800_vm2, %v5799_v10 }
 0x90e   :  { %v4974_v12 = vpop.f32.mrb[16].mxu1 }
 0x90f   :  { %v1512_v13 = vadd.f32 %v4974_v12, %v4522_v11  ;;  %v1506_v14 = vpop.f32.mrb[17].mxu1 }
 0x910   :  { %v1507_v15 = vadd.f32 %v4522_v11, %v1506_v14 }
 0x911   :  { %v1516_v17 = vmax.f32 %v1512_v13, 0.0 }
 0x912   :  { %v1515_v16 = vmax.f32 %v1507_v15, 0.0 }
 0x914   :  { %5007 = vmatprep.mubr.f32.mxu0 %v1515_v16 }
 0x915   :  { %5008 = vmatmul.mubr.f32.vlgmr.msra.gmra.mrb[10].mxu0 %v1516_v17 }
 0x916   :  { %5064 = vmatprep.mubr.msk.f32.mxu0 %vm287_vm1, %v6307_v52  ;;  %5468 = vmatpush3.bf16.msra.mxu0 %v5465_v34 }
 0x917   :  { %5470 = vmatprep.subr.bf16.mxu0 %v5469_v36 }
 0x91a   :  { %5472 = vmatpush3.bf16.msra.mxu0 %v5469_v36 }
 0x91b   :  { %5474 = vmatprep.subr.bf16.mxu0 %v5473_v39 }
 0x91e   :  { %v5028_v18 = vpop.f32.mrb[18].mxu1  ;;  %5476 = vmatpush3.bf16.msra.mxu0 %v5473_v39 }
 0x91f   :  { %v1782_v19 = vpop.f32.mrb[19].mxu1  ;;  %v1788_v27 = vadd.f32 %v5028_v18, %v4530_v20  ;;  %5478 = vmatprep.subr.bf16.mxu0 %v5477_v42 }
 0x920   :  { %v1783_v24 = vadd.f32 %v4530_v20, %v1782_v19 }
 0x921   :  { %v1968_v30 = vmul.f32 0.17677669, %v1788_v27 }
 0x922   :  { %v1967_v28 = vmul.f32 0.17677669, %v1783_v24  ;;  %5480 = vmatpush3.bf16.msra.mxu0 %v5477_v42 }
 0x923   :  { %5087 = vmatprep.subr.mxu0 %v5799_v10 }
 0x925   :  { %5065 = vmatmul.mubr.msk.f32.vlgmr.msra.gmra.mrb[12].mxu0 %vm287_vm1, %v6316_v62 }
 0x926   :  { %5089 = vmatprep.mubr.msk.f32.mxu0 %vm5800_vm2, %v5799_v10 }
 0x92e   :  { %v5047_v22 = vpop.f32.mrb[20].mxu1 }
 0x92f   :  { %v1870_v25 = vpop.f32.mrb[21].mxu1  ;;  %v1876_v29 = vadd.f32 %v5047_v22, %v4533_v21 }
 0x930   :  { %v6344_v26 = vadd.f32 %v4533_v21, %v1870_v25 }
 0x932   :  { %5068 = vmatpush3.xpose.msk.msra.mxu1 %vm547_vm3, %v6344_v26 }
 0x933   :  { %5072 = vmatprep.subr.mxu1 %v5799_v10 }
 0x935   :  { %5070 = vmatmul.mubr.msk.f32.vlgmr.msra.gmra.mrb[22].mxu1 %vm547_vm3, %v1967_v28 }
 0x936   :  { %5073 = vmatpush3.xpose.msk.msra.mxu1 %vm547_vm3, %v1876_v29  ;;  %5074 = vmatprep.mubr.msk.f32.mxu1 %vm5800_vm2, %v5799_v10 }
 0x937   :  { %5077 = vmatprep.subr.mxu1 %v5799_v10 }
 0x939   :  { %5075 = vmatmul.mubr.msk.f32.vlgmr.msra.gmra.mrb[24].mxu1 %vm547_vm3, %v1968_v30 }
 0x93a   :  { %5079 = vmatprep.mubr.msk.f32.mxu1 %vm5800_vm2, %v5799_v10 }
 0x9e8   :  { %v5009_v44 = vpop.f32.mrb[10].mxu0 }
 0x9e9   :  { %v6368_v45 = vadd.f32 %v5009_v44, %v6365_v43  ;;  %v6370_v46 = vpop.f32.mrb[11].mxu0 }
 0x9f8   :  { %v5066_v0 = vpop.f32.mrb[12].mxu0 }
 0x9f9   :  { %v1958_v4 = vpop.f32.mrb[13].mxu0  ;;  %v1964_v8 = vadd.f32 %v5066_v0, %v4536_v1 }
 0x9fa   :  { %v1959_v9 = vadd.f32 %v4536_v1, %v1958_v4  ;;  %v4526_v1 = vld [vmem:[%s6709_s5 + $0x8] ss:$0 sm:$0xff] }
 0x9fc   :  { %5078 = vmatpush3.msra.mxu1 %v1959_v9 }
 0x9fd   :  { %5082 = vmatprep.subr.mxu1 %v5799_v10 }
 0xa08   :  { %v2041_v47 = vpop.f32.mrb[22].mxu1 }
 0xa09   :  { %v5071_v48 = vpop.f32.mrb[23].mxu1  ;;  %v2121_v51 = vsel %vm700_vm4, %v2041_v47, -inf }
 0xa0a   :  { %2122 = vmax.xlane.f32.xlu0 %v2121_v51 }
 0xa0c   :  { %v2117_v2 = vpop.f32.mrb[24].mxu1 }
 0xa0d   :  { %v5076_v3 = vpop.f32.mrb[25].mxu1  ;;  %v2124_v53 = vsel %vm700_vm4, %v2117_v2, -inf }
 0xa0e   :  { %2125 = vmax.xlane.f32.xlu1 %v2124_v53 }
 0xa1f   :  { %2373 = vrot.lane.b32.xlu1 %v1876_v29, %s5801_s17  ;;  %v1605_v29 = vadd.f32 %v6365_v43, %v6370_v46  ;;  %v1614_v46 = vadd.f32 %v6368_v45, %v6305_v50 }
 0xa23   :  { %2293 = vrot.lane.b32.xlu1 %v1967_v28, %s5801_s17 }
 0xa97   :  { %v2123_v54 = vpop.xlane.xlu0 %2122 }
 0xa98   :  { %v2127_v55 = vsub.f32 %v2041_v47, %v2123_v54  ;;  %v1620_v47 = vsel %vm287_vm1, %v1614_v46, 0.0 }
 0xa9a   :  { %v2129_v56 = vmul.f32 1.442695, %v2127_v55 }
 0xa9b   :  { %v2126_v57 = vpop.xlane.xlu1 %2125 }
 0xa9c   :  { %5662 = vpow2.f32 %v2129_v56  ;;  %v2128_v58 = vsub.f32 %v2117_v2, %v2126_v57 }
 0xa9e   :  { %v2131_v59 = vmul.f32 1.442695, %v2128_v58 }
 0xa9f   :  { %v2374_v5 = vpop.permute.xlu1 %2373 }
 0xaa0   :  { %5664 = vpow2.f32 %v2131_v59 }
 0xaa3   :  { %v2294_v6 = vpop.permute.xlu1 %2293 }
 0xaa6   :  { %v5663_v60 = vpop.eup %5662 }
 0xaa7   :  { %v2133_v61 = vsel %vm700_vm4, %v5663_v60, 0.0 }
 0xaa8   :  { %2134 = vadd.xlane.f32.xlu0 %v2133_v61 }
 0xaaa   :  { %v5665_v23 = vpop.eup %5664 }
 0xaab   :  { %v2136_v63 = vsel %vm700_vm4, %v5665_v23, 0.0 }
 0xaac   :  { %2137 = vadd.xlane.f32.xlu1 %v2136_v63 }
 0xabd   :  { %2371 = vrot.lane.b32.xlu1 %v1968_v30, %s5801_s17  ;;  %v1613_v30 = vadd.f32 %v1605_v29, %v6303_v49 }
 0xabe   :  { %2295 = vrot.lane.b32.xlu0 %v6344_v26, %s5801_s17 }
 0xabf   :  { %v1617_v31 = vsel %vm287_vm1, %v1613_v30, 0.0 }
 0xb35   :  { %v2135_v7 = vpop.xlane.xlu0 %2134 }
 0xb36   :  { %5666 = vrcp.f32 %v2135_v7  ;;  %v2625_v7 = vld [vmem:[#allocation10 + $0x220] sm:$0xff] }
 0xb39   :  { %v2296_v11 = vpop.permute.xlu0 %2295  ;;  %v2138_v12 = vpop.xlane.xlu1 %2137 }
 0xb3a   :  { %5668 = vrcp.f32 %v2138_v12  ;;  %5088 = vmatpush3.xpose.msk.msra.mxu0 %vm547_vm3, %v2296_v11  ;;  %v2626_v11 = vld [vmem:[#allocation10 + $0x298] sm:$0xff] }
 0xb3b   :  { %5097 = vmatprep.subr.mxu0 %v5799_v10  ;;  %v5481_v12 = vpack.c.bf16 %v2626_v11, %v2625_v7 }
 0xb3d   :  { %5090 = vmatmul.mubr.msk.f32.vlgmr.msra.gmra.mrb[14].mxu0 %vm547_vm3, %v2294_v6  ;;  %v2372_v17 = vpop.permute.xlu1 %2371 }
 0xb3e   :  { %5099 = vmatprep.mubr.msk.f32.mxu0 %vm5800_vm2, %v5799_v10 }
 0xb40   :  { %v5667_v13 = vpop.eup %5666 }
 0xb41   :  { %v2140_v14 = vmul.f32 %v5667_v13, %v5663_v60  ;;  %v2627_v13 = vld [vmem:[#allocation10 + $0x310] sm:$0xff] }
 0xb43   :  { %5080 = vmatmul.mubr.msk.f32.vlgmr.msra.gmra.mrb[26].mxu1 %vm700_vm4, %v2140_v14  ;;  %v2628_v14 = vld [vmem:[#allocation10 + $0x388] sm:$0xff] }
 0xb44   :  { %v5669_v15 = vpop.eup %5668  ;;  %5083 = vmatpush3.msra.mxu1 %v1964_v8  ;;  %5084 = vmatprep.mubr.msk.f32.mxu1 %vm5800_vm2, %v5799_v10 }
 0xb45   :  { %v2142_v16 = vmul.f32 %v5669_v15, %v5665_v23  ;;  %5092 = vmatprep.subr.mxu1 %v5799_v10  ;;  %v5485_v15 = vpack.c.bf16 %v2628_v14, %v2627_v13 }
 0xb47   :  { %5085 = vmatmul.mubr.msk.f32.vlgmr.msra.gmra.mrb[28].mxu1 %vm700_vm4, %v2142_v16  ;;  %v2289_v16 = vld [vmem:[#allocation10 + $0x40] sm:$0xff] }
 0xb48   :  { %5094 = vmatprep.mubr.msk.f32.mxu1 %vm5800_vm2, %v5799_v10 }
 0xb4b   :  { %5093 = vmatpush3.xpose.msk.msra.mxu1 %vm547_vm3, %v2374_v5 }
 0xb4c   :  { %5102 = vmatprep.subr.mxu1 %v5799_v10 }
 0xb4e   :  { %5095 = vmatmul.mubr.msk.f32.vlgmr.msra.gmra.mrb[30].mxu1 %vm547_vm3, %v2372_v17  ;;  %v2290_v17 = vld [vmem:[#allocation10 + $0xb8] sm:$0xff] }
 0xb4f   :  { %5104 = vmatprep.mubr.msk.f32.mxu1 %vm5800_vm2, %v5799_v10 }
 0xc10   :  { %v2367_v18 = vpop.f32.mrb[14].mxu0 }
 0xc11   :  { %v5091_v19 = vpop.f32.mrb[15].mxu0  ;;  %v2449_v20 = vsel %vm700_vm4, %v2367_v18, -inf }
 0xc12   :  { %2450 = vmax.xlane.f32.xlu0 %v2449_v20 }
 0xc16   :  { %v6403_v21 = vpop.f32.mrb[26].mxu1 }
 0xc17   :  { %v5081_v22 = vpop.f32.mrb[27].mxu1 }
 0xc1a   :  { %v6405_v24 = vpop.f32.mrb[28].mxu1 }
 0xc1b   :  { %v5086_v25 = vpop.f32.mrb[29].mxu1 }
 0xc21   :  { %v2445_v26 = vpop.f32.mrb[30].mxu1 }
 0xc22   :  { %v5096_v27 = vpop.f32.mrb[31].mxu1  ;;  %v2452_v28 = vsel %vm700_vm4, %v2445_v26, -inf }
 0xc23   :  { %2453 = vmax.xlane.f32.xlu1 %v2452_v28 }
 0xc34   :  { %2549 = vrot.lane.b32.xlu1 %v1964_v8, %s5801_s17  ;;  %v4527_v8 = vld [vmem:[%s6709_s5 + $0x9] ss:$0 sm:$0xff] }
 0xc58   :  { %1618 = vadd.xlane.f32.xlu1 %v1617_v31  ;;  %v2292_v31 = vld [vmem:[#allocation10 + $0x1a8] sm:$0xff] }
 0xc9f   :  { %v2451_v32 = vpop.xlane.xlu0 %2450 }
 0xca0   :  { %v2455_v33 = vsub.f32 %v2367_v18, %v2451_v32  ;;  %v5489_v18 = vpack.c.bf16 %v2290_v17, %v2289_v16 }
 0xca2   :  { %v2457_v34 = vmul.f32 1.442695, %v2455_v33 }
 0xca4   :  { %5670 = vpow2.f32 %v2457_v34 }
 0xcae   :  { %v5671_v35 = vpop.eup %5670 }
 0xcaf   :  { %v2461_v36 = vsel %vm700_vm4, %v5671_v35, 0.0 }
 0xcb0   :  { %v2454_v37 = vpop.xlane.xlu1 %2453  ;;  %2462 = vadd.xlane.f32.xlu0 %v2461_v36 }
 0xcb1   :  { %v2456_v38 = vsub.f32 %v2445_v26, %v2454_v37 }
 0xcb3   :  { %v2459_v39 = vmul.f32 1.442695, %v2456_v38 }
 0xcb4   :  { %v2550_v40 = vpop.permute.xlu1 %2549 }
 0xcb5   :  { %5672 = vpow2.f32 %v2459_v39  ;;  %5103 = vmatpush3.msra.mxu1 %v2550_v40 }
 0xcbf   :  { %v5673_v41 = vpop.eup %5672 }
 0xcc0   :  { %v2464_v49 = vsel %vm700_vm4, %v5673_v41, 0.0 }
 0xcc1   :  { %2465 = vadd.xlane.f32.xlu0 %v2464_v49 }
 0xcd7   :  { %2472 = vrot.lane.b32.xlu0 %v1959_v9, %s5801_s17 }
 0xce5   :  { %v1619_v42 = vpop.xlane.xlu1 %1618 }
 0xce6   :  { %v1623_v43 = vmul.f32 0.015625, %v1619_v42 }
 0xce8   :  { %v1625_v44 = vsub.f32 %v1613_v30, %v1623_v43  ;;  %v2291_v30 = vld [vmem:[#allocation10 + $0x130] sm:$0xff] }
 0xce9   :  { %v5493_v34 = vpack.c.bf16 %v2292_v31, %v2291_v30  ;;  %v2840_v30 = vld [vmem:[#allocation10 + $0x48] sm:$0xff]  ;;  %v2841_v31 = vld [vmem:[#allocation10 + $0xc0] sm:$0xff] }
 0xcea   :  { %v1627_v48 = vmul.f32 %v1625_v44, %v1625_v44 }
 0xcec   :  { %v1629_v51 = vsel %vm287_vm1, %v1627_v48, 0.0 }
 0xcf6   :  { %1621 = vadd.xlane.f32.xlu0 %v1620_v47 }
 0xcfa   :  { %1630 = vadd.xlane.f32.xlu0 %v1629_v51 }
 0xd3d   :  { %v2463_v2 = vpop.xlane.xlu0 %2462 }
 0xd3e   :  { %5674 = vrcp.f32 %v2463_v2 }
 0xd48   :  { %v5675_v53 = vpop.eup %5674 }
 0xd49   :  { %v2468_v54 = vmul.f32 %v5675_v53, %v5671_v35 }
 0xd4e   :  { %v2466_v3 = vpop.xlane.xlu0 %2465 }
 0xd4f   :  { %5676 = vrcp.f32 %v2466_v3 }
 0xd52   :  { %v2473_v55 = vpop.permute.xlu0 %2472 }
 0xd53   :  { %5098 = vmatpush3.msra.mxu0 %v2473_v55  ;;  %v2934_v55 = vld [vmem:[#allocation10 + $0x50] sm:$0xff] }
 0xd54   :  { %5100 = vmatmul.mubr.msk.f32.vlgmr.msra.gmra.mrb[16].mxu0 %vm700_vm4, %v2468_v54  ;;  %5482 = vmatprep.subr.bf16.mxu0 %v5481_v12 }
 0xd55   :  { %5484 = vmatpush3.bf16.msra.mxu0 %v5481_v12 }
 0xd56   :  { %5486 = vmatprep.subr.bf16.mxu0 %v5485_v15 }
 0xd59   :  { %v5677_v56 = vpop.eup %5676  ;;  %5488 = vmatpush3.bf16.msra.mxu0 %v5485_v15 }
 0xd5a   :  { %v2470_v57 = vmul.f32 %v5677_v56, %v5673_v41  ;;  %5490 = vmatprep.subr.bf16.mxu0 %v5489_v18  ;;  %v4555_v41 = vld [vmem:[%s6709_s5 + $0xf] ss:$0 sm:$0xff] }
 0xd5b   :  { %v2935_v56 = vld [vmem:[#allocation10 + $0xc8] sm:$0xff] }
 0xd5c   :  { %5105 = vmatmul.mubr.msk.f32.vlgmr.msra.gmra.mrb[32].mxu1 %vm700_vm4, %v2470_v57  ;;  %v5513_v57 = vpack.c.bf16 %v2935_v56, %v2934_v55  ;;  %v4557_v56 = vld [vmem:[%s6709_s5 + $0x11] ss:$0 sm:$0xff] }
 0xd83   :  { %v1622_v50 = vpop.xlane.xlu0 %1621 }
 0xd84   :  { %v1624_v45 = vmul.f32 0.015625, %v1622_v50 }
 0xd86   :  { %v1626_v58 = vsub.f32 %v1614_v46, %v1624_v45  ;;  %v2938_v45 = vld [vmem:[#allocation10 + $0x230] sm:$0xff] }
 0xd87   :  { %v1631_v59 = vpop.xlane.xlu0 %1630 }
 0xd88   :  { %v1635_v60 = vmul.f32 0.015625, %v1631_v59  ;;  %v1628_v61 = vmul.f32 %v1626_v58, %v1626_v58 }
 0xd8a   :  { %v1637_v23 = vadd.f32 1e-05, %v1635_v60  ;;  %v1632_v63 = vsel %vm287_vm1, %v1628_v61, 0.0  ;;  %v2940_v60 = vld [vmem:[#allocation10 + $0x320] sm:$0xff]  ;;  %v2941_v61 = vld [vmem:[#allocation10 + $0x398] sm:$0xff] }
 0xd8b   :  { %1633 = vadd.xlane.f32.xlu1 %v1632_v63 }
 0xd8c   :  { %5678 = vrsqrt.f32 %v1637_v23  ;;  %v5525_v23 = vpack.c.bf16 %v2941_v61, %v2940_v60  ;;  %v3032_v60 = vld [vmem:[#allocation10 + $0x238] sm:$0xff]  ;;  %v3033_v61 = vld [vmem:[#allocation10 + $0x2b0] sm:$0xff] }
 0xd96   :  { %v5679_v0 = vpop.eup %5678 }
 0xd97   :  { %v1641_v4 = vmul.f32 %v5679_v0, %v1625_v44 }
 0xd99   :  { %v1647_v9 = vmul.f32 %v4526_v1, %v1641_v4 }
 0xd9b   :  { %v1653_v5 = vadd.f32 %v4527_v8, %v1647_v9 }
 0xd9d   :  { %v1657_v6 = vsel %vm287_vm1, %v1653_v5, 0.0 }
 0xd9e   :  { %1658 = vadd.xlane.f32.xlu0 %v1657_v6 }
 0xe18   :  { %v1634_v19 = vpop.xlane.xlu1 %1633 }
 0xe19   :  { %v1636_v20 = vmul.f32 0.015625, %v1634_v19  ;;  %v4528_v19 = vld [vmem:[%s6709_s5 + $0xa] ss:$0 sm:$0xff] }
 0xe1b   :  { %v1638_v22 = vadd.f32 1e-05, %v1636_v20 }
 0xe1d   :  { %5680 = vrsqrt.f32 %v1638_v22 }
 0xe27   :  { %v5681_v25 = vpop.eup %5680  ;;  %v2544_v26 = vpop.f32.mrb[16].mxu0 }
 0xe28   :  { %v5101_v27 = vpop.f32.mrb[17].mxu0  ;;  %5115 = vmatprep.mubr.msk.f32.mxu0 %vm547_vm3, %v2544_v26  ;;  %v1642_v28 = vmul.f32 %v5681_v25, %v1626_v58  ;;  %v2939_v58 = vld [vmem:[#allocation10 + $0x2a8] sm:$0xff] }
 0xe29   :  { %v5521_v59 = vpack.c.bf16 %v2939_v58, %v2938_v45  ;;  %v4529_v26 = vld [vmem:[%s6709_s5 + $0xb] ss:$0 sm:$0xff] }
 0xe2a   :  { %v1648_v29 = vmul.f32 %v4526_v1, %v1642_v28 }
 0xe2b   :  { %v1659_v38 = vpop.xlane.xlu0 %1658 }
 0xe2c   :  { %v1654_v32 = vadd.f32 %v4527_v8, %v1648_v29  ;;  %v1663_v40 = vmul.f32 0.015625, %v1659_v38  ;;  %v2845_v38 = vld [vmem:[#allocation10 + $0x2a0] sm:$0xff] }
 0xe2e   :  { %v1660_v33 = vsel %vm287_vm1, %v1654_v32, 0.0  ;;  %v1665_v46 = vsub.f32 %v1653_v5, %v1663_v40  ;;  %v2846_v40 = vld [vmem:[#allocation10 + $0x318] sm:$0xff] }
 0xe2f   :  { %v2621_v35 = vpop.f32.mrb[32].mxu1  ;;  %1661 = vadd.xlane.f32.xlu1 %v1660_v33  ;;  %v5497_v33 = vpack.c.bf16 %v2841_v31, %v2840_v30 }
 0xe30   :  { %v5106_v36 = vpop.f32.mrb[33].mxu1  ;;  %5116 = vmatmul.mubr.msk.f32.vlgmr.msra.gmra.mrb[18].mxu0 %vm547_vm3, %v2621_v35  ;;  %v1667_v3 = vmul.f32 %v1665_v46, %v1665_v46  ;;  %v2843_v35 = vld [vmem:[#allocation10 + $0x1b0] sm:$0xff] }
 0xe31   :  { %5492 = vmatpush3.bf16.msra.mxu0 %v5489_v18  ;;  %5126 = vmatprep.mubr.msk.f32.mxu0 %vm547_vm3, %v6403_v21 }
 0xe32   :  { %5494 = vmatprep.subr.bf16.mxu0 %v5493_v34  ;;  %v1669_v54 = vsel %vm287_vm1, %v1667_v3, 0.0  ;;  %5498 = vmatprep.subr.bf16.mxu1 %v5497_v33  ;;  %v4556_v3 = vld [vmem:[%s6709_s5 + $0x10] ss:$0 sm:$0xff] }
 0xe33   :  { %5500 = vmatpush3.bf16.msra.mxu1 %v5497_v33 }
 0xe35   :  { %5496 = vmatpush3.bf16.msra.mxu0 %v5493_v34  ;;  %v2842_v34 = vld [vmem:[#allocation10 + $0x138] sm:$0xff] }
 0xe36   :  { %5514 = vmatprep.subr.bf16.mxu0 %v5513_v57  ;;  %v5501_v36 = vpack.c.bf16 %v2843_v35, %v2842_v34 }
 0xe38   :  { %5127 = vmatmul.mubr.msk.f32.vlgmr.msra.gmra.mrb[18].mxu0 %vm547_vm3, %v6405_v24  ;;  %5502 = vmatprep.subr.bf16.mxu1 %v5501_v36 }
 0xe39   :  { %5516 = vmatpush3.bf16.msra.mxu0 %v5513_v57  ;;  %5504 = vmatpush3.bf16.msra.mxu1 %v5501_v36 }
 0xebc   :  { %v1662_v37 = vpop.xlane.xlu1 %1661 }
 0xebd   :  { %v1664_v39 = vmul.f32 0.015625, %v1662_v37  ;;  %v2844_v37 = vld [vmem:[#allocation10 + $0x228] sm:$0xff] }
 0xebf   :  { %v1666_v42 = vsub.f32 %v1654_v32, %v1664_v39  ;;  %v5505_v39 = vpack.c.bf16 %v2845_v38, %v2844_v37 }
 0xec1   :  { %v1668_v51 = vmul.f32 %v1666_v42, %v1666_v42  ;;  %5506 = vmatprep.subr.bf16.mxu1 %v5505_v39 }
 0xec2   :  { %5508 = vmatpush3.bf16.msra.mxu1 %v5505_v39 }
 0xec3   :  { %v1672_v53 = vsel %vm287_vm1, %v1668_v51, 0.0 }
 0xf0b   :  { %v5128_v49 = vpop.f32.mrb[18].mxu0 }
 0xf0c   :  { %v2797_v43 = vadd.f32 %v5128_v49, %v4555_v41  ;;  %v2782_v44 = vpop.f32.mrb[19].mxu0 }
 0xf0d   :  { %v2796_v47 = vadd.f32 %v4555_v41, %v2782_v44  ;;  %v2847_v41 = vld [vmem:[#allocation10 + $0x390] sm:$0xff] }
 0xf0e   :  { %v2799_v21 = vadd.f32 %v2797_v43, %v6316_v62  ;;  %v2937_v62 = vld [vmem:[#allocation10 + $0x1b8] sm:$0xff]  ;;  %v5509_v49 = vpack.c.bf16 %v2847_v41, %v2846_v40  ;;  %v3029_v43 = vld [vmem:[#allocation10 + $0xd0] sm:$0xff] }
 0xf0f   :  { %v2798_v48 = vadd.f32 %v2796_v47, %v6307_v52  ;;  %v2936_v52 = vld [vmem:[#allocation10 + $0x140] sm:$0xff] }
 0xf10   :  { %v2805_v24 = vsel %vm287_vm1, %v2799_v21, 0.0  ;;  %v5517_v50 = vpack.c.bf16 %v2937_v62, %v2936_v52  ;;  %5510 = vmatprep.subr.bf16.mxu1 %v5509_v49  ;;  %v3030_v62 = vld [vmem:[#allocation10 + $0x148] sm:$0xff] }
 0xf11   :  { %2806 = vadd.xlane.f32.xlu1 %v2805_v24  ;;  %v2802_v2 = vsel %vm287_vm1, %v2798_v48, 0.0  ;;  %5512 = vmatpush3.bf16.msra.mxu1 %v5509_v49 }
 0xf12   :  { %2803 = vadd.xlane.f32.xlu0 %v2802_v2  ;;  %5518 = vmatprep.subr.bf16.mxu0 %v5517_v50 }
 0xf13   :  { %5520 = vmatpush3.bf16.msra.mxu0 %v5517_v50  ;;  %v3031_v50 = vld [vmem:[#allocation10 + $0x1c0] sm:$0xff] }
 0xf14   :  { %5522 = vmatprep.subr.bf16.mxu0 %v5521_v59 }
 0xf15   :  { %1673 = vadd.xlane.f32.xlu1 %v1672_v53 }
 0xf16   :  { %1670 = vadd.xlane.f32.xlu0 %v1669_v54 }
 0xf17   :  { %5524 = vmatpush3.bf16.msra.mxu0 %v5521_v59  ;;  %v5533_v59 = vpack.c.bf16 %v3031_v50, %v3030_v62 }
 0xf18   :  { %5526 = vmatprep.subr.bf16.mxu0 %v5525_v23 }
 0xf1b   :  { %5528 = vmatpush3.bf16.msra.mxu0 %v5525_v23  ;;  %v5537_v23 = vpack.c.bf16 %v3033_v61, %v3032_v60 }
 0xf1c   :  { %5186 = vmatprep.subr.mxu0 %v5799_v10 }
 0xf9e   :  { %v2807_v63 = vpop.xlane.xlu1 %2806 }
 0xf9f   :  { %v2809_v0 = vmul.f32 0.015625, %v2807_v63  ;;  %v2804_v1 = vpop.xlane.xlu0 %2803  ;;  %v3034_v63 = vld [vmem:[#allocation10 + $0x328] sm:$0xff] }
 0xfa0   :  { %v2808_v4 = vmul.f32 0.015625, %v2804_v1 }
 0xfa1   :  { %v6447_v8 = vsub.f32 %v2799_v21, %v2809_v0  ;;  %v3035_v0 = vld [vmem:[#allocation10 + $0x3a0] sm:$0xff] }
 0xfa2   :  { %v6449_v9 = vsub.f32 %v2798_v48, %v2808_v4  ;;  %v1674_v5 = vpop.xlane.xlu1 %1673  ;;  %v5541_v1 = vpack.c.bf16 %v3035_v0, %v3034_v63  ;;  %v4561_v4 = vld [vmem:[%s6709_s5 + $0x13] ss:$0 sm:$0xff] }
 0xfa3   :  { %v1676_v6 = vmul.f32 0.015625, %v1674_v5  ;;  %v1671_v7 = vpop.xlane.xlu0 %1670  ;;  %v2813_v11 = vmul.f32 %v6447_v8, %v6447_v8 }
 0xfa4   :  { %v1675_v12 = vmul.f32 0.015625, %v1671_v7  ;;  %v2812_v13 = vmul.f32 %v6449_v9, %v6449_v9  ;;  %v4558_v7 = vld [vmem:[%s6709_s5 + $0x12] ss:$0 sm:$0xff] }
 0xfa5   :  { %v1678_v14 = vadd.f32 1e-05, %v1676_v6  ;;  %v2817_v15 = vsel %vm287_vm1, %v2813_v11, 0.0 }
 0xfa6   :  { %v1677_v16 = vadd.f32 1e-05, %v1675_v12  ;;  %2818 = vadd.xlane.f32.xlu1 %v2817_v15  ;;  %v2814_v17 = vsel %vm287_vm1, %v2812_v13, 0.0 }
 0xfa7   :  { %5682 = vrsqrt.f32 %v1678_v14  ;;  %2815 = vadd.xlane.f32.xlu0 %v2814_v17  ;;  %v4564_v17 = vld [vmem:[%s6709_s5 + $0x14] ss:$0 sm:$0xff] }
 0xfa8   :  { %5684 = vrsqrt.f32 %v1677_v16 }
 0xfb1   :  { %v5683_v18 = vpop.eup %5682 }
 0xfb2   :  { %v5685_v20 = vpop.eup %5684  ;;  %v1682_v22 = vmul.f32 %v5683_v18, %v1666_v42  ;;  %v3028_v42 = vld [vmem:[#allocation10 + $0x58] sm:$0xff] }
 0xfb3   :  { %v1681_v25 = vmul.f32 %v5685_v20, %v1665_v46  ;;  %v5529_v44 = vpack.c.bf16 %v3029_v43, %v3028_v42 }
 0xfb4   :  { %v1688_v27 = vmul.f32 %v4528_v19, %v1682_v22 }
 0xfb5   :  { %v1687_v28 = vmul.f32 %v4528_v19, %v1681_v25  ;;  %5530 = vmatprep.subr.bf16.mxu1 %v5529_v44 }
 0xfb6   :  { %v6463_v32 = vadd.f32 %v4529_v26, %v1688_v27 }
 0xfb7   :  { %v1693_v29 = vadd.f32 %v4529_v26, %v1687_v28 }
 0xfb9   :  { %5164 = vmatprep.mubr.msk.f32.mxu0 %vm287_vm1, %v1693_v29 }
 0xfba   :  { %5165 = vmatmul.mubr.msk.f32.vlgmr.msra.gmra.mrb[20].mxu0 %vm287_vm1, %v6463_v32 }
 0xfbb   :  { %5188 = vmatprep.mubr.msk.f32.mxu0 %vm5800_vm2, %v5799_v10 }
0x1033   :  { %v2819_v46 = vpop.xlane.xlu1 %2818 }
0x1034   :  { %v2821_v47 = vmul.f32 0.015625, %v2819_v46  ;;  %v2816_v21 = vpop.xlane.xlu0 %2815 }
0x1035   :  { %v2820_v48 = vmul.f32 0.015625, %v2816_v21 }
0x1036   :  { %v2823_v24 = vadd.f32 1e-05, %v2821_v47 }
0x1037   :  { %v2822_v51 = vadd.f32 1e-05, %v2820_v48 }
0x1038   :  { %5686 = vrsqrt.f32 %v2823_v24 }
0x1039   :  { %5688 = vrsqrt.f32 %v2822_v51 }
0x1042   :  { %v5687_v2 = vpop.eup %5686 }
0x1043   :  { %v5689_v53 = vpop.eup %5688  ;;  %v2827_v54 = vmul.f32 %v5687_v2, %v6447_v8 }
0x1044   :  { %v2826_v55 = vmul.f32 %v5689_v53, %v6449_v9 }
0x1045   :  { %v2833_v57 = vmul.f32 %v4556_v3, %v2827_v54 }
0x1046   :  { %v2832_v52 = vmul.f32 %v4556_v3, %v2826_v55 }
0x1047   :  { %v6480_v58 = vadd.f32 %v4557_v56, %v2833_v57 }
0x1048   :  { %v6478_v45 = vadd.f32 %v4557_v56, %v2832_v52 }
0x104a   :  { %5145 = vmatprep.mubr.msk.f32.mxu1 %vm287_vm1, %v6478_v45 }
0x104b   :  { %5146 = vmatmul.mubr.msk.f32.vlgmr.msra.gmra.mrb[34].mxu1 %vm287_vm1, %v6480_v58 }
0x104c   :  { %5532 = vmatpush3.bf16.msra.mxu1 %v5529_v44  ;;  %5183 = vmatprep.mubr.msk.f32.mxu1 %vm287_vm1, %v1693_v29 }
0x104d   :  { %5534 = vmatprep.subr.bf16.mxu1 %v5533_v59 }
0x1050   :  { %5536 = vmatpush3.bf16.msra.mxu1 %v5533_v59 }
0x1051   :  { %5538 = vmatprep.subr.bf16.mxu1 %v5537_v23 }
0x1054   :  { %5540 = vmatpush3.bf16.msra.mxu1 %v5537_v23 }
0x1055   :  { %5542 = vmatprep.subr.bf16.mxu1 %v5541_v1 }
0x1058   :  { %5544 = vmatpush3.bf16.msra.mxu1 %v5541_v1 }
0x1059   :  { %5191 = vmatprep.subr.mxu1 %v5799_v10 }
0x105b   :  { %5184 = vmatmul.mubr.msk.f32.vlgmr.msra.gmra.mrb[36].mxu1 %vm287_vm1, %v6463_v32 }
0x105c   :  { %5193 = vmatprep.mubr.msk.f32.mxu1 %vm5800_vm2, %v5799_v10 }
0x108d   :  { %v5166_v8 = vpop.f32.mrb[20].mxu0 }
0x108e   :  { %v3025_v9 = vadd.f32 %v5166_v8, %v4561_v4  ;;  %v3019_v5 = vpop.f32.mrb[21].mxu0 }
0x108f   :  { %v3020_v6 = vadd.f32 %v4561_v4, %v3019_v5  ;;  %v3774_v5 = vld [vmem:[#allocation10 + $0x240] sm:$0xff] }
0x1090   :  { %5192 = vmatpush3.xpose.msk.msra.mxu1 %vm547_vm3, %v3025_v9 }
0x1091   :  { %5187 = vmatpush3.xpose.msk.msra.mxu0 %vm547_vm3, %v3020_v6  ;;  %5201 = vmatprep.subr.mxu1 %v5799_v10 }
0x1092   :  { %5196 = vmatprep.subr.mxu0 %v5799_v10 }
0x111e   :  { %v5147_v11 = vpop.f32.mrb[34].mxu1 }
0x111f   :  { %v2931_v12 = vadd.f32 %v5147_v11, %v4558_v7  ;;  %v2925_v13 = vpop.f32.mrb[35].mxu1 }
0x1120   :  { %v2926_v14 = vadd.f32 %v4558_v7, %v2925_v13 }
0x1121   :  { %v3117_v15 = vmul.f32 0.17677669, %v2931_v12 }
0x1122   :  { %v3116_v16 = vmul.f32 0.17677669, %v2926_v14 }
0x1123   :  { %5194 = vmatmul.mubr.msk.f32.vlgmr.msra.gmra.mrb[38].mxu1 %vm547_vm3, %v3117_v15 }
0x1124   :  { %5189 = vmatmul.mubr.msk.f32.vlgmr.msra.gmra.mrb[22].mxu0 %vm547_vm3, %v3116_v16  ;;  %5203 = vmatprep.mubr.msk.f32.mxu1 %vm5800_vm2, %v5799_v10 }
0x1125   :  { %5198 = vmatprep.mubr.msk.f32.mxu0 %vm5800_vm2, %v5799_v10 }
0x112e   :  { %v5185_v18 = vpop.f32.mrb[36].mxu1 }
0x112f   :  { %v6511_v19 = vadd.f32 %v5185_v18, %v4564_v17  ;;  %v3107_v20 = vpop.f32.mrb[37].mxu1  ;;  %v3777_v18 = vld [vmem:[#allocation10 + $0x3a8] sm:$0xff] }
0x1130   :  { %v6513_v22 = vadd.f32 %v4564_v17, %v3107_v20  ;;  %v3776_v17 = vld [vmem:[#allocation10 + $0x330] sm:$0xff]  ;;  %v3438_v20 = vld [vmem:[#allocation10 + $0x60] sm:$0xff] }
0x1131   :  { %5202 = vmatpush3.msra.mxu1 %v6511_v19 }
0x1132   :  { %5197 = vmatpush3.msra.mxu0 %v6513_v22  ;;  %5211 = vmatprep.subr.mxu1 %v5799_v10 }
0x1133   :  { %5206 = vmatprep.subr.mxu0 %v5799_v10 }
0x11f6   :  { %v3266_v25 = vpop.f32.mrb[38].mxu1 }
0x11f7   :  { %v3190_v26 = vpop.f32.mrb[22].mxu0  ;;  %v5195_v27 = vpop.f32.mrb[39].mxu1  ;;  %v3273_v28 = vsel %vm700_vm4, %v3266_v25, -inf }
0x11f8   :  { %3274 = vmax.xlane.f32.xlu1 %v3273_v28  ;;  %v5190_v29 = vpop.f32.mrb[23].mxu0  ;;  %v3270_v30 = vsel %vm700_vm4, %v3190_v26, -inf  ;;  %v3440_v28 = vld [vmem:[#allocation10 + $0x150] sm:$0xff] }
0x11f9   :  { %3271 = vmax.xlane.f32.xlu0 %v3270_v30  ;;  %v3441_v29 = vld [vmem:[#allocation10 + $0x1c8] sm:$0xff] }
0x1285   :  { %v3275_v31 = vpop.xlane.xlu1 %3274 }
0x1286   :  { %v3277_v32 = vsub.f32 %v3266_v25, %v3275_v31  ;;  %v3272_v33 = vpop.xlane.xlu0 %3271  ;;  %v5557_v31 = vpack.c.bf16 %v3441_v29, %v3440_v28  ;;  %v4584_v28 = vld [vmem:[%s6709_s5 + $0x16] ss:$0 sm:$0xff] }
0x1287   :  { %v3276_v34 = vsub.f32 %v3190_v26, %v3272_v33  ;;  %v4583_v33 = vld [vmem:[%s6709_s5 + $0x15] ss:$0 sm:$0xff] }
0x1288   :  { %v3280_v35 = vmul.f32 1.442695, %v3277_v32 }
0x1289   :  { %v3278_v36 = vmul.f32 1.442695, %v3276_v34 }
0x128a   :  { %5690 = vpow2.f32 %v3280_v35 }
0x128b   :  { %5692 = vpow2.f32 %v3278_v36 }
0x1294   :  { %v5691_v37 = vpop.eup %5690 }
0x1295   :  { %v5693_v38 = vpop.eup %5692  ;;  %v3285_v39 = vsel %vm700_vm4, %v5691_v37, 0.0 }
0x1296   :  { %3286 = vadd.xlane.f32.xlu1 %v3285_v39  ;;  %v3282_v40 = vsel %vm700_vm4, %v5693_v38, 0.0 }
0x1297   :  { %3283 = vadd.xlane.f32.xlu0 %v3282_v40 }
0x12a7   :  { %3522 = vrot.lane.b32.xlu1 %v3025_v9, %s5801_s17 }
0x12ab   :  { %3442 = vrot.lane.b32.xlu1 %v3116_v16, %s5801_s17 }
0x12ad   :  { %3444 = vrot.lane.b32.xlu0 %v3020_v6, %s5801_s17  ;;  %v3775_v6 = vld [vmem:[#allocation10 + $0x2b8] sm:$0xff] }
0x12ae   :  { %v5545_v11 = vpack.c.bf16 %v3775_v6, %v3774_v5  ;;  %v4093_v6 = vld [vmem:[%s6708_s4 + $0x88] sm:$0xff] }
0x12af   :  { %3520 = vrot.lane.b32.xlu1 %v3117_v15, %s5801_s17 }
0x1323   :  { %v3287_v41 = vpop.xlane.xlu1 %3286 }
0x1324   :  { %5694 = vrcp.f32 %v3287_v41  ;;  %v3284_v49 = vpop.xlane.xlu0 %3283 }
0x1325   :  { %5696 = vrcp.f32 %v3284_v49 }
0x1327   :  { %v3523_v42 = vpop.permute.xlu1 %3522 }
0x1328   :  { %v3445_v48 = vpop.permute.xlu0 %3444 }
0x132b   :  { %v3443_v44 = vpop.permute.xlu1 %3442 }
0x132e   :  { %v5695_v43 = vpop.eup %5694 }
0x132f   :  { %v5697_v46 = vpop.eup %5696  ;;  %v3291_v47 = vmul.f32 %v5695_v43, %v5691_v37  ;;  %v3521_v24 = vpop.permute.xlu1 %3520 }
0x1330   :  { %v3289_v21 = vmul.f32 %v5697_v46, %v5693_v38 }
0x1331   :  { %5204 = vmatmul.mubr.msk.f32.vlgmr.msra.gmra.mrb[40].mxu1 %vm700_vm4, %v3291_v47 }
0x1332   :  { %5212 = vmatpush3.xpose.msk.msra.mxu1 %vm547_vm3, %v3523_v42  ;;  %5199 = vmatmul.mubr.msk.f32.vlgmr.msra.gmra.mrb[24].mxu0 %vm700_vm4, %v3289_v21 }
0x1333   :  { %5207 = vmatpush3.xpose.msk.msra.mxu0 %vm547_vm3, %v3445_v48  ;;  %5213 = vmatprep.mubr.msk.f32.mxu1 %vm5800_vm2, %v5799_v10 }
0x1334   :  { %5208 = vmatprep.mubr.msk.f32.mxu0 %vm5800_vm2, %v5799_v10  ;;  %5221 = vmatprep.subr.mxu1 %v5799_v10 }
0x1335   :  { %5214 = vmatmul.mubr.msk.f32.vlgmr.msra.gmra.mrb[42].mxu1 %vm547_vm3, %v3521_v24  ;;  %5216 = vmatprep.subr.mxu0 %v5799_v10  ;;  %v3989_v24 = vld [vmem:[#allocation10 + $0x68] sm:$0xff] }
0x1336   :  { %5209 = vmatmul.mubr.msk.f32.vlgmr.msra.gmra.mrb[26].mxu0 %vm547_vm3, %v3443_v44  ;;  %5223 = vmatprep.mubr.msk.f32.mxu1 %vm5800_vm2, %v5799_v10 }
0x1337   :  { %5218 = vmatprep.mubr.msk.f32.mxu0 %vm5800_vm2, %v5799_v10 }
0x1404   :  { %v6543_v51 = vpop.f32.mrb[40].mxu1 }
0x1405   :  { %v6545_v2 = vpop.f32.mrb[24].mxu0  ;;  %v5205_v3 = vpop.f32.mrb[41].mxu1 }
0x1406   :  { %v5200_v53 = vpop.f32.mrb[25].mxu0  ;;  %v3991_v3 = vld [vmem:[#allocation10 + $0x158] sm:$0xff] }
0x1407   :  { %v3992_v53 = vld [vmem:[#allocation10 + $0x1d0] sm:$0xff] }
0x1408   :  { %v3594_v54 = vpop.f32.mrb[42].mxu1 }
0x1409   :  { %v3516_v55 = vpop.f32.mrb[26].mxu0  ;;  %v5215_v56 = vpop.f32.mrb[43].mxu1  ;;  %v3601_v57 = vsel %vm700_vm4, %v3594_v54, -inf }
0x140a   :  { %3602 = vmax.xlane.f32.xlu1 %v3601_v57  ;;  %v5210_v52 = vpop.f32.mrb[27].mxu0  ;;  %v3598_v62 = vsel %vm700_vm4, %v3516_v55, -inf  ;;  %v3994_v56 = vld [vmem:[#allocation10 + $0x2c0] sm:$0xff] }
0x140b   :  { %3599 = vmax.xlane.f32.xlu0 %v3598_v62  ;;  %v3995_v52 = vld [vmem:[#allocation10 + $0x338] sm:$0xff]  ;;  %v3996_v62 = vld [vmem:[#allocation10 + $0x3b0] sm:$0xff] }
0x141b   :  { %3698 = vrot.lane.b32.xlu1 %v6511_v19, %s5801_s17  ;;  %v5549_v19 = vpack.c.bf16 %v3777_v18, %v3776_v17 }
0x1497   :  { %v3603_v10 = vpop.xlane.xlu1 %3602 }
0x1498   :  { %v3605_v50 = vsub.f32 %v3594_v54, %v3603_v10  ;;  %v3600_v59 = vpop.xlane.xlu0 %3599  ;;  %v5565_v54 = vpack.c.bf16 %v3992_v53, %v3991_v3  ;;  %v5573_v10 = vpack.c.bf16 %v3996_v62, %v3995_v52 }
0x1499   :  { %v3604_v60 = vsub.f32 %v3516_v55, %v3600_v59  ;;  %v3993_v55 = vld [vmem:[#allocation10 + $0x248] sm:$0xff]  ;;  %v4086_v59 = vld [vmem:[%s6708_s4 + $0x18] sm:$0xff] }
0x149a   :  { %v3608_v61 = vmul.f32 1.442695, %v3605_v50  ;;  %v5569_v57 = vpack.c.bf16 %v3994_v56, %v3993_v55  ;;  %v4085_v50 = vld [vmem:[%s6708_s4 + $0x8] sm:$0xff] }
0x149b   :  { %v3606_v23 = vmul.f32 1.442695, %v3604_v60  ;;  %v3699_v63 = vpop.permute.xlu1 %3698  ;;  %v4087_v60 = vld [vmem:[%s6708_s4 + $0x28] sm:$0xff] }
0x149c   :  { %5698 = vpow2.f32 %v3608_v61  ;;  %5222 = vmatpush3.msra.mxu1 %v3699_v63  ;;  %v5577_v61 = vpack.c.bf16 %v4086_v59, %v4085_v50 }
0x149d   :  { %5700 = vpow2.f32 %v3606_v23  ;;  %v4088_v23 = vld [vmem:[%s6708_s4 + $0x38] sm:$0xff] }
0x149e   :  { %v5581_v63 = vpack.c.bf16 %v4088_v23, %v4087_v60 }
0x14a6   :  { %v5699_v0 = vpop.eup %5698 }
0x14a7   :  { %v3613_v1 = vsel %vm700_vm4, %v5699_v0, 0.0  ;;  %v5701_v4 = vpop.eup %5700 }
0x14a8   :  { %3614 = vadd.xlane.f32.xlu0 %v3613_v1  ;;  %v3610_v8 = vsel %vm700_vm4, %v5701_v4, 0.0  ;;  %v4090_v1 = vld [vmem:[%s6708_s4 + $0x58] sm:$0xff] }
0x14ac   :  { %3611 = vadd.xlane.f32.xlu0 %v3610_v8  ;;  %v4091_v8 = vld [vmem:[%s6708_s4 + $0x68] sm:$0xff] }
0x14c2   :  { %3621 = vrot.lane.b32.xlu0 %v6513_v22, %s5801_s17  ;;  %v3439_v22 = vld [vmem:[#allocation10 + $0xd8] sm:$0xff] }
0x14c3   :  { %v5553_v25 = vpack.c.bf16 %v3439_v22, %v3438_v20 }
0x1535   :  { %v3615_v9 = vpop.xlane.xlu0 %3614 }
0x1536   :  { %5702 = vrcp.f32 %v3615_v9  ;;  %v4092_v9 = vld [vmem:[%s6708_s4 + $0x78] sm:$0xff] }
0x1537   :  { %v5589_v5 = vpack.c.bf16 %v4092_v9, %v4091_v8  ;;  %v4590_v8 = vld [vmem:[%s6709_s5 + $0x1a] ss:$0 sm:$0xff] }
0x1539   :  { %v3612_v7 = vpop.xlane.xlu0 %3611 }
0x153a   :  { %5704 = vrcp.f32 %v3612_v7  ;;  %v4094_v7 = vld [vmem:[%s6708_s4 + $0x98] sm:$0xff] }
0x153d   :  { %v3622_v12 = vpop.permute.xlu0 %3621 }
0x153e   :  { %5217 = vmatpush3.msra.mxu0 %v3622_v12  ;;  %v4095_v12 = vld [vmem:[%s6708_s4 + $0xa8] sm:$0xff] }
0x153f   :  { %5546 = vmatprep.subr.bf16.mxu0 %v5545_v11 }
0x1540   :  { %v5703_v13 = vpop.eup %5702 }
0x1541   :  { %v3619_v14 = vmul.f32 %v5703_v13, %v5699_v0  ;;  %v4089_v0 = vld [vmem:[%s6708_s4 + $0x48] sm:$0xff]  ;;  %v4096_v13 = vld [vmem:[%s6708_s4 + $0xb8] sm:$0xff] }
0x1543   :  { %5224 = vmatmul.mubr.msk.f32.vlgmr.msra.gmra.mrb[44].mxu1 %vm700_vm4, %v3619_v14  ;;  %v5597_v14 = vpack.c.bf16 %v4096_v13, %v4095_v12 }
0x1544   :  { %v5705_v15 = vpop.eup %5704 }
0x1545   :  { %v3617_v16 = vmul.f32 %v5705_v15, %v5701_v4  ;;  %v5585_v4 = vpack.c.bf16 %v4090_v1, %v4089_v0  ;;  %v4097_v15 = vld [vmem:[%s6708_s4 + $0xc8] sm:$0xff] }
0x1547   :  { %5219 = vmatmul.mubr.msk.f32.vlgmr.msra.gmra.mrb[28].mxu0 %vm700_vm4, %v3617_v16  ;;  %v4098_v16 = vld [vmem:[%s6708_s4 + $0xd8] sm:$0xff] }
0x1548   :  { %5548 = vmatpush3.bf16.msra.mxu0 %v5545_v11  ;;  %v5593_v11 = vpack.c.bf16 %v4094_v7, %v4093_v6  ;;  %v5601_v17 = vpack.c.bf16 %v4098_v16, %v4097_v15  ;;  %v4591_v6 = vld [vmem:[%s6709_s5 + $0x1b] ss:$0 sm:$0xff] }
0x1549   :  { %5550 = vmatprep.subr.bf16.mxu0 %v5549_v19 }
0x154c   :  { %5552 = vmatpush3.bf16.msra.mxu0 %v5549_v19 }
0x154d   :  { %5554 = vmatprep.subr.bf16.mxu0 %v5553_v25 }
0x1616   :  { %v3770_v26 = vpop.f32.mrb[44].mxu1 }
0x1617   :  { %v5225_v27 = vpop.f32.mrb[45].mxu1 }
0x161a   :  { %v3693_v30 = vpop.f32.mrb[28].mxu0 }
0x161b   :  { %v5220_v32 = vpop.f32.mrb[29].mxu0  ;;  %5234 = vmatprep.mubr.msk.f32.mxu0 %vm547_vm3, %v3693_v30 }
0x161c   :  { %5235 = vmatmul.mubr.msk.f32.vlgmr.msra.gmra.mrb[30].mxu0 %vm547_vm3, %v3770_v26  ;;  %v4585_v32 = vld [vmem:[%s6709_s5 + $0x17] ss:$0 sm:$0xff] }
0x161d   :  { %5556 = vmatpush3.bf16.msra.mxu0 %v5553_v25  ;;  %5245 = vmatprep.mubr.msk.f32.mxu0 %vm547_vm3, %v6545_v2 }
0x161e   :  { %5558 = vmatprep.subr.bf16.mxu0 %v5557_v31 }
0x1621   :  { %5560 = vmatpush3.bf16.msra.mxu0 %v5557_v31 }
0x1622   :  { %5578 = vmatprep.subr.bf16.mxu0 %v5577_v61 }
0x1624   :  { %5246 = vmatmul.mubr.msk.f32.vlgmr.msra.gmra.mrb[30].mxu0 %vm547_vm3, %v6543_v51  ;;  %v3990_v51 = vld [vmem:[#allocation10 + $0xe0] sm:$0xff] }
0x1625   :  { %v5561_v2 = vpack.c.bf16 %v3990_v51, %v3989_v24  ;;  %5580 = vmatpush3.bf16.msra.mxu0 %v5577_v61 }
0x1626   :  { %5582 = vmatprep.subr.bf16.mxu0 %v5581_v63 }
0x1627   :  { %5562 = vmatprep.subr.bf16.mxu1 %v5561_v2 }
0x1628   :  { %5564 = vmatpush3.bf16.msra.mxu1 %v5561_v2 }
0x1629   :  { %5566 = vmatprep.subr.bf16.mxu1 %v5565_v54  ;;  %5584 = vmatpush3.bf16.msra.mxu0 %v5581_v63 }
0x162a   :  { %5586 = vmatprep.subr.bf16.mxu0 %v5585_v4 }
0x162c   :  { %5568 = vmatpush3.bf16.msra.mxu1 %v5565_v54 }
0x162d   :  { %5570 = vmatprep.subr.bf16.mxu1 %v5569_v57  ;;  %5588 = vmatpush3.bf16.msra.mxu0 %v5585_v4 }
0x162e   :  { %5590 = vmatprep.subr.bf16.mxu0 %v5589_v5 }
0x1630   :  { %5572 = vmatpush3.bf16.msra.mxu1 %v5569_v57 }
0x1631   :  { %5574 = vmatprep.subr.bf16.mxu1 %v5573_v10  ;;  %5592 = vmatpush3.bf16.msra.mxu0 %v5589_v5 }
0x1632   :  { %5594 = vmatprep.subr.bf16.mxu0 %v5593_v11 }
0x1634   :  { %5576 = vmatpush3.bf16.msra.mxu1 %v5573_v10 }
0x1635   :  { %5596 = vmatpush3.bf16.msra.mxu0 %v5593_v11 }
0x1636   :  { %5598 = vmatprep.subr.bf16.mxu0 %v5597_v14 }
0x1639   :  { %5600 = vmatpush3.bf16.msra.mxu0 %v5597_v14 }
0x163a   :  { %5602 = vmatprep.subr.bf16.mxu0 %v5601_v17 }
0x163d   :  { %5604 = vmatpush3.bf16.msra.mxu0 %v5601_v17 }
0x16f7   :  { %v5247_v34 = vpop.f32.mrb[30].mxu0 }
0x16f8   :  { %v3946_v35 = vadd.f32 %v5247_v34, %v4583_v33  ;;  %v3931_v36 = vpop.f32.mrb[31].mxu0 }
0x16f9   :  { %v3945_v37 = vadd.f32 %v4583_v33, %v3931_v36 }
0x16fa   :  { %v3948_v38 = vadd.f32 %v3946_v35, %v6480_v58 }
0x16fb   :  { %v3947_v39 = vadd.f32 %v3945_v37, %v6478_v45  ;;  %v4099_v37 = vld [vmem:[%s6708_s4 + $0xe8] sm:$0xff] }
0x16fc   :  { %v3954_v40 = vsel %vm287_vm1, %v3948_v38, 0.0 }
0x16fd   :  { %3955 = vadd.xlane.f32.xlu0 %v3954_v40  ;;  %v3951_v41 = vsel %vm287_vm1, %v3947_v39, 0.0  ;;  %v4586_v40 = vld [vmem:[%s6709_s5 + $0x18] ss:$0 sm:$0xff] }
0x16fe   :  { %3952 = vadd.xlane.f32.xlu1 %v3951_v41 }
0x178a   :  { %v3956_v49 = vpop.xlane.xlu0 %3955 }
0x178b   :  { %v3958_v42 = vmul.f32 0.015625, %v3956_v49  ;;  %v3953_v43 = vpop.xlane.xlu1 %3952 }
0x178c   :  { %v3957_v44 = vmul.f32 0.015625, %v3953_v43 }
0x178d   :  { %v6570_v46 = vsub.f32 %v3948_v38, %v3958_v42  ;;  %v4100_v38 = vld [vmem:[%s6708_s4 + $0xf8] sm:$0xff] }
0x178e   :  { %v6572_v47 = vsub.f32 %v3947_v39, %v3957_v44  ;;  %v5605_v39 = vpack.c.bf16 %v4100_v38, %v4099_v37  ;;  %v4268_v37 = vld [vmem:[#allocation10 + $0x2c8] sm:$0xff] }
0x178f   :  { %v3962_v21 = vmul.f32 %v6570_v46, %v6570_v46 }
0x1790   :  { %v3961_v45 = vmul.f32 %v6572_v47, %v6572_v47  ;;  %5606 = vmatprep.subr.bf16.mxu0 %v5605_v39 }
0x1791   :  { %v3966_v58 = vsel %vm287_vm1, %v3962_v21, 0.0  ;;  %5608 = vmatpush3.bf16.msra.mxu0 %v5605_v39  ;;  %v4269_v39 = vld [vmem:[#allocation10 + $0x340] sm:$0xff] }
0x1792   :  { %3967 = vadd.xlane.f32.xlu1 %v3966_v58  ;;  %v3963_v48 = vsel %vm287_vm1, %v3961_v45, 0.0 }
0x1793   :  { %3964 = vadd.xlane.f32.xlu0 %v3963_v48 }
0x181f   :  { %v3968_v18 = vpop.xlane.xlu1 %3967 }
0x1820   :  { %v3970_v19 = vmul.f32 0.015625, %v3968_v18  ;;  %v3965_v20 = vpop.xlane.xlu0 %3964 }
0x1821   :  { %v3969_v22 = vmul.f32 0.015625, %v3965_v20 }
0x1822   :  { %v3972_v25 = vadd.f32 1e-05, %v3970_v19 }
0x1823   :  { %v3971_v26 = vadd.f32 1e-05, %v3969_v22 }
0x1824   :  { %5706 = vrsqrt.f32 %v3972_v25 }
0x1825   :  { %5708 = vrsqrt.f32 %v3971_v26 }
0x182e   :  { %v5707_v27 = vpop.eup %5706 }
0x182f   :  { %v5709_v29 = vpop.eup %5708  ;;  %v3976_v30 = vmul.f32 %v5707_v27, %v6570_v46 }
0x1830   :  { %v3975_v31 = vmul.f32 %v5709_v29, %v6572_v47  ;;  %v4589_v47 = vld [vmem:[%s6709_s5 + $0x19] ss:$0 sm:$0xff] }
0x1831   :  { %v3982_v33 = vmul.f32 %v4584_v28, %v3976_v30  ;;  %v4263_v30 = vld [vmem:[#allocation10 + $0x70] sm:$0xff] }
0x1832   :  { %v3981_v34 = vmul.f32 %v4584_v28, %v3975_v31  ;;  %v4264_v31 = vld [vmem:[#allocation10 + $0xe8] sm:$0xff] }
0x1833   :  { %v3988_v36 = vadd.f32 %v4585_v32, %v3982_v33  ;;  %v4265_v33 = vld [vmem:[#allocation10 + $0x160] sm:$0xff] }
0x1834   :  { %v3987_v35 = vadd.f32 %v4585_v32, %v3981_v34  ;;  %v5609_v32 = vpack.c.bf16 %v4264_v31, %v4263_v30  ;;  %v4266_v34 = vld [vmem:[#allocation10 + $0x1d8] sm:$0xff] }
0x1836   :  { %5264 = vmatprep.mubr.msk.f32.mxu1 %vm287_vm1, %v3987_v35  ;;  %5610 = vmatprep.subr.bf16.mxu1 %v5609_v32 }
0x1837   :  { %5265 = vmatmul.mubr.msk.f32.vlgmr.msra.gmra.mrb[46].mxu1 %vm287_vm1, %v3988_v36 }
0x1838   :  { %5612 = vmatpush3.bf16.msra.mxu1 %v5609_v32 }
0x190a   :  { %v5266_v41 = vpop.f32.mrb[46].mxu1 }
0x190b   :  { %v4080_v49 = vadd.f32 %v5266_v41, %v4586_v40  ;;  %v4074_v42 = vpop.f32.mrb[47].mxu1 }
0x190c   :  { %v4075_v43 = vadd.f32 %v4586_v40, %v4074_v42  ;;  %v4270_v40 = vld [vmem:[#allocation10 + $0x3b8] sm:$0xff] }
0x190d   :  { %v4084_v46 = vmax.f32 %v4080_v49, 0.0  ;;  %v5621_v41 = vpack.c.bf16 %v4270_v40, %v4269_v39 }
0x190e   :  { %v4083_v44 = vmax.f32 %v4075_v43, 0.0 }
0x1910   :  { %5299 = vmatprep.mubr.f32.mxu0 %v4083_v44 }
0x1911   :  { %5300 = vmatmul.mubr.f32.vlgmr.msra.gmra.mrb[32].mxu0 %v4084_v46 }
0x19e4   :  { %v5301_v21 = vpop.f32.mrb[32].mxu0 }
0x19e5   :  { %v4178_v45 = vadd.f32 %v5301_v21, %v4589_v47  ;;  %v4172_v58 = vpop.f32.mrb[33].mxu0 }
0x19e6   :  { %v4173_v48 = vadd.f32 %v4589_v47, %v4172_v58 }
0x19e7   :  { %v4182_v24 = vadd.f32 %v4178_v45, %v3988_v36  ;;  %v4267_v36 = vld [vmem:[#allocation10 + $0x250] sm:$0xff]  ;;  %v4592_v45 = vld [vmem:[%s6709_s5 + $0x1c] ss:$0 sm:$0xff] }
0x19e8   :  { %v4181_v51 = vadd.f32 %v4173_v48, %v3987_v35  ;;  %v5613_v35 = vpack.c.bf16 %v4266_v34, %v4265_v33  ;;  %v5617_v38 = vpack.c.bf16 %v4268_v37, %v4267_v36 }
0x19e9   :  { %v4188_v2 = vsel %vm287_vm1, %v4182_v24, 0.0 }
0x19ea   :  { %4189 = vadd.xlane.f32.xlu1 %v4188_v2  ;;  %v4185_v3 = vsel %vm287_vm1, %v4181_v51, 0.0  ;;  %5614 = vmatprep.subr.bf16.mxu1 %v5613_v35 }
0x19eb   :  { %4186 = vadd.xlane.f32.xlu0 %v4185_v3  ;;  %5616 = vmatpush3.bf16.msra.mxu1 %v5613_v35 }
0x19ec   :  { %5618 = vmatprep.subr.bf16.mxu1 %v5617_v38 }
0x19ef   :  { %5620 = vmatpush3.bf16.msra.mxu1 %v5617_v38 }
0x19f0   :  { %5622 = vmatprep.subr.bf16.mxu1 %v5621_v41 }
0x19f3   :  { %5624 = vmatpush3.bf16.msra.mxu1 %v5621_v41 }
0x1a77   :  { %v4190_v53 = vpop.xlane.xlu1 %4189 }
0x1a78   :  { %v4192_v54 = vmul.f32 0.015625, %v4190_v53  ;;  %v4187_v55 = vpop.xlane.xlu0 %4186 }
0x1a79   :  { %v4191_v56 = vmul.f32 0.015625, %v4187_v55  ;;  %v4594_v55 = vld [vmem:[%s6709_s5 + $0x1e] ss:$0 sm:$0xff] }
0x1a7a   :  { %v4194_v57 = vsub.f32 %v4182_v24, %v4192_v54 }
0x1a7b   :  { %v4193_v52 = vsub.f32 %v4181_v51, %v4191_v56  ;;  %v4593_v51 = vld [vmem:[%s6709_s5 + $0x1d] ss:$0 sm:$0xff]  ;;  %s5764_s5 = scalar_lea.vmem %s6669_s26, 256 }
0x1a7c   :  { %v4196_v62 = vmul.f32 %v4194_v57, %v4194_v57  ;;  %p5765_p4 = scmp.ne.s32.totalorder %s6669_s26, %s5764_s5  ;;  %p5770_p6 = scmp.lt.s32.totalorder %s5764_s5, %s5764_s5 }
0x1a7d   :  { %v4195_v10 = vmul.f32 %v4193_v52, %v4193_v52 }
0x1a7e   :  { %v4200_v50 = vsel %vm287_vm1, %v4196_v62, 0.0  ;;  %p5771_p7 = por %p5770_p6, %p5769_p5 }
0x1a7f   :  { %4201 = vadd.xlane.f32.xlu1 %v4200_v50  ;;  %v4197_v59 = vsel %vm287_vm1, %v4195_v10, 0.0 }
0x1a80   :  { %4198 = vadd.xlane.f32.xlu0 %v4197_v59  ;;  %p5772_p8 = pnand %p5771_p7, %p5765_p4 }
0x1b0c   :  { %v4202_v60 = vpop.xlane.xlu1 %4201 }
0x1b0d   :  { %v4204_v61 = vmul.f32 0.015625, %v4202_v60  ;;  %v4199_v23 = vpop.xlane.xlu0 %4198 }
0x1b0e   :  { %v4203_v63 = vmul.f32 0.015625, %v4199_v23 }
0x1b0f   :  { %v4206_v0 = vadd.f32 1e-05, %v4204_v61 }
0x1b10   :  { %v4205_v1 = vadd.f32 1e-05, %v4203_v63 }
0x1b11   :  { %5710 = vrsqrt.f32 %v4206_v0 }
0x1b12   :  { %5712 = vrsqrt.f32 %v4205_v1 }
0x1b1b   :  { %v5711_v4 = vpop.eup %5710 }
0x1b1c   :  { %v5713_v9 = vpop.eup %5712  ;;  %v4210_v5 = vmul.f32 %v5711_v4, %v4194_v57 }
0x1b1d   :  { %v4209_v7 = vmul.f32 %v5713_v9, %v4193_v52 }
0x1b1e   :  { %v4216_v11 = vmul.f32 %v4590_v8, %v4210_v5 }
0x1b1f   :  { %v4215_v12 = vmul.f32 %v4590_v8, %v4209_v7 }
0x1b20   :  { %v4222_v13 = vadd.f32 %v4591_v6, %v4216_v11 }
0x1b21   :  { %v4221_v14 = vadd.f32 %v4591_v6, %v4215_v12 }
0x1b22   :  { %v4228_v15 = vsel %vm287_vm1, %v4222_v13, 0.0 }
0x1b23   :  { %4229 = vadd.xlane.f32.xlu1 %v4228_v15  ;;  %v4225_v16 = vsel %vm287_vm1, %v4221_v14, 0.0 }
0x1b24   :  { %4226 = vadd.xlane.f32.xlu0 %v4225_v16 }
0x1bb0   :  { %v4230_v17 = vpop.xlane.xlu1 %4229 }
0x1bb1   :  { %v4232_v18 = vmul.f32 0.015625, %v4230_v17  ;;  %v4227_v19 = vpop.xlane.xlu0 %4226 }
0x1bb2   :  { %v4231_v20 = vmul.f32 0.015625, %v4227_v19 }
0x1bb3   :  { %v4234_v22 = vsub.f32 %v4222_v13, %v4232_v18 }
0x1bb4   :  { %v4233_v25 = vsub.f32 %v4221_v14, %v4231_v20 }
0x1bb5   :  { %v4236_v26 = vmul.f32 %v4234_v22, %v4234_v22 }
0x1bb6   :  { %v4235_v27 = vmul.f32 %v4233_v25, %v4233_v25 }
0x1bb7   :  { %v4240_v28 = vsel %vm287_vm1, %v4236_v26, 0.0 }
0x1bb8   :  { %4241 = vadd.xlane.f32.xlu1 %v4240_v28  ;;  %v4237_v29 = vsel %vm287_vm1, %v4235_v27, 0.0 }
0x1bb9   :  { %4238 = vadd.xlane.f32.xlu0 %v4237_v29 }
0x1c45   :  { %v4242_v49 = vpop.xlane.xlu1 %4241 }
0x1c46   :  { %v4244_v42 = vmul.f32 0.015625, %v4242_v49  ;;  %v4239_v43 = vpop.xlane.xlu0 %4238 }
0x1c47   :  { %v4243_v44 = vmul.f32 0.015625, %v4239_v43 }
0x1c48   :  { %v4246_v46 = vadd.f32 1e-05, %v4244_v42 }
0x1c49   :  { %v4245_v47 = vadd.f32 1e-05, %v4243_v44 }
0x1c4a   :  { %5714 = vrsqrt.f32 %v4246_v46 }
0x1c4b   :  { %5716 = vrsqrt.f32 %v4245_v47 }
0x1c54   :  { %v5715_v21 = vpop.eup %5714 }
0x1c55   :  { %v5717_v58 = vpop.eup %5716  ;;  %v4250_v48 = vmul.f32 %v5715_v21, %v4234_v22 }
0x1c56   :  { %v4249_v24 = vmul.f32 %v5717_v58, %v4233_v25 }
0x1c57   :  { %v4256_v2 = vmul.f32 %v4592_v45, %v4250_v48 }
0x1c58   :  { %v4255_v3 = vmul.f32 %v4592_v45, %v4249_v24 }
0x1c59   :  { %v4262_v54 = vadd.f32 %v4593_v51, %v4256_v2 }
0x1c5a   :  { %v4261_v53 = vadd.f32 %v4593_v51, %v4255_v3 }
0x1c5c   :  { %5318 = vmatprep.mubr.msk.f32.mxu1 %vm287_vm1, %v4261_v53 }
0x1c5d   :  { %5319 = vmatmul.mubr.msk.f32.vlgmr.msra.gmra.mrb[48].mxu1 %vm287_vm1, %v4262_v54 }
0x1d30   :  { %v5320_v56 = vpop.f32.mrb[48].mxu1 }
0x1d31   :  { %v4354_v57 = vadd.f32 %v5320_v56, %v4594_v55  ;;  %v4348_v52 = vpop.f32.mrb[49].mxu1 }
0x1d32   :  { %v4349_v62 = vadd.f32 %v4594_v55, %v4348_v52 }
0x1d33   :  { %4373 = vst.msk [vmem:[#allocation11 + $0x1] sm:$0x1] %vm4357_vm5, %v4354_v57 }
0x1d34   :  { %4374 = vst.msk [vmem:[#allocation11 + $0x2] sm:$0x2] %vm4359_vm6, %v4354_v57  ;;  %4360 = vst.msk [vmem:[#allocation11 + $0x1] sm:$0x2] %vm4359_vm6, %v4349_v62 }
0x1d35   :  { %4375 = vst.msk [vmem:[#allocation11 + $0x3] sm:$0x4] %vm4361_vm7, %v4354_v57  ;;  %4362 = vst.msk [vmem:[#allocation11 + $0x2] sm:$0x4] %vm4361_vm7, %v4349_v62 }
0x1d36   :  { %4376 = vst.msk [vmem:[#allocation11 + $0x4] sm:$0x8] %vm4363_vm8, %v4354_v57  ;;  %4364 = vst.msk [vmem:[#allocation11 + $0x3] sm:$0x8] %vm4363_vm8, %v4349_v62 }
0x1d37   :  { %4377 = vst.msk [vmem:[#allocation11 + $0x5] sm:$0x10] %vm4365_vm9, %v4354_v57  ;;  %4366 = vst.msk [vmem:[#allocation11 + $0x4] sm:$0x10] %vm4365_vm9, %v4349_v62 }
0x1d38   :  { %4378 = vst.msk [vmem:[#allocation11 + $0x6] sm:$0x20] %vm4367_vm10, %v4354_v57  ;;  %4368 = vst.msk [vmem:[#allocation11 + $0x5] sm:$0x20] %vm4367_vm10, %v4349_v62 }
0x1d39   :  { %4379 = vst.msk [vmem:[#allocation11 + $0x7] sm:$0x40] %vm4369_vm11, %v4354_v57  ;;  %4370 = vst.msk [vmem:[#allocation11 + $0x6] sm:$0x40] %vm4369_vm11, %v4349_v62 }
0x1d3a   :  { %4380 = vst.msk [vmem:[#allocation11 + $0x8] sm:$0x80] %vm4371_vm12, %v4354_v57  ;;  %4372 = vst.msk [vmem:[#allocation11 + $0x7] sm:$0x80] %vm4371_vm12, %v4349_v62 }
0x1d3b   :  { %4358 = vst.msk [vmem:[#allocation11] sm:$0x1] %vm4357_vm5, %v4349_v62 }
0x1d3c   :  { %5775 = shalt.err (!%p5772_p8)
}
0x1d3d   :  { %s5776_s25 = scalar_lea.hbm %s6710_s6, 256 }
0x1d3e   :  { %p5777_p9 = scmp.ne.s32.totalorder %s6710_s6, %s5776_s25  ;;  %p5780_p10 = scmp.lt.u32.totalorder %s5776_s25, %s6710_s6 }
0x1d40   :  { %p5782_p11 = pnand %p5780_p10, %p5777_p9 }
0x1d42   :  { %5785 = shalt.err (!%p5782_p11)
}
0x1d43   :  { %s5803_s27 = smov 128   ;;  %s5804_s13 = smov 8  }
0x1d44   :  { %4392 = dma.vmem_to_hbm [thread:$0]  %s6669_s26, 256, %s6710_s6, [#allocation6], %s5803_s27, %s5803_s27, %s5804_s13  }
0x1d45   :  { %5792 = dma.done.wait [#allocation6], 256  }
0x1d46   :  { %5793 = vsyncadd [#allocation6], 4294967040 }
0x1d47   :  { %4396 = vsyncpa [#allocation5], 1 }
0x1d48   :  { %4397 = vsyncpa [#allocation6], 1 }
0x1d49   :  { %4398 = vsyncpa [#allocation7], 1 }
0x1d4a   :  { %4399 = vsyncpa [#allocation9], 1 }

</bundles_post_ra>
